<compile_context>
chip_gen: v7x
topology: tpu7x:2x2x1
jax: 0.10.0
libtpu: 0.0.40
codegen_flags: <defaults>
</compile_context>

<pallas_src>
import jax
import jax.numpy as jnp
import numpy as np
from jax.experimental import pallas as pl
from jax.experimental.pallas import tpu as pltpu


# ------------------------------ fused kernel ------------------------------- #

def _audio_encoder_kernel(x_ref, w_s1_ref, b_s1_ref, w_tr_ref, b_tr_ref,
                          w_s2_ref, b_s2_ref, o_ref, act_ref):
    """Whole AudioEncoder forward for ONE batch element.

    x_ref   : (T0 + 6, Cin)        time-padded input (pad=3 for the K=7 conv)
    w_s1_ref: (7, Cin, 128)        SameBlock1d #1 weight, b_s1_ref: (1, 128)
    w_tr_ref: (9, 3, 128, 128)     the 9 trunk K=3 convs (res/res/down x3)
    b_tr_ref: (9, 1, 128)
    w_s2_ref: (3, 128, out_dim)    SameBlock1d #2 weight, b_s2_ref: (1, out_dim)
    o_ref   : (1, out_dim)         pooled output
    act_ref : (T0 + 2, 128)        VMEM scratch: zero-padded conv input slab
    """
    f32 = jnp.float32
    T0 = x_ref.shape[0] - 6                    # same1 is K=7, pad=3

    def conv3(y, w0, w1, w2, b, relu_out):
        """Stride-1 Conv1d(K=3, pad=1) + bias (+ ReLU) on a (T, 128) slab."""
        T = y.shape[0]
        # Zero-padded halo lives in the VMEM scratch (no HBM traffic).
        act_ref[pl.ds(0, 1), :] = jnp.zeros((1, 128), f32)
        act_ref[pl.ds(1, T), :] = y
        act_ref[pl.ds(T + 1, 1), :] = jnp.zeros((1, 128), f32)
        acc = jnp.dot(y, w1, preferred_element_type=f32)                # y[t]
        acc = acc + jnp.dot(act_ref[pl.ds(0, T), :], w0,
                            preferred_element_type=f32)                 # y[t-1]
        acc = acc + jnp.dot(act_ref[pl.ds(2, T), :], w2,
                            preferred_element_type=f32)                 # y[t+1]
        acc = acc + b
        if relu_out:
            acc = jnp.maximum(acc, 0.0)
        return acc

    def res_block(y, i):
        # ResBlock1d; leading relu dropped (y >= 0 from the producing ReLU).
        h = conv3(y, w_tr_ref[i, 0], w_tr_ref[i, 1], w_tr_ref[i, 2],
                  b_tr_ref[i], True)
        z = conv3(h, w_tr_ref[i + 1, 0], w_tr_ref[i + 1, 1], w_tr_ref[i + 1, 2],
                  b_tr_ref[i + 1], False)
        return z + y

    def down_block(y, i):
        # DownBlock1d (stride 2): stride-1 conv, then exact even-row decimation
        # via a 0/1 selection matmul, then ReLU (commutes with row selection).
        h = conv3(y, w_tr_ref[i, 0], w_tr_ref[i, 1], w_tr_ref[i, 2],
                  b_tr_ref[i], False)
        T = h.shape[0]
        half = T // 2
        r = jax.lax.broadcasted_iota(jnp.int32, (half, T), 0)
        c = jax.lax.broadcasted_iota(jnp.int32, (half, T), 1)
        sel = (c == 2 * r).astype(f32)
        return jnp.maximum(jnp.dot(sel, h, preferred_element_type=f32), 0.0)

    # ---- SameBlock1d(in_channel -> 128, K=7, pad=3): per-tap MXU matmuls ----
    acc = jnp.dot(x_ref[pl.ds(0, T0), :], w_s1_ref[0], preferred_element_type=f32)
    for k in range(1, 7):
        acc = acc + jnp.dot(x_ref[pl.ds(k, T0), :], w_s1_ref[k],
                            preferred_element_type=f32)
    y = jnp.maximum(acc + b_s1_ref[...], 0.0)                  # (T0, 128)

    # ---- three (ResBlock1d -> DownBlock1d) stages ----
    y = res_block(y, 0); y = down_block(y, 2)                  # T0   -> T0/2
    y = res_block(y, 3); y = down_block(y, 5)                  # T0/2 -> T0/4
    y = res_block(y, 6); y = down_block(y, 8)                  # T0/4 -> T0/8

    # ---- SameBlock1d(128 -> out_dim) + fused AdaptiveAvgPool1d(1) ----
    y = conv3(y, w_s2_ref[0], w_s2_ref[1], w_s2_ref[2], b_s2_ref[...], True)
    pooled = jnp.sum(y, axis=0, keepdims=True) * (1.0 / y.shape[0])
    o_ref[...] = pooled.astype(o_ref.dtype)


# ------------------------------ host wrapper -------------------------------- #

def audio_encoder_forward(params, x_ncw):
    """x_ncw: (B, in_channel, T) float32 (PyTorch NCW) -> (B, out_dim)."""
    B, Cin, T0 = x_ncw.shape
    assert T0 % 8 == 0, "three stride-2 stages require T divisible by 8"

    x = jnp.transpose(x_ncw, (0, 2, 1))                     # (B, T, Cin)
    x_pad = jnp.pad(x, ((0, 0), (3, 3), (0, 0)))            # pad ONCE, in glue

    w_s1 = params["same1"]["w"]                             # (7, Cin, 128)
    b_s1 = params["same1"]["b"].reshape(1, -1)
    trunk_w, trunk_b = [], []
    for r, d in (("res1", "down1"), ("res2", "down2"), ("res3", "down3")):
        trunk_w += [params[r]["w1"], params[r]["w2"], params[d]["w"]]
        trunk_b += [params[r]["b1"], params[r]["b2"], params[d]["b"]]
    w_tr = jnp.stack(trunk_w)                               # (9, 3, 128, 128)
    b_tr = jnp.stack([b.reshape(1, -1) for b in trunk_b])   # (9, 1, 128)
    w_s2 = params["same2"]["w"]                             # (3, 128, out_dim)
    b_s2 = params["same2"]["b"].reshape(1, -1)
    out_dim = w_s2.shape[-1]

    out3 = pl.pallas_call(
        _audio_encoder_kernel,
        out_shape=jax.ShapeDtypeStruct((B, 1, out_dim), x.dtype),
        grid=(B,),
        in_specs=[
            pl.BlockSpec((None, T0 + 6, Cin), lambda b: (b, 0, 0)),   # per-batch input
            pl.BlockSpec((7, Cin, 128), lambda b: (0, 0, 0)),         # same1 weight
            pl.BlockSpec((1, 128), lambda b: (0, 0)),                 # same1 bias
            pl.BlockSpec((9, 3, 128, 128), lambda b: (0, 0, 0, 0)),   # trunk weights
            pl.BlockSpec((9, 1, 128), lambda b: (0, 0, 0)),           # trunk biases
            pl.BlockSpec((3, 128, out_dim), lambda b: (0, 0, 0)),     # same2 weight
            pl.BlockSpec((1, out_dim), lambda b: (0, 0)),             # same2 bias
        ],
        out_specs=pl.BlockSpec((None, 1, out_dim), lambda b: (b, 0, 0)),
        scratch_shapes=[pltpu.VMEM((T0 + 2, 128), jnp.float32)],
        compiler_params=pltpu.CompilerParams(
            dimension_semantics=("parallel",)),
    )(x_pad, w_s1, b_s1, w_tr, b_tr, w_s2, b_s2)
    return out3[:, 0, :]


# ------------------------- deterministic parameters ------------------------ #

def init_params(key, in_channel, out_dim, scale=0.05):
    keys = iter(jax.random.split(key, 32))

    def conv_p(cin, cout, k):
        return (scale * jax.random.normal(next(keys), (k, cin, cout), jnp.float32),
                scale * jax.random.normal(next(keys), (cout,), jnp.float32))

    params = {}
    w, b = conv_p(in_channel, 128, 7)
    params["same1"] = {"w": w, "b": b, "pad": 3}
    for name in ("res1", "res2", "res3"):
        w1, b1 = conv_p(128, 128, 3)
        w2, b2 = conv_p(128, 128, 3)
        params[name] = {"w1": w1, "b1": b1, "w2": w2, "b2": b2}
    for name in ("down1", "down2", "down3"):
        w, b = conv_p(128, 128, 3)
        params[name] = {"w": w, "b": b}
    w, b = conv_p(128, out_dim, 3)
    params["same2"] = {"w": w, "b": b, "pad": 1}
    return params


# ------------------------------ pure-JAX ref -------------------------------- #

def _ref_conv(x_ncw, w_kio, b, stride, pad):
    w = jnp.transpose(w_kio, (2, 1, 0))          # (Cout, Cin, K)
    y = jax.lax.conv_general_dilated(
        x_ncw, w, (stride,), [(pad, pad)],
        dimension_numbers=("NCH", "OIH", "NCH"))
    return y + b[None, :, None]


def ref_forward(params, x_ncw):
    relu = lambda v: jnp.maximum(v, 0.0)
    y = relu(_ref_conv(x_ncw, params["same1"]["w"], params["same1"]["b"], 1, 3))

    def res(y, p):
        h = relu(_ref_conv(relu(y), p["w1"], p["b1"], 1, 1))
        return _ref_conv(h, p["w2"], p["b2"], 1, 1) + y

    def down(y, p):
        return relu(_ref_conv(y, p["w"], p["b"], 2, 1))

    y = res(y, params["res1"]); y = down(y, params["down1"])
    y = res(y, params["res2"]); y = down(y, params["down2"])
    y = res(y, params["res3"]); y = down(y, params["down3"])
    y = relu(_ref_conv(y, params["same2"]["w"], params["same2"]["b"], 1, 1))
    return jnp.mean(y, axis=2)


# ---------------------------------- main ------------------------------------ #

if __name__ == "__main__":
    B, in_channel, T, out_dim = 2, 16, 32, 64

    key = jax.random.PRNGKey(0)
    k_params, k_x = jax.random.split(key)
    params = init_params(k_params, in_channel, out_dim)
    x = jax.random.normal(k_x, (B, in_channel, T), jnp.float32)   # NCW, like torch

    out = jax.block_until_ready(audio_encoder_forward(params, x))
    assert out.shape == (B, out_dim), out.shape

    ref = jax.block_until_ready(ref_forward(params, x))
    np.testing.assert_allclose(np.asarray(out), np.asarray(ref),
                               rtol=1e-2, atol=1e-2)

    print("KERNEL_OK")
</pallas_src>

<mosaic_0001>
module attributes {stable_mosaic.version = 11 : i64} {
  func.func @_audio_encoder_kernel(%arg0: i32, %arg1: memref<1x38x16xf32, #tpu.memory_space<vmem>>, %arg2: memref<7x16x128xf32, #tpu.memory_space<vmem>>, %arg3: memref<1x128xf32, #tpu.memory_space<vmem>>, %arg4: memref<9x3x128x128xf32, #tpu.memory_space<vmem>>, %arg5: memref<9x1x128xf32, #tpu.memory_space<vmem>>, %arg6: memref<3x128x64xf32, #tpu.memory_space<vmem>>, %arg7: memref<1x64xf32, #tpu.memory_space<vmem>>, %arg8: memref<1x1x64xf32, #tpu.memory_space<vmem>>, %arg9: memref<34x128xf32, #tpu.memory_space<vmem>>) attributes {dimension_semantics = [#tpu.dimension_semantics<parallel>], iteration_bounds = array<i64: 2>, scalar_prefetch = 0 : i64, scratch_operands = 1 : i64, tpu.core_type = #tpu.core_type<tc>, window_params = [{transform_indices = @transform_0, window_bounds = array<i64: 1, 38, 16>}, {pipeline_mode = #tpu.pipeline_mode<synchronous>, transform_indices = @transform_1, window_bounds = array<i64: 7, 16, 128>}, {pipeline_mode = #tpu.pipeline_mode<synchronous>, transform_indices = @transform_2, window_bounds = array<i64: 1, 128>}, {pipeline_mode = #tpu.pipeline_mode<synchronous>, transform_indices = @transform_3, window_bounds = array<i64: 9, 3, 128, 128>}, {pipeline_mode = #tpu.pipeline_mode<synchronous>, transform_indices = @transform_4, window_bounds = array<i64: 9, 1, 128>}, {pipeline_mode = #tpu.pipeline_mode<synchronous>, transform_indices = @transform_5, window_bounds = array<i64: 3, 128, 64>}, {pipeline_mode = #tpu.pipeline_mode<synchronous>, transform_indices = @transform_6, window_bounds = array<i64: 1, 64>}, {transform_indices = @transform_7, window_bounds = array<i64: 1, 1, 64>}]} {
    %c0 = arith.constant 0 : index
    %c0_0 = arith.constant 0 : index
    %c0_1 = arith.constant 0 : index
    %0 = vector.load %arg1[%c0, %c0_0, %c0_1] : memref<1x38x16xf32, #tpu.memory_space<vmem>>, vector<1x32x16xf32>
    %1 = vector.shape_cast %0 : vector<1x32x16xf32> to vector<32x16xf32>
    %c0_2 = arith.constant 0 : index
    %c0_3 = arith.constant 0 : index
    %c0_4 = arith.constant 0 : index
    %2 = vector.load %arg2[%c0_2, %c0_3, %c0_4] : memref<7x16x128xf32, #tpu.memory_space<vmem>>, vector<1x16x128xf32>
    %3 = vector.shape_cast %2 : vector<1x16x128xf32> to vector<16x128xf32>
    %cst = arith.constant dense<0.000000e+00> : vector<32x128xf32>
    %4 = tpu.matmul %1, %3, %cst {dimension_numbers = #tpu.dot_dimension_numbers<[1], [0], [0], [1], [0, 0, 1, 1], [], []>} : vector<32x16xf32>, vector<16x128xf32>, vector<32x128xf32> -> vector<32x128xf32>
    %c0_5 = arith.constant 0 : index
    %c1 = arith.constant 1 : index
    %c0_6 = arith.constant 0 : index
    %5 = vector.load %arg1[%c0_5, %c1, %c0_6] : memref<1x38x16xf32, #tpu.memory_space<vmem>>, vector<1x32x16xf32>
    %6 = vector.shape_cast %5 : vector<1x32x16xf32> to vector<32x16xf32>
    %c1_7 = arith.constant 1 : index
    %c0_8 = arith.constant 0 : index
    %c0_9 = arith.constant 0 : index
    %7 = vector.load %arg2[%c1_7, %c0_8, %c0_9] : memref<7x16x128xf32, #tpu.memory_space<vmem>>, vector<1x16x128xf32>
    %8 = vector.shape_cast %7 : vector<1x16x128xf32> to vector<16x128xf32>
    %cst_10 = arith.constant dense<0.000000e+00> : vector<32x128xf32>
    %9 = tpu.matmul %6, %8, %cst_10 {dimension_numbers = #tpu.dot_dimension_numbers<[1], [0], [0], [1], [0, 0, 1, 1], [], []>} : vector<32x16xf32>, vector<16x128xf32>, vector<32x128xf32> -> vector<32x128xf32>
    %10 = arith.addf %4, %9 : vector<32x128xf32>
    %c0_11 = arith.constant 0 : index
    %c2 = arith.constant 2 : index
    %c0_12 = arith.constant 0 : index
    %11 = vector.load %arg1[%c0_11, %c2, %c0_12] : memref<1x38x16xf32, #tpu.memory_space<vmem>>, vector<1x32x16xf32>
    %12 = vector.shape_cast %11 : vector<1x32x16xf32> to vector<32x16xf32>
    %c2_13 = arith.constant 2 : index
    %c0_14 = arith.constant 0 : index
    %c0_15 = arith.constant 0 : index
    %13 = vector.load %arg2[%c2_13, %c0_14, %c0_15] : memref<7x16x128xf32, #tpu.memory_space<vmem>>, vector<1x16x128xf32>
    %14 = vector.shape_cast %13 : vector<1x16x128xf32> to vector<16x128xf32>
    %cst_16 = arith.constant dense<0.000000e+00> : vector<32x128xf32>
    %15 = tpu.matmul %12, %14, %cst_16 {dimension_numbers = #tpu.dot_dimension_numbers<[1], [0], [0], [1], [0, 0, 1, 1], [], []>} : vector<32x16xf32>, vector<16x128xf32>, vector<32x128xf32> -> vector<32x128xf32>
    %16 = arith.addf %10, %15 : vector<32x128xf32>
    %c0_17 = arith.constant 0 : index
    %c3 = arith.constant 3 : index
    %c0_18 = arith.constant 0 : index
    %17 = vector.load %arg1[%c0_17, %c3, %c0_18] : memref<1x38x16xf32, #tpu.memory_space<vmem>>, vector<1x32x16xf32>
    %18 = vector.shape_cast %17 : vector<1x32x16xf32> to vector<32x16xf32>
    %c3_19 = arith.constant 3 : index
    %c0_20 = arith.constant 0 : index
    %c0_21 = arith.constant 0 : index
    %19 = vector.load %arg2[%c3_19, %c0_20, %c0_21] : memref<7x16x128xf32, #tpu.memory_space<vmem>>, vector<1x16x128xf32>
    %20 = vector.shape_cast %19 : vector<1x16x128xf32> to vector<16x128xf32>
    %cst_22 = arith.constant dense<0.000000e+00> : vector<32x128xf32>
    %21 = tpu.matmul %18, %20, %cst_22 {dimension_numbers = #tpu.dot_dimension_numbers<[1], [0], [0], [1], [0, 0, 1, 1], [], []>} : vector<32x16xf32>, vector<16x128xf32>, vector<32x128xf32> -> vector<32x128xf32>
    %22 = arith.addf %16, %21 : vector<32x128xf32>
    %c0_23 = arith.constant 0 : index
    %c4 = arith.constant 4 : index
    %c0_24 = arith.constant 0 : index
    %23 = vector.load %arg1[%c0_23, %c4, %c0_24] : memref<1x38x16xf32, #tpu.memory_space<vmem>>, vector<1x32x16xf32>
    %24 = vector.shape_cast %23 : vector<1x32x16xf32> to vector<32x16xf32>
    %c4_25 = arith.constant 4 : index
    %c0_26 = arith.constant 0 : index
    %c0_27 = arith.constant 0 : index
    %25 = vector.load %arg2[%c4_25, %c0_26, %c0_27] : memref<7x16x128xf32, #tpu.memory_space<vmem>>, vector<1x16x128xf32>
    %26 = vector.shape_cast %25 : vector<1x16x128xf32> to vector<16x128xf32>
    %cst_28 = arith.constant dense<0.000000e+00> : vector<32x128xf32>
    %27 = tpu.matmul %24, %26, %cst_28 {dimension_numbers = #tpu.dot_dimension_numbers<[1], [0], [0], [1], [0, 0, 1, 1], [], []>} : vector<32x16xf32>, vector<16x128xf32>, vector<32x128xf32> -> vector<32x128xf32>
    %28 = arith.addf %22, %27 : vector<32x128xf32>
    %c0_29 = arith.constant 0 : index
    %c5 = arith.constant 5 : index
    %c0_30 = arith.constant 0 : index
    %29 = vector.load %arg1[%c0_29, %c5, %c0_30] : memref<1x38x16xf32, #tpu.memory_space<vmem>>, vector<1x32x16xf32>
    %30 = vector.shape_cast %29 : vector<1x32x16xf32> to vector<32x16xf32>
    %c5_31 = arith.constant 5 : index
    %c0_32 = arith.constant 0 : index
    %c0_33 = arith.constant 0 : index
    %31 = vector.load %arg2[%c5_31, %c0_32, %c0_33] : memref<7x16x128xf32, #tpu.memory_space<vmem>>, vector<1x16x128xf32>
    %32 = vector.shape_cast %31 : vector<1x16x128xf32> to vector<16x128xf32>
    %cst_34 = arith.constant dense<0.000000e+00> : vector<32x128xf32>
    %33 = tpu.matmul %30, %32, %cst_34 {dimension_numbers = #tpu.dot_dimension_numbers<[1], [0], [0], [1], [0, 0, 1, 1], [], []>} : vector<32x16xf32>, vector<16x128xf32>, vector<32x128xf32> -> vector<32x128xf32>
    %34 = arith.addf %28, %33 : vector<32x128xf32>
    %c0_35 = arith.constant 0 : index
    %c6 = arith.constant 6 : index
    %c0_36 = arith.constant 0 : index
    %35 = vector.load %arg1[%c0_35, %c6, %c0_36] : memref<1x38x16xf32, #tpu.memory_space<vmem>>, vector<1x32x16xf32>
    %36 = vector.shape_cast %35 : vector<1x32x16xf32> to vector<32x16xf32>
    %c6_37 = arith.constant 6 : index
    %c0_38 = arith.constant 0 : index
    %c0_39 = arith.constant 0 : index
    %37 = vector.load %arg2[%c6_37, %c0_38, %c0_39] : memref<7x16x128xf32, #tpu.memory_space<vmem>>, vector<1x16x128xf32>
    %38 = vector.shape_cast %37 : vector<1x16x128xf32> to vector<16x128xf32>
    %cst_40 = arith.constant dense<0.000000e+00> : vector<32x128xf32>
    %39 = tpu.matmul %36, %38, %cst_40 {dimension_numbers = #tpu.dot_dimension_numbers<[1], [0], [0], [1], [0, 0, 1, 1], [], []>} : vector<32x16xf32>, vector<16x128xf32>, vector<32x128xf32> -> vector<32x128xf32>
    %40 = arith.addf %34, %39 : vector<32x128xf32>
    %c0_41 = arith.constant 0 : index
    %c0_42 = arith.constant 0 : index
    %41 = vector.load %arg3[%c0_41, %c0_42] : memref<1x128xf32, #tpu.memory_space<vmem>>, vector<1x128xf32>
    %42 = vector.broadcast %41 : vector<1x128xf32> to vector<32x128xf32>
    %43 = arith.addf %40, %42 : vector<32x128xf32>
    %cst_43 = arith.constant 0.000000e+00 : f32
    %44 = vector.broadcast %cst_43 : f32 to vector<32x128xf32>
    %45 = arith.maximumf %43, %44 : vector<32x128xf32>
    %c0_44 = arith.constant 0 : index
    %c0_45 = arith.constant 0 : index
    %c0_46 = arith.constant 0 : index
    %c0_47 = arith.constant 0 : index
    %46 = vector.load %arg4[%c0_44, %c0_45, %c0_46, %c0_47] : memref<9x3x128x128xf32, #tpu.memory_space<vmem>>, vector<1x1x128x128xf32>
    %47 = vector.shape_cast %46 : vector<1x1x128x128xf32> to vector<128x128xf32>
    %c0_48 = arith.constant 0 : index
    %c1_49 = arith.constant 1 : index
    %c0_50 = arith.constant 0 : index
    %c0_51 = arith.constant 0 : index
    %48 = vector.load %arg4[%c0_48, %c1_49, %c0_50, %c0_51] : memref<9x3x128x128xf32, #tpu.memory_space<vmem>>, vector<1x1x128x128xf32>
    %49 = vector.shape_cast %48 : vector<1x1x128x128xf32> to vector<128x128xf32>
    %c0_52 = arith.constant 0 : index
    %c2_53 = arith.constant 2 : index
    %c0_54 = arith.constant 0 : index
    %c0_55 = arith.constant 0 : index
    %50 = vector.load %arg4[%c0_52, %c2_53, %c0_54, %c0_55] : memref<9x3x128x128xf32, #tpu.memory_space<vmem>>, vector<1x1x128x128xf32>
    %51 = vector.shape_cast %50 : vector<1x1x128x128xf32> to vector<128x128xf32>
    %c0_56 = arith.constant 0 : index
    %c0_57 = arith.constant 0 : index
    %c0_58 = arith.constant 0 : index
    %52 = vector.load %arg5[%c0_56, %c0_57, %c0_58] : memref<9x1x128xf32, #tpu.memory_space<vmem>>, vector<1x1x128xf32>
    %53 = vector.shape_cast %52 : vector<1x1x128xf32> to vector<1x128xf32>
    %cst_59 = arith.constant 0.000000e+00 : f32
    %54 = vector.broadcast %cst_59 : f32 to vector<1x128xf32>
    %c0_60 = arith.constant 0 : index
    %c0_61 = arith.constant 0 : index
    %55 = vector.load %arg9[%c0_60, %c0_61] : memref<34x128xf32, #tpu.memory_space<vmem>>, vector<1x128xf32>
    tpu.vector_store %arg9[%c0_60, %c0_61], %54 {strides = array<i32>} : memref<34x128xf32, #tpu.memory_space<vmem>>, vector<1x128xf32>,
    %c1_62 = arith.constant 1 : index
    %c0_63 = arith.constant 0 : index
    %56 = vector.load %arg9[%c1_62, %c0_63] : memref<34x128xf32, #tpu.memory_space<vmem>>, vector<32x128xf32>
    tpu.vector_store %arg9[%c1_62, %c0_63], %45 {strides = array<i32>} : memref<34x128xf32, #tpu.memory_space<vmem>>, vector<32x128xf32>,
    %cst_64 = arith.constant 0.000000e+00 : f32
    %57 = vector.broadcast %cst_64 : f32 to vector<1x128xf32>
    %c33 = arith.constant 33 : index
    %c0_65 = arith.constant 0 : index
    %58 = vector.load %arg9[%c33, %c0_65] : memref<34x128xf32, #tpu.memory_space<vmem>>, vector<1x128xf32>
    tpu.vector_store %arg9[%c33, %c0_65], %57 {strides = array<i32>} : memref<34x128xf32, #tpu.memory_space<vmem>>, vector<1x128xf32>,
    %cst_66 = arith.constant dense<0.000000e+00> : vector<32x128xf32>
    %59 = tpu.matmul %45, %49, %cst_66 {dimension_numbers = #tpu.dot_dimension_numbers<[1], [0], [0], [1], [0, 0, 1, 1], [], []>} : vector<32x128xf32>, vector<128x128xf32>, vector<32x128xf32> -> vector<32x128xf32>
    %c0_67 = arith.constant 0 : index
    %c0_68 = arith.constant 0 : index
    %60 = vector.load %arg9[%c0_67, %c0_68] : memref<34x128xf32, #tpu.memory_space<vmem>>, vector<32x128xf32>
    %cst_69 = arith.constant dense<0.000000e+00> : vector<32x128xf32>
    %61 = tpu.matmul %60, %47, %cst_69 {dimension_numbers = #tpu.dot_dimension_numbers<[1], [0], [0], [1], [0, 0, 1, 1], [], []>} : vector<32x128xf32>, vector<128x128xf32>, vector<32x128xf32> -> vector<32x128xf32>
    %62 = arith.addf %59, %61 : vector<32x128xf32>
    %c2_70 = arith.constant 2 : index
    %c0_71 = arith.constant 0 : index
    %63 = vector.load %arg9[%c2_70, %c0_71] : memref<34x128xf32, #tpu.memory_space<vmem>>, vector<32x128xf32>
    %cst_72 = arith.constant dense<0.000000e+00> : vector<32x128xf32>
    %64 = tpu.matmul %63, %51, %cst_72 {dimension_numbers = #tpu.dot_dimension_numbers<[1], [0], [0], [1], [0, 0, 1, 1], [], []>} : vector<32x128xf32>, vector<128x128xf32>, vector<32x128xf32> -> vector<32x128xf32>
    %65 = arith.addf %62, %64 : vector<32x128xf32>
    %66 = vector.broadcast %53 : vector<1x128xf32> to vector<32x128xf32>
    %67 = arith.addf %65, %66 : vector<32x128xf32>
    %cst_73 = arith.constant 0.000000e+00 : f32
    %68 = vector.broadcast %cst_73 : f32 to vector<32x128xf32>
    %69 = arith.maximumf %67, %68 : vector<32x128xf32>
    %c1_74 = arith.constant 1 : index
    %c0_75 = arith.constant 0 : index
    %c0_76 = arith.constant 0 : index
    %c0_77 = arith.constant 0 : index
    %70 = vector.load %arg4[%c1_74, %c0_75, %c0_76, %c0_77] : memref<9x3x128x128xf32, #tpu.memory_space<vmem>>, vector<1x1x128x128xf32>
    %71 = vector.shape_cast %70 : vector<1x1x128x128xf32> to vector<128x128xf32>
    %c1_78 = arith.constant 1 : index
    %c1_79 = arith.constant 1 : index
    %c0_80 = arith.constant 0 : index
    %c0_81 = arith.constant 0 : index
    %72 = vector.load %arg4[%c1_78, %c1_79, %c0_80, %c0_81] : memref<9x3x128x128xf32, #tpu.memory_space<vmem>>, vector<1x1x128x128xf32>
    %73 = vector.shape_cast %72 : vector<1x1x128x128xf32> to vector<128x128xf32>
    %c1_82 = arith.constant 1 : index
    %c2_83 = arith.constant 2 : index
    %c0_84 = arith.constant 0 : index
    %c0_85 = arith.constant 0 : index
    %74 = vector.load %arg4[%c1_82, %c2_83, %c0_84, %c0_85] : memref<9x3x128x128xf32, #tpu.memory_space<vmem>>, vector<1x1x128x128xf32>
    %75 = vector.shape_cast %74 : vector<1x1x128x128xf32> to vector<128x128xf32>
    %c1_86 = arith.constant 1 : index
    %c0_87 = arith.constant 0 : index
    %c0_88 = arith.constant 0 : index
    %76 = vector.load %arg5[%c1_86, %c0_87, %c0_88] : memref<9x1x128xf32, #tpu.memory_space<vmem>>, vector<1x1x128xf32>
    %77 = vector.shape_cast %76 : vector<1x1x128xf32> to vector<1x128xf32>
    %cst_89 = arith.constant 0.000000e+00 : f32
    %78 = vector.broadcast %cst_89 : f32 to vector<1x128xf32>
    %c0_90 = arith.constant 0 : index
    %c0_91 = arith.constant 0 : index
    %79 = vector.load %arg9[%c0_90, %c0_91] : memref<34x128xf32, #tpu.memory_space<vmem>>, vector<1x128xf32>
    tpu.vector_store %arg9[%c0_90, %c0_91], %78 {strides = array<i32>} : memref<34x128xf32, #tpu.memory_space<vmem>>, vector<1x128xf32>,
    %c1_92 = arith.constant 1 : index
    %c0_93 = arith.constant 0 : index
    %80 = vector.load %arg9[%c1_92, %c0_93] : memref<34x128xf32, #tpu.memory_space<vmem>>, vector<32x128xf32>
    tpu.vector_store %arg9[%c1_92, %c0_93], %69 {strides = array<i32>} : memref<34x128xf32, #tpu.memory_space<vmem>>, vector<32x128xf32>,
    %cst_94 = arith.constant 0.000000e+00 : f32
    %81 = vector.broadcast %cst_94 : f32 to vector<1x128xf32>
    %c33_95 = arith.constant 33 : index
    %c0_96 = arith.constant 0 : index
    %82 = vector.load %arg9[%c33_95, %c0_96] : memref<34x128xf32, #tpu.memory_space<vmem>>, vector<1x128xf32>
    tpu.vector_store %arg9[%c33_95, %c0_96], %81 {strides = array<i32>} : memref<34x128xf32, #tpu.memory_space<vmem>>, vector<1x128xf32>,
    %cst_97 = arith.constant dense<0.000000e+00> : vector<32x128xf32>
    %83 = tpu.matmul %69, %73, %cst_97 {dimension_numbers = #tpu.dot_dimension_numbers<[1], [0], [0], [1], [0, 0, 1, 1], [], []>} : vector<32x128xf32>, vector<128x128xf32>, vector<32x128xf32> -> vector<32x128xf32>
    %c0_98 = arith.constant 0 : index
    %c0_99 = arith.constant 0 : index
    %84 = vector.load %arg9[%c0_98, %c0_99] : memref<34x128xf32, #tpu.memory_space<vmem>>, vector<32x128xf32>
    %cst_100 = arith.constant dense<0.000000e+00> : vector<32x128xf32>
    %85 = tpu.matmul %84, %71, %cst_100 {dimension_numbers = #tpu.dot_dimension_numbers<[1], [0], [0], [1], [0, 0, 1, 1], [], []>} : vector<32x128xf32>, vector<128x128xf32>, vector<32x128xf32> -> vector<32x128xf32>
    %86 = arith.addf %83, %85 : vector<32x128xf32>
    %c2_101 = arith.constant 2 : index
    %c0_102 = arith.constant 0 : index
    %87 = vector.load %arg9[%c2_101, %c0_102] : memref<34x128xf32, #tpu.memory_space<vmem>>, vector<32x128xf32>
    %cst_103 = arith.constant dense<0.000000e+00> : vector<32x128xf32>
    %88 = tpu.matmul %87, %75, %cst_103 {dimension_numbers = #tpu.dot_dimension_numbers<[1], [0], [0], [1], [0, 0, 1, 1], [], []>} : vector<32x128xf32>, vector<128x128xf32>, vector<32x128xf32> -> vector<32x128xf32>
    %89 = arith.addf %86, %88 : vector<32x128xf32>
    %90 = vector.broadcast %77 : vector<1x128xf32> to vector<32x128xf32>
    %91 = arith.addf %89, %90 : vector<32x128xf32>
    %92 = arith.addf %91, %45 : vector<32x128xf32>
    %c2_104 = arith.constant 2 : index
    %c0_105 = arith.constant 0 : index
    %c0_106 = arith.constant 0 : index
    %c0_107 = arith.constant 0 : index
    %93 = vector.load %arg4[%c2_104, %c0_105, %c0_106, %c0_107] : memref<9x3x128x128xf32, #tpu.memory_space<vmem>>, vector<1x1x128x128xf32>
    %94 = vector.shape_cast %93 : vector<1x1x128x128xf32> to vector<128x128xf32>
    %c2_108 = arith.constant 2 : index
    %c1_109 = arith.constant 1 : index
    %c0_110 = arith.constant 0 : index
    %c0_111 = arith.constant 0 : index
    %95 = vector.load %arg4[%c2_108, %c1_109, %c0_110, %c0_111] : memref<9x3x128x128xf32, #tpu.memory_space<vmem>>, vector<1x1x128x128xf32>
    %96 = vector.shape_cast %95 : vector<1x1x128x128xf32> to vector<128x128xf32>
    %c2_112 = arith.constant 2 : index
    %c2_113 = arith.constant 2 : index
    %c0_114 = arith.constant 0 : index
    %c0_115 = arith.constant 0 : index
    %97 = vector.load %arg4[%c2_112, %c2_113, %c0_114, %c0_115] : memref<9x3x128x128xf32, #tpu.memory_space<vmem>>, vector<1x1x128x128xf32>
    %98 = vector.shape_cast %97 : vector<1x1x128x128xf32> to vector<128x128xf32>
    %c2_116 = arith.constant 2 : index
    %c0_117 = arith.constant 0 : index
    %c0_118 = arith.constant 0 : index
    %99 = vector.load %arg5[%c2_116, %c0_117, %c0_118] : memref<9x1x128xf32, #tpu.memory_space<vmem>>, vector<1x1x128xf32>
    %100 = vector.shape_cast %99 : vector<1x1x128xf32> to vector<1x128xf32>
    %cst_119 = arith.constant 0.000000e+00 : f32
    %101 = vector.broadcast %cst_119 : f32 to vector<1x128xf32>
    %c0_120 = arith.constant 0 : index
    %c0_121 = arith.constant 0 : index
    %102 = vector.load %arg9[%c0_120, %c0_121] : memref<34x128xf32, #tpu.memory_space<vmem>>, vector<1x128xf32>
    tpu.vector_store %arg9[%c0_120, %c0_121], %101 {strides = array<i32>} : memref<34x128xf32, #tpu.memory_space<vmem>>, vector<1x128xf32>,
    %c1_122 = arith.constant 1 : index
    %c0_123 = arith.constant 0 : index
    %103 = vector.load %arg9[%c1_122, %c0_123] : memref<34x128xf32, #tpu.memory_space<vmem>>, vector<32x128xf32>
    tpu.vector_store %arg9[%c1_122, %c0_123], %92 {strides = array<i32>} : memref<34x128xf32, #tpu.memory_space<vmem>>, vector<32x128xf32>,
    %cst_124 = arith.constant 0.000000e+00 : f32
    %104 = vector.broadcast %cst_124 : f32 to vector<1x128xf32>
    %c33_125 = arith.constant 33 : index
    %c0_126 = arith.constant 0 : index
    %105 = vector.load %arg9[%c33_125, %c0_126] : memref<34x128xf32, #tpu.memory_space<vmem>>, vector<1x128xf32>
    tpu.vector_store %arg9[%c33_125, %c0_126], %104 {strides = array<i32>} : memref<34x128xf32, #tpu.memory_space<vmem>>, vector<1x128xf32>,
    %cst_127 = arith.constant dense<0.000000e+00> : vector<32x128xf32>
    %106 = tpu.matmul %92, %96, %cst_127 {dimension_numbers = #tpu.dot_dimension_numbers<[1], [0], [0], [1], [0, 0, 1, 1], [], []>} : vector<32x128xf32>, vector<128x128xf32>, vector<32x128xf32> -> vector<32x128xf32>
    %c0_128 = arith.constant 0 : index
    %c0_129 = arith.constant 0 : index
    %107 = vector.load %arg9[%c0_128, %c0_129] : memref<34x128xf32, #tpu.memory_space<vmem>>, vector<32x128xf32>
    %cst_130 = arith.constant dense<0.000000e+00> : vector<32x128xf32>
    %108 = tpu.matmul %107, %94, %cst_130 {dimension_numbers = #tpu.dot_dimension_numbers<[1], [0], [0], [1], [0, 0, 1, 1], [], []>} : vector<32x128xf32>, vector<128x128xf32>, vector<32x128xf32> -> vector<32x128xf32>
    %109 = arith.addf %106, %108 : vector<32x128xf32>
    %c2_131 = arith.constant 2 : index
    %c0_132 = arith.constant 0 : index
    %110 = vector.load %arg9[%c2_131, %c0_132] : memref<34x128xf32, #tpu.memory_space<vmem>>, vector<32x128xf32>
    %cst_133 = arith.constant dense<0.000000e+00> : vector<32x128xf32>
    %111 = tpu.matmul %110, %98, %cst_133 {dimension_numbers = #tpu.dot_dimension_numbers<[1], [0], [0], [1], [0, 0, 1, 1], [], []>} : vector<32x128xf32>, vector<128x128xf32>, vector<32x128xf32> -> vector<32x128xf32>
    %112 = arith.addf %109, %111 : vector<32x128xf32>
    %113 = vector.broadcast %100 : vector<1x128xf32> to vector<32x128xf32>
    %114 = arith.addf %112, %113 : vector<32x128xf32>
    %115 = tpu.iota {dimensions = array<i32: 0>} : vector<16x32xi32>
    %116 = tpu.iota {dimensions = array<i32: 1>} : vector<16x32xi32>
    %c2_i32 = arith.constant 2 : i32
    %117 = vector.broadcast %c2_i32 : i32 to vector<16x32xi32>
    %118 = arith.muli %117, %115 : vector<16x32xi32>
    %119 = arith.cmpi eq, %116, %118 : vector<16x32xi32>
    %120 = arith.extui %119 : vector<16x32xi1> to vector<16x32xi32>
    %121 = arith.sitofp %120 : vector<16x32xi32> to vector<16x32xf32>
    %cst_134 = arith.constant dense<0.000000e+00> : vector<16x128xf32>
    %122 = tpu.matmul %121, %114, %cst_134 {dimension_numbers = #tpu.dot_dimension_numbers<[1], [0], [0], [1], [0, 0, 1, 1], [], []>} : vector<16x32xf32>, vector<32x128xf32>, vector<16x128xf32> -> vector<16x128xf32>
    %cst_135 = arith.constant 0.000000e+00 : f32
    %123 = vector.broadcast %cst_135 : f32 to vector<16x128xf32>
    %124 = arith.maximumf %122, %123 : vector<16x128xf32>
    %c3_136 = arith.constant 3 : index
    %c0_137 = arith.constant 0 : index
    %c0_138 = arith.constant 0 : index
    %c0_139 = arith.constant 0 : index
    %125 = vector.load %arg4[%c3_136, %c0_137, %c0_138, %c0_139] : memref<9x3x128x128xf32, #tpu.memory_space<vmem>>, vector<1x1x128x128xf32>
    %126 = vector.shape_cast %125 : vector<1x1x128x128xf32> to vector<128x128xf32>
    %c3_140 = arith.constant 3 : index
    %c1_141 = arith.constant 1 : index
    %c0_142 = arith.constant 0 : index
    %c0_143 = arith.constant 0 : index
    %127 = vector.load %arg4[%c3_140, %c1_141, %c0_142, %c0_143] : memref<9x3x128x128xf32, #tpu.memory_space<vmem>>, vector<1x1x128x128xf32>
    %128 = vector.shape_cast %127 : vector<1x1x128x128xf32> to vector<128x128xf32>
    %c3_144 = arith.constant 3 : index
    %c2_145 = arith.constant 2 : index
    %c0_146 = arith.constant 0 : index
    %c0_147 = arith.constant 0 : index
    %129 = vector.load %arg4[%c3_144, %c2_145, %c0_146, %c0_147] : memref<9x3x128x128xf32, #tpu.memory_space<vmem>>, vector<1x1x128x128xf32>
    %130 = vector.shape_cast %129 : vector<1x1x128x128xf32> to vector<128x128xf32>
    %c3_148 = arith.constant 3 : index
    %c0_149 = arith.constant 0 : index
    %c0_150 = arith.constant 0 : index
    %131 = vector.load %arg5[%c3_148, %c0_149, %c0_150] : memref<9x1x128xf32, #tpu.memory_space<vmem>>, vector<1x1x128xf32>
    %132 = vector.shape_cast %131 : vector<1x1x128xf32> to vector<1x128xf32>
    %cst_151 = arith.constant 0.000000e+00 : f32
    %133 = vector.broadcast %cst_151 : f32 to vector<1x128xf32>
    %c0_152 = arith.constant 0 : index
    %c0_153 = arith.constant 0 : index
    %134 = vector.load %arg9[%c0_152, %c0_153] : memref<34x128xf32, #tpu.memory_space<vmem>>, vector<1x128xf32>
    tpu.vector_store %arg9[%c0_152, %c0_153], %133 {strides = array<i32>} : memref<34x128xf32, #tpu.memory_space<vmem>>, vector<1x128xf32>,
    %c1_154 = arith.constant 1 : index
    %c0_155 = arith.constant 0 : index
    %135 = vector.load %arg9[%c1_154, %c0_155] : memref<34x128xf32, #tpu.memory_space<vmem>>, vector<16x128xf32>
    tpu.vector_store %arg9[%c1_154, %c0_155], %124 {strides = array<i32>} : memref<34x128xf32, #tpu.memory_space<vmem>>, vector<16x128xf32>,
    %cst_156 = arith.constant 0.000000e+00 : f32
    %136 = vector.broadcast %cst_156 : f32 to vector<1x128xf32>
    %c17 = arith.constant 17 : index
    %c0_157 = arith.constant 0 : index
    %137 = vector.load %arg9[%c17, %c0_157] : memref<34x128xf32, #tpu.memory_space<vmem>>, vector<1x128xf32>
    tpu.vector_store %arg9[%c17, %c0_157], %136 {strides = array<i32>} : memref<34x128xf32, #tpu.memory_space<vmem>>, vector<1x128xf32>,
    %cst_158 = arith.constant dense<0.000000e+00> : vector<16x128xf32>
    %138 = tpu.matmul %124, %128, %cst_158 {dimension_numbers = #tpu.dot_dimension_numbers<[1], [0], [0], [1], [0, 0, 1, 1], [], []>} : vector<16x128xf32>, vector<128x128xf32>, vector<16x128xf32> -> vector<16x128xf32>
    %c0_159 = arith.constant 0 : index
    %c0_160 = arith.constant 0 : index
    %139 = vector.load %arg9[%c0_159, %c0_160] : memref<34x128xf32, #tpu.memory_space<vmem>>, vector<16x128xf32>
    %cst_161 = arith.constant dense<0.000000e+00> : vector<16x128xf32>
    %140 = tpu.matmul %139, %126, %cst_161 {dimension_numbers = #tpu.dot_dimension_numbers<[1], [0], [0], [1], [0, 0, 1, 1], [], []>} : vector<16x128xf32>, vector<128x128xf32>, vector<16x128xf32> -> vector<16x128xf32>
    %141 = arith.addf %138, %140 : vector<16x128xf32>
    %c2_162 = arith.constant 2 : index
    %c0_163 = arith.constant 0 : index
    %142 = vector.load %arg9[%c2_162, %c0_163] : memref<34x128xf32, #tpu.memory_space<vmem>>, vector<16x128xf32>
    %cst_164 = arith.constant dense<0.000000e+00> : vector<16x128xf32>
    %143 = tpu.matmul %142, %130, %cst_164 {dimension_numbers = #tpu.dot_dimension_numbers<[1], [0], [0], [1], [0, 0, 1, 1], [], []>} : vector<16x128xf32>, vector<128x128xf32>, vector<16x128xf32> -> vector<16x128xf32>
    %144 = arith.addf %141, %143 : vector<16x128xf32>
    %145 = vector.broadcast %132 : vector<1x128xf32> to vector<16x128xf32>
    %146 = arith.addf %144, %145 : vector<16x128xf32>
    %cst_165 = arith.constant 0.000000e+00 : f32
    %147 = vector.broadcast %cst_165 : f32 to vector<16x128xf32>
    %148 = arith.maximumf %146, %147 : vector<16x128xf32>
    %c4_166 = arith.constant 4 : index
    %c0_167 = arith.constant 0 : index
    %c0_168 = arith.constant 0 : index
    %c0_169 = arith.constant 0 : index
    %149 = vector.load %arg4[%c4_166, %c0_167, %c0_168, %c0_169] : memref<9x3x128x128xf32, #tpu.memory_space<vmem>>, vector<1x1x128x128xf32>
    %150 = vector.shape_cast %149 : vector<1x1x128x128xf32> to vector<128x128xf32>
    %c4_170 = arith.constant 4 : index
    %c1_171 = arith.constant 1 : index
    %c0_172 = arith.constant 0 : index
    %c0_173 = arith.constant 0 : index
    %151 = vector.load %arg4[%c4_170, %c1_171, %c0_172, %c0_173] : memref<9x3x128x128xf32, #tpu.memory_space<vmem>>, vector<1x1x128x128xf32>
    %152 = vector.shape_cast %151 : vector<1x1x128x128xf32> to vector<128x128xf32>
    %c4_174 = arith.constant 4 : index
    %c2_175 = arith.constant 2 : index
    %c0_176 = arith.constant 0 : index
    %c0_177 = arith.constant 0 : index
    %153 = vector.load %arg4[%c4_174, %c2_175, %c0_176, %c0_177] : memref<9x3x128x128xf32, #tpu.memory_space<vmem>>, vector<1x1x128x128xf32>
    %154 = vector.shape_cast %153 : vector<1x1x128x128xf32> to vector<128x128xf32>
    %c4_178 = arith.constant 4 : index
    %c0_179 = arith.constant 0 : index
    %c0_180 = arith.constant 0 : index
    %155 = vector.load %arg5[%c4_178, %c0_179, %c0_180] : memref<9x1x128xf32, #tpu.memory_space<vmem>>, vector<1x1x128xf32>
    %156 = vector.shape_cast %155 : vector<1x1x128xf32> to vector<1x128xf32>
    %cst_181 = arith.constant 0.000000e+00 : f32
    %157 = vector.broadcast %cst_181 : f32 to vector<1x128xf32>
    %c0_182 = arith.constant 0 : index
    %c0_183 = arith.constant 0 : index
    %158 = vector.load %arg9[%c0_182, %c0_183] : memref<34x128xf32, #tpu.memory_space<vmem>>, vector<1x128xf32>
    tpu.vector_store %arg9[%c0_182, %c0_183], %157 {strides = array<i32>} : memref<34x128xf32, #tpu.memory_space<vmem>>, vector<1x128xf32>,
    %c1_184 = arith.constant 1 : index
    %c0_185 = arith.constant 0 : index
    %159 = vector.load %arg9[%c1_184, %c0_185] : memref<34x128xf32, #tpu.memory_space<vmem>>, vector<16x128xf32>
    tpu.vector_store %arg9[%c1_184, %c0_185], %148 {strides = array<i32>} : memref<34x128xf32, #tpu.memory_space<vmem>>, vector<16x128xf32>,
    %cst_186 = arith.constant 0.000000e+00 : f32
    %160 = vector.broadcast %cst_186 : f32 to vector<1x128xf32>
    %c17_187 = arith.constant 17 : index
    %c0_188 = arith.constant 0 : index
    %161 = vector.load %arg9[%c17_187, %c0_188] : memref<34x128xf32, #tpu.memory_space<vmem>>, vector<1x128xf32>
    tpu.vector_store %arg9[%c17_187, %c0_188], %160 {strides = array<i32>} : memref<34x128xf32, #tpu.memory_space<vmem>>, vector<1x128xf32>,
    %cst_189 = arith.constant dense<0.000000e+00> : vector<16x128xf32>
    %162 = tpu.matmul %148, %152, %cst_189 {dimension_numbers = #tpu.dot_dimension_numbers<[1], [0], [0], [1], [0, 0, 1, 1], [], []>} : vector<16x128xf32>, vector<128x128xf32>, vector<16x128xf32> -> vector<16x128xf32>
    %c0_190 = arith.constant 0 : index
    %c0_191 = arith.constant 0 : index
    %163 = vector.load %arg9[%c0_190, %c0_191] : memref<34x128xf32, #tpu.memory_space<vmem>>, vector<16x128xf32>
    %cst_192 = arith.constant dense<0.000000e+00> : vector<16x128xf32>
    %164 = tpu.matmul %163, %150, %cst_192 {dimension_numbers = #tpu.dot_dimension_numbers<[1], [0], [0], [1], [0, 0, 1, 1], [], []>} : vector<16x128xf32>, vector<128x128xf32>, vector<16x128xf32> -> vector<16x128xf32>
    %165 = arith.addf %162, %164 : vector<16x128xf32>
    %c2_193 = arith.constant 2 : index
    %c0_194 = arith.constant 0 : index
    %166 = vector.load %arg9[%c2_193, %c0_194] : memref<34x128xf32, #tpu.memory_space<vmem>>, vector<16x128xf32>
    %cst_195 = arith.constant dense<0.000000e+00> : vector<16x128xf32>
    %167 = tpu.matmul %166, %154, %cst_195 {dimension_numbers = #tpu.dot_dimension_numbers<[1], [0], [0], [1], [0, 0, 1, 1], [], []>} : vector<16x128xf32>, vector<128x128xf32>, vector<16x128xf32> -> vector<16x128xf32>
    %168 = arith.addf %165, %167 : vector<16x128xf32>
    %169 = vector.broadcast %156 : vector<1x128xf32> to vector<16x128xf32>
    %170 = arith.addf %168, %169 : vector<16x128xf32>
    %171 = arith.addf %170, %124 : vector<16x128xf32>
    %c5_196 = arith.constant 5 : index
    %c0_197 = arith.constant 0 : index
    %c0_198 = arith.constant 0 : index
    %c0_199 = arith.constant 0 : index
    %172 = vector.load %arg4[%c5_196, %c0_197, %c0_198, %c0_199] : memref<9x3x128x128xf32, #tpu.memory_space<vmem>>, vector<1x1x128x128xf32>
    %173 = vector.shape_cast %172 : vector<1x1x128x128xf32> to vector<128x128xf32>
    %c5_200 = arith.constant 5 : index
    %c1_201 = arith.constant 1 : index
    %c0_202 = arith.constant 0 : index
    %c0_203 = arith.constant 0 : index
    %174 = vector.load %arg4[%c5_200, %c1_201, %c0_202, %c0_203] : memref<9x3x128x128xf32, #tpu.memory_space<vmem>>, vector<1x1x128x128xf32>
    %175 = vector.shape_cast %174 : vector<1x1x128x128xf32> to vector<128x128xf32>
    %c5_204 = arith.constant 5 : index
    %c2_205 = arith.constant 2 : index
    %c0_206 = arith.constant 0 : index
    %c0_207 = arith.constant 0 : index
    %176 = vector.load %arg4[%c5_204, %c2_205, %c0_206, %c0_207] : memref<9x3x128x128xf32, #tpu.memory_space<vmem>>, vector<1x1x128x128xf32>
    %177 = vector.shape_cast %176 : vector<1x1x128x128xf32> to vector<128x128xf32>
    %c5_208 = arith.constant 5 : index
    %c0_209 = arith.constant 0 : index
    %c0_210 = arith.constant 0 : index
    %178 = vector.load %arg5[%c5_208, %c0_209, %c0_210] : memref<9x1x128xf32, #tpu.memory_space<vmem>>, vector<1x1x128xf32>
    %179 = vector.shape_cast %178 : vector<1x1x128xf32> to vector<1x128xf32>
    %cst_211 = arith.constant 0.000000e+00 : f32
    %180 = vector.broadcast %cst_211 : f32 to vector<1x128xf32>
    %c0_212 = arith.constant 0 : index
    %c0_213 = arith.constant 0 : index
    %181 = vector.load %arg9[%c0_212, %c0_213] : memref<34x128xf32, #tpu.memory_space<vmem>>, vector<1x128xf32>
    tpu.vector_store %arg9[%c0_212, %c0_213], %180 {strides = array<i32>} : memref<34x128xf32, #tpu.memory_space<vmem>>, vector<1x128xf32>,
    %c1_214 = arith.constant 1 : index
    %c0_215 = arith.constant 0 : index
    %182 = vector.load %arg9[%c1_214, %c0_215] : memref<34x128xf32, #tpu.memory_space<vmem>>, vector<16x128xf32>
    tpu.vector_store %arg9[%c1_214, %c0_215], %171 {strides = array<i32>} : memref<34x128xf32, #tpu.memory_space<vmem>>, vector<16x128xf32>,
    %cst_216 = arith.constant 0.000000e+00 : f32
    %183 = vector.broadcast %cst_216 : f32 to vector<1x128xf32>
    %c17_217 = arith.constant 17 : index
    %c0_218 = arith.constant 0 : index
    %184 = vector.load %arg9[%c17_217, %c0_218] : memref<34x128xf32, #tpu.memory_space<vmem>>, vector<1x128xf32>
    tpu.vector_store %arg9[%c17_217, %c0_218], %183 {strides = array<i32>} : memref<34x128xf32, #tpu.memory_space<vmem>>, vector<1x128xf32>,
    %cst_219 = arith.constant dense<0.000000e+00> : vector<16x128xf32>
    %185 = tpu.matmul %171, %175, %cst_219 {dimension_numbers = #tpu.dot_dimension_numbers<[1], [0], [0], [1], [0, 0, 1, 1], [], []>} : vector<16x128xf32>, vector<128x128xf32>, vector<16x128xf32> -> vector<16x128xf32>
    %c0_220 = arith.constant 0 : index
    %c0_221 = arith.constant 0 : index
    %186 = vector.load %arg9[%c0_220, %c0_221] : memref<34x128xf32, #tpu.memory_space<vmem>>, vector<16x128xf32>
    %cst_222 = arith.constant dense<0.000000e+00> : vector<16x128xf32>
    %187 = tpu.matmul %186, %173, %cst_222 {dimension_numbers = #tpu.dot_dimension_numbers<[1], [0], [0], [1], [0, 0, 1, 1], [], []>} : vector<16x128xf32>, vector<128x128xf32>, vector<16x128xf32> -> vector<16x128xf32>
    %188 = arith.addf %185, %187 : vector<16x128xf32>
    %c2_223 = arith.constant 2 : index
    %c0_224 = arith.constant 0 : index
    %189 = vector.load %arg9[%c2_223, %c0_224] : memref<34x128xf32, #tpu.memory_space<vmem>>, vector<16x128xf32>
    %cst_225 = arith.constant dense<0.000000e+00> : vector<16x128xf32>
    %190 = tpu.matmul %189, %177, %cst_225 {dimension_numbers = #tpu.dot_dimension_numbers<[1], [0], [0], [1], [0, 0, 1, 1], [], []>} : vector<16x128xf32>, vector<128x128xf32>, vector<16x128xf32> -> vector<16x128xf32>
    %191 = arith.addf %188, %190 : vector<16x128xf32>
    %192 = vector.broadcast %179 : vector<1x128xf32> to vector<16x128xf32>
    %193 = arith.addf %191, %192 : vector<16x128xf32>
    %194 = tpu.iota {dimensions = array<i32: 0>} : vector<8x16xi32>
    %195 = tpu.iota {dimensions = array<i32: 1>} : vector<8x16xi32>
    %c2_i32_226 = arith.constant 2 : i32
    %196 = vector.broadcast %c2_i32_226 : i32 to vector<8x16xi32>
    %197 = arith.muli %196, %194 : vector<8x16xi32>
    %198 = arith.cmpi eq, %195, %197 : vector<8x16xi32>
    %199 = arith.extui %198 : vector<8x16xi1> to vector<8x16xi32>
    %200 = arith.sitofp %199 : vector<8x16xi32> to vector<8x16xf32>
    %cst_227 = arith.constant dense<0.000000e+00> : vector<8x128xf32>
    %201 = tpu.matmul %200, %193, %cst_227 {dimension_numbers = #tpu.dot_dimension_numbers<[1], [0], [0], [1], [0, 0, 1, 1], [], []>} : vector<8x16xf32>, vector<16x128xf32>, vector<8x128xf32> -> vector<8x128xf32>
    %cst_228 = arith.constant 0.000000e+00 : f32
    %202 = vector.broadcast %cst_228 : f32 to vector<8x128xf32>
    %203 = arith.maximumf %201, %202 : vector<8x128xf32>
    %c6_229 = arith.constant 6 : index
    %c0_230 = arith.constant 0 : index
    %c0_231 = arith.constant 0 : index
    %c0_232 = arith.constant 0 : index
    %204 = vector.load %arg4[%c6_229, %c0_230, %c0_231, %c0_232] : memref<9x3x128x128xf32, #tpu.memory_space<vmem>>, vector<1x1x128x128xf32>
    %205 = vector.shape_cast %204 : vector<1x1x128x128xf32> to vector<128x128xf32>
    %c6_233 = arith.constant 6 : index
    %c1_234 = arith.constant 1 : index
    %c0_235 = arith.constant 0 : index
    %c0_236 = arith.constant 0 : index
    %206 = vector.load %arg4[%c6_233, %c1_234, %c0_235, %c0_236] : memref<9x3x128x128xf32, #tpu.memory_space<vmem>>, vector<1x1x128x128xf32>
    %207 = vector.shape_cast %206 : vector<1x1x128x128xf32> to vector<128x128xf32>
    %c6_237 = arith.constant 6 : index
    %c2_238 = arith.constant 2 : index
    %c0_239 = arith.constant 0 : index
    %c0_240 = arith.constant 0 : index
    %208 = vector.load %arg4[%c6_237, %c2_238, %c0_239, %c0_240] : memref<9x3x128x128xf32, #tpu.memory_space<vmem>>, vector<1x1x128x128xf32>
    %209 = vector.shape_cast %208 : vector<1x1x128x128xf32> to vector<128x128xf32>
    %c6_241 = arith.constant 6 : index
    %c0_242 = arith.constant 0 : index
    %c0_243 = arith.constant 0 : index
    %210 = vector.load %arg5[%c6_241, %c0_242, %c0_243] : memref<9x1x128xf32, #tpu.memory_space<vmem>>, vector<1x1x128xf32>
    %211 = vector.shape_cast %210 : vector<1x1x128xf32> to vector<1x128xf32>
    %cst_244 = arith.constant 0.000000e+00 : f32
    %212 = vector.broadcast %cst_244 : f32 to vector<1x128xf32>
    %c0_245 = arith.constant 0 : index
    %c0_246 = arith.constant 0 : index
    %213 = vector.load %arg9[%c0_245, %c0_246] : memref<34x128xf32, #tpu.memory_space<vmem>>, vector<1x128xf32>
    tpu.vector_store %arg9[%c0_245, %c0_246], %212 {strides = array<i32>} : memref<34x128xf32, #tpu.memory_space<vmem>>, vector<1x128xf32>,
    %c1_247 = arith.constant 1 : index
    %c0_248 = arith.constant 0 : index
    %214 = vector.load %arg9[%c1_247, %c0_248] : memref<34x128xf32, #tpu.memory_space<vmem>>, vector<8x128xf32>
    tpu.vector_store %arg9[%c1_247, %c0_248], %203 {strides = array<i32>} : memref<34x128xf32, #tpu.memory_space<vmem>>, vector<8x128xf32>,
    %cst_249 = arith.constant 0.000000e+00 : f32
    %215 = vector.broadcast %cst_249 : f32 to vector<1x128xf32>
    %c9 = arith.constant 9 : index
    %c0_250 = arith.constant 0 : index
    %216 = vector.load %arg9[%c9, %c0_250] : memref<34x128xf32, #tpu.memory_space<vmem>>, vector<1x128xf32>
    tpu.vector_store %arg9[%c9, %c0_250], %215 {strides = array<i32>} : memref<34x128xf32, #tpu.memory_space<vmem>>, vector<1x128xf32>,
    %cst_251 = arith.constant dense<0.000000e+00> : vector<8x128xf32>
    %217 = tpu.matmul %203, %207, %cst_251 {dimension_numbers = #tpu.dot_dimension_numbers<[1], [0], [0], [1], [0, 0, 1, 1], [], []>} : vector<8x128xf32>, vector<128x128xf32>, vector<8x128xf32> -> vector<8x128xf32>
    %c0_252 = arith.constant 0 : index
    %c0_253 = arith.constant 0 : index
    %218 = vector.load %arg9[%c0_252, %c0_253] : memref<34x128xf32, #tpu.memory_space<vmem>>, vector<8x128xf32>
    %cst_254 = arith.constant dense<0.000000e+00> : vector<8x128xf32>
    %219 = tpu.matmul %218, %205, %cst_254 {dimension_numbers = #tpu.dot_dimension_numbers<[1], [0], [0], [1], [0, 0, 1, 1], [], []>} : vector<8x128xf32>, vector<128x128xf32>, vector<8x128xf32> -> vector<8x128xf32>
    %220 = arith.addf %217, %219 : vector<8x128xf32>
    %c2_255 = arith.constant 2 : index
    %c0_256 = arith.constant 0 : index
    %221 = vector.load %arg9[%c2_255, %c0_256] : memref<34x128xf32, #tpu.memory_space<vmem>>, vector<8x128xf32>
    %cst_257 = arith.constant dense<0.000000e+00> : vector<8x128xf32>
    %222 = tpu.matmul %221, %209, %cst_257 {dimension_numbers = #tpu.dot_dimension_numbers<[1], [0], [0], [1], [0, 0, 1, 1], [], []>} : vector<8x128xf32>, vector<128x128xf32>, vector<8x128xf32> -> vector<8x128xf32>
    %223 = arith.addf %220, %222 : vector<8x128xf32>
    %224 = vector.broadcast %211 : vector<1x128xf32> to vector<8x128xf32>
    %225 = arith.addf %223, %224 : vector<8x128xf32>
    %cst_258 = arith.constant 0.000000e+00 : f32
    %226 = vector.broadcast %cst_258 : f32 to vector<8x128xf32>
    %227 = arith.maximumf %225, %226 : vector<8x128xf32>
    %c7 = arith.constant 7 : index
    %c0_259 = arith.constant 0 : index
    %c0_260 = arith.constant 0 : index
    %c0_261 = arith.constant 0 : index
    %228 = vector.load %arg4[%c7, %c0_259, %c0_260, %c0_261] : memref<9x3x128x128xf32, #tpu.memory_space<vmem>>, vector<1x1x128x128xf32>
    %229 = vector.shape_cast %228 : vector<1x1x128x128xf32> to vector<128x128xf32>
    %c7_262 = arith.constant 7 : index
    %c1_263 = arith.constant 1 : index
    %c0_264 = arith.constant 0 : index
    %c0_265 = arith.constant 0 : index
    %230 = vector.load %arg4[%c7_262, %c1_263, %c0_264, %c0_265] : memref<9x3x128x128xf32, #tpu.memory_space<vmem>>, vector<1x1x128x128xf32>
    %231 = vector.shape_cast %230 : vector<1x1x128x128xf32> to vector<128x128xf32>
    %c7_266 = arith.constant 7 : index
    %c2_267 = arith.constant 2 : index
    %c0_268 = arith.constant 0 : index
    %c0_269 = arith.constant 0 : index
    %232 = vector.load %arg4[%c7_266, %c2_267, %c0_268, %c0_269] : memref<9x3x128x128xf32, #tpu.memory_space<vmem>>, vector<1x1x128x128xf32>
    %233 = vector.shape_cast %232 : vector<1x1x128x128xf32> to vector<128x128xf32>
    %c7_270 = arith.constant 7 : index
    %c0_271 = arith.constant 0 : index
    %c0_272 = arith.constant 0 : index
    %234 = vector.load %arg5[%c7_270, %c0_271, %c0_272] : memref<9x1x128xf32, #tpu.memory_space<vmem>>, vector<1x1x128xf32>
    %235 = vector.shape_cast %234 : vector<1x1x128xf32> to vector<1x128xf32>
    %cst_273 = arith.constant 0.000000e+00 : f32
    %236 = vector.broadcast %cst_273 : f32 to vector<1x128xf32>
    %c0_274 = arith.constant 0 : index
    %c0_275 = arith.constant 0 : index
    %237 = vector.load %arg9[%c0_274, %c0_275] : memref<34x128xf32, #tpu.memory_space<vmem>>, vector<1x128xf32>
    tpu.vector_store %arg9[%c0_274, %c0_275], %236 {strides = array<i32>} : memref<34x128xf32, #tpu.memory_space<vmem>>, vector<1x128xf32>,
    %c1_276 = arith.constant 1 : index
    %c0_277 = arith.constant 0 : index
    %238 = vector.load %arg9[%c1_276, %c0_277] : memref<34x128xf32, #tpu.memory_space<vmem>>, vector<8x128xf32>
    tpu.vector_store %arg9[%c1_276, %c0_277], %227 {strides = array<i32>} : memref<34x128xf32, #tpu.memory_space<vmem>>, vector<8x128xf32>,
    %cst_278 = arith.constant 0.000000e+00 : f32
    %239 = vector.broadcast %cst_278 : f32 to vector<1x128xf32>
    %c9_279 = arith.constant 9 : index
    %c0_280 = arith.constant 0 : index
    %240 = vector.load %arg9[%c9_279, %c0_280] : memref<34x128xf32, #tpu.memory_space<vmem>>, vector<1x128xf32>
    tpu.vector_store %arg9[%c9_279, %c0_280], %239 {strides = array<i32>} : memref<34x128xf32, #tpu.memory_space<vmem>>, vector<1x128xf32>,
    %cst_281 = arith.constant dense<0.000000e+00> : vector<8x128xf32>
    %241 = tpu.matmul %227, %231, %cst_281 {dimension_numbers = #tpu.dot_dimension_numbers<[1], [0], [0], [1], [0, 0, 1, 1], [], []>} : vector<8x128xf32>, vector<128x128xf32>, vector<8x128xf32> -> vector<8x128xf32>
    %c0_282 = arith.constant 0 : index
    %c0_283 = arith.constant 0 : index
    %242 = vector.load %arg9[%c0_282, %c0_283] : memref<34x128xf32, #tpu.memory_space<vmem>>, vector<8x128xf32>
    %cst_284 = arith.constant dense<0.000000e+00> : vector<8x128xf32>
    %243 = tpu.matmul %242, %229, %cst_284 {dimension_numbers = #tpu.dot_dimension_numbers<[1], [0], [0], [1], [0, 0, 1, 1], [], []>} : vector<8x128xf32>, vector<128x128xf32>, vector<8x128xf32> -> vector<8x128xf32>
    %244 = arith.addf %241, %243 : vector<8x128xf32>
    %c2_285 = arith.constant 2 : index
    %c0_286 = arith.constant 0 : index
    %245 = vector.load %arg9[%c2_285, %c0_286] : memref<34x128xf32, #tpu.memory_space<vmem>>, vector<8x128xf32>
    %cst_287 = arith.constant dense<0.000000e+00> : vector<8x128xf32>
    %246 = tpu.matmul %245, %233, %cst_287 {dimension_numbers = #tpu.dot_dimension_numbers<[1], [0], [0], [1], [0, 0, 1, 1], [], []>} : vector<8x128xf32>, vector<128x128xf32>, vector<8x128xf32> -> vector<8x128xf32>
    %247 = arith.addf %244, %246 : vector<8x128xf32>
    %248 = vector.broadcast %235 : vector<1x128xf32> to vector<8x128xf32>
    %249 = arith.addf %247, %248 : vector<8x128xf32>
    %250 = arith.addf %249, %203 : vector<8x128xf32>
    %c8 = arith.constant 8 : index
    %c0_288 = arith.constant 0 : index
    %c0_289 = arith.constant 0 : index
    %c0_290 = arith.constant 0 : index
    %251 = vector.load %arg4[%c8, %c0_288, %c0_289, %c0_290] : memref<9x3x128x128xf32, #tpu.memory_space<vmem>>, vector<1x1x128x128xf32>
    %252 = vector.shape_cast %251 : vector<1x1x128x128xf32> to vector<128x128xf32>
    %c8_291 = arith.constant 8 : index
    %c1_292 = arith.constant 1 : index
    %c0_293 = arith.constant 0 : index
    %c0_294 = arith.constant 0 : index
    %253 = vector.load %arg4[%c8_291, %c1_292, %c0_293, %c0_294] : memref<9x3x128x128xf32, #tpu.memory_space<vmem>>, vector<1x1x128x128xf32>
    %254 = vector.shape_cast %253 : vector<1x1x128x128xf32> to vector<128x128xf32>
    %c8_295 = arith.constant 8 : index
    %c2_296 = arith.constant 2 : index
    %c0_297 = arith.constant 0 : index
    %c0_298 = arith.constant 0 : index
    %255 = vector.load %arg4[%c8_295, %c2_296, %c0_297, %c0_298] : memref<9x3x128x128xf32, #tpu.memory_space<vmem>>, vector<1x1x128x128xf32>
    %256 = vector.shape_cast %255 : vector<1x1x128x128xf32> to vector<128x128xf32>
    %c8_299 = arith.constant 8 : index
    %c0_300 = arith.constant 0 : index
    %c0_301 = arith.constant 0 : index
    %257 = vector.load %arg5[%c8_299, %c0_300, %c0_301] : memref<9x1x128xf32, #tpu.memory_space<vmem>>, vector<1x1x128xf32>
    %258 = vector.shape_cast %257 : vector<1x1x128xf32> to vector<1x128xf32>
    %cst_302 = arith.constant 0.000000e+00 : f32
    %259 = vector.broadcast %cst_302 : f32 to vector<1x128xf32>
    %c0_303 = arith.constant 0 : index
    %c0_304 = arith.constant 0 : index
    %260 = vector.load %arg9[%c0_303, %c0_304] : memref<34x128xf32, #tpu.memory_space<vmem>>, vector<1x128xf32>
    tpu.vector_store %arg9[%c0_303, %c0_304], %259 {strides = array<i32>} : memref<34x128xf32, #tpu.memory_space<vmem>>, vector<1x128xf32>,
    %c1_305 = arith.constant 1 : index
    %c0_306 = arith.constant 0 : index
    %261 = vector.load %arg9[%c1_305, %c0_306] : memref<34x128xf32, #tpu.memory_space<vmem>>, vector<8x128xf32>
    tpu.vector_store %arg9[%c1_305, %c0_306], %250 {strides = array<i32>} : memref<34x128xf32, #tpu.memory_space<vmem>>, vector<8x128xf32>,
    %cst_307 = arith.constant 0.000000e+00 : f32
    %262 = vector.broadcast %cst_307 : f32 to vector<1x128xf32>
    %c9_308 = arith.constant 9 : index
    %c0_309 = arith.constant 0 : index
    %263 = vector.load %arg9[%c9_308, %c0_309] : memref<34x128xf32, #tpu.memory_space<vmem>>, vector<1x128xf32>
    tpu.vector_store %arg9[%c9_308, %c0_309], %262 {strides = array<i32>} : memref<34x128xf32, #tpu.memory_space<vmem>>, vector<1x128xf32>,
    %cst_310 = arith.constant dense<0.000000e+00> : vector<8x128xf32>
    %264 = tpu.matmul %250, %254, %cst_310 {dimension_numbers = #tpu.dot_dimension_numbers<[1], [0], [0], [1], [0, 0, 1, 1], [], []>} : vector<8x128xf32>, vector<128x128xf32>, vector<8x128xf32> -> vector<8x128xf32>
    %c0_311 = arith.constant 0 : index
    %c0_312 = arith.constant 0 : index
    %265 = vector.load %arg9[%c0_311, %c0_312] : memref<34x128xf32, #tpu.memory_space<vmem>>, vector<8x128xf32>
    %cst_313 = arith.constant dense<0.000000e+00> : vector<8x128xf32>
    %266 = tpu.matmul %265, %252, %cst_313 {dimension_numbers = #tpu.dot_dimension_numbers<[1], [0], [0], [1], [0, 0, 1, 1], [], []>} : vector<8x128xf32>, vector<128x128xf32>, vector<8x128xf32> -> vector<8x128xf32>
    %267 = arith.addf %264, %266 : vector<8x128xf32>
    %c2_314 = arith.constant 2 : index
    %c0_315 = arith.constant 0 : index
    %268 = vector.load %arg9[%c2_314, %c0_315] : memref<34x128xf32, #tpu.memory_space<vmem>>, vector<8x128xf32>
    %cst_316 = arith.constant dense<0.000000e+00> : vector<8x128xf32>
    %269 = tpu.matmul %268, %256, %cst_316 {dimension_numbers = #tpu.dot_dimension_numbers<[1], [0], [0], [1], [0, 0, 1, 1], [], []>} : vector<8x128xf32>, vector<128x128xf32>, vector<8x128xf32> -> vector<8x128xf32>
    %270 = arith.addf %267, %269 : vector<8x128xf32>
    %271 = vector.broadcast %258 : vector<1x128xf32> to vector<8x128xf32>
    %272 = arith.addf %270, %271 : vector<8x128xf32>
    %273 = tpu.iota {dimensions = array<i32: 0>} : vector<4x8xi32>
    %274 = tpu.iota {dimensions = array<i32: 1>} : vector<4x8xi32>
    %c2_i32_317 = arith.constant 2 : i32
    %275 = vector.broadcast %c2_i32_317 : i32 to vector<4x8xi32>
    %276 = arith.muli %275, %273 : vector<4x8xi32>
    %277 = arith.cmpi eq, %274, %276 : vector<4x8xi32>
    %278 = arith.extui %277 : vector<4x8xi1> to vector<4x8xi32>
    %279 = arith.sitofp %278 : vector<4x8xi32> to vector<4x8xf32>
    %cst_318 = arith.constant dense<0.000000e+00> : vector<4x128xf32>
    %280 = tpu.matmul %279, %272, %cst_318 {dimension_numbers = #tpu.dot_dimension_numbers<[1], [0], [0], [1], [0, 0, 1, 1], [], []>} : vector<4x8xf32>, vector<8x128xf32>, vector<4x128xf32> -> vector<4x128xf32>
    %cst_319 = arith.constant 0.000000e+00 : f32
    %281 = vector.broadcast %cst_319 : f32 to vector<4x128xf32>
    %282 = arith.maximumf %280, %281 : vector<4x128xf32>
    %c0_320 = arith.constant 0 : index
    %c0_321 = arith.constant 0 : index
    %c0_322 = arith.constant 0 : index
    %283 = vector.load %arg6[%c0_320, %c0_321, %c0_322] : memref<3x128x64xf32, #tpu.memory_space<vmem>>, vector<1x128x64xf32>
    %284 = vector.shape_cast %283 : vector<1x128x64xf32> to vector<128x64xf32>
    %c1_323 = arith.constant 1 : index
    %c0_324 = arith.constant 0 : index
    %c0_325 = arith.constant 0 : index
    %285 = vector.load %arg6[%c1_323, %c0_324, %c0_325] : memref<3x128x64xf32, #tpu.memory_space<vmem>>, vector<1x128x64xf32>
    %286 = vector.shape_cast %285 : vector<1x128x64xf32> to vector<128x64xf32>
    %c2_326 = arith.constant 2 : index
    %c0_327 = arith.constant 0 : index
    %c0_328 = arith.constant 0 : index
    %287 = vector.load %arg6[%c2_326, %c0_327, %c0_328] : memref<3x128x64xf32, #tpu.memory_space<vmem>>, vector<1x128x64xf32>
    %288 = vector.shape_cast %287 : vector<1x128x64xf32> to vector<128x64xf32>
    %c0_329 = arith.constant 0 : index
    %c0_330 = arith.constant 0 : index
    %289 = vector.load %arg7[%c0_329, %c0_330] : memref<1x64xf32, #tpu.memory_space<vmem>>, vector<1x64xf32>
    %cst_331 = arith.constant 0.000000e+00 : f32
    %290 = vector.broadcast %cst_331 : f32 to vector<1x128xf32>
    %c0_332 = arith.constant 0 : index
    %c0_333 = arith.constant 0 : index
    %291 = vector.load %arg9[%c0_332, %c0_333] : memref<34x128xf32, #tpu.memory_space<vmem>>, vector<1x128xf32>
    tpu.vector_store %arg9[%c0_332, %c0_333], %290 {strides = array<i32>} : memref<34x128xf32, #tpu.memory_space<vmem>>, vector<1x128xf32>,
    %c1_334 = arith.constant 1 : index
    %c0_335 = arith.constant 0 : index
    %292 = vector.load %arg9[%c1_334, %c0_335] : memref<34x128xf32, #tpu.memory_space<vmem>>, vector<4x128xf32>
    tpu.vector_store %arg9[%c1_334, %c0_335], %282 {strides = array<i32>} : memref<34x128xf32, #tpu.memory_space<vmem>>, vector<4x128xf32>,
    %cst_336 = arith.constant 0.000000e+00 : f32
    %293 = vector.broadcast %cst_336 : f32 to vector<1x128xf32>
    %c5_337 = arith.constant 5 : index
    %c0_338 = arith.constant 0 : index
    %294 = vector.load %arg9[%c5_337, %c0_338] : memref<34x128xf32, #tpu.memory_space<vmem>>, vector<1x128xf32>
    tpu.vector_store %arg9[%c5_337, %c0_338], %293 {strides = array<i32>} : memref<34x128xf32, #tpu.memory_space<vmem>>, vector<1x128xf32>,
    %cst_339 = arith.constant dense<0.000000e+00> : vector<4x64xf32>
    %295 = tpu.matmul %282, %286, %cst_339 {dimension_numbers = #tpu.dot_dimension_numbers<[1], [0], [0], [1], [0, 0, 1, 1], [], []>} : vector<4x128xf32>, vector<128x64xf32>, vector<4x64xf32> -> vector<4x64xf32>
    %c0_340 = arith.constant 0 : index
    %c0_341 = arith.constant 0 : index
    %296 = vector.load %arg9[%c0_340, %c0_341] : memref<34x128xf32, #tpu.memory_space<vmem>>, vector<4x128xf32>
    %cst_342 = arith.constant dense<0.000000e+00> : vector<4x64xf32>
    %297 = tpu.matmul %296, %284, %cst_342 {dimension_numbers = #tpu.dot_dimension_numbers<[1], [0], [0], [1], [0, 0, 1, 1], [], []>} : vector<4x128xf32>, vector<128x64xf32>, vector<4x64xf32> -> vector<4x64xf32>
    %298 = arith.addf %295, %297 : vector<4x64xf32>
    %c2_343 = arith.constant 2 : index
    %c0_344 = arith.constant 0 : index
    %299 = vector.load %arg9[%c2_343, %c0_344] : memref<34x128xf32, #tpu.memory_space<vmem>>, vector<4x128xf32>
    %cst_345 = arith.constant dense<0.000000e+00> : vector<4x64xf32>
    %300 = tpu.matmul %299, %288, %cst_345 {dimension_numbers = #tpu.dot_dimension_numbers<[1], [0], [0], [1], [0, 0, 1, 1], [], []>} : vector<4x128xf32>, vector<128x64xf32>, vector<4x64xf32> -> vector<4x64xf32>
    %301 = arith.addf %298, %300 : vector<4x64xf32>
    %302 = vector.broadcast %289 : vector<1x64xf32> to vector<4x64xf32>
    %303 = arith.addf %301, %302 : vector<4x64xf32>
    %cst_346 = arith.constant 0.000000e+00 : f32
    %304 = vector.broadcast %cst_346 : f32 to vector<4x64xf32>
    %305 = arith.maximumf %303, %304 : vector<4x64xf32>
    %cst_347 = arith.constant dense<0.000000e+00> : vector<64xf32>
    %306 = vector.multi_reduction <add>, %305, %cst_347 [0] : vector<4x64xf32> to vector<64xf32>
    %307 = vector.shape_cast %306 : vector<64xf32> to vector<1x64xf32>
    %cst_348 = arith.constant 2.500000e-01 : f32
    %308 = vector.broadcast %cst_348 : f32 to vector<1x64xf32>
    %309 = arith.mulf %307, %308 : vector<1x64xf32>
    %c0_349 = arith.constant 0 : index
    %c0_350 = arith.constant 0 : index
    %c0_351 = arith.constant 0 : index
    %310 = vector.load %arg8[%c0_349, %c0_350, %c0_351] : memref<1x1x64xf32, #tpu.memory_space<vmem>>, vector<1x1x64xf32>
    %311 = vector.shape_cast %310 : vector<1x1x64xf32> to vector<1x64xf32>
    %312 = vector.shape_cast %309 : vector<1x64xf32> to vector<1x1x64xf32>
    tpu.vector_store %arg8[%c0_349, %c0_350, %c0_351], %312 {strides = array<i32>} : memref<1x1x64xf32, #tpu.memory_space<vmem>>, vector<1x1x64xf32>,
    return
  }
  func.func @transform_0(%arg0: i32) -> (i32, i32, i32) {
    %c0_i32 = arith.constant 0 : i32
    %c0_i32_0 = arith.constant 0 : i32
    %c0_i32_1 = arith.constant 0 : i32
    return %arg0, %c0_i32, %c0_i32_0 : i32, i32, i32
  }
  func.func @transform_1(%arg0: i32) -> (i32, i32, i32) {
    %c0_i32 = arith.constant 0 : i32
    %c0_i32_0 = arith.constant 0 : i32
    %c0_i32_1 = arith.constant 0 : i32
    %c0_i32_2 = arith.constant 0 : i32
    return %c0_i32, %c0_i32_0, %c0_i32_1 : i32, i32, i32
  }
  func.func @transform_2(%arg0: i32) -> (i32, i32) {
    %c0_i32 = arith.constant 0 : i32
    %c0_i32_0 = arith.constant 0 : i32
    %c0_i32_1 = arith.constant 0 : i32
    return %c0_i32, %c0_i32_0 : i32, i32
  }
  func.func @transform_3(%arg0: i32) -> (i32, i32, i32, i32) {
    %c0_i32 = arith.constant 0 : i32
    %c0_i32_0 = arith.constant 0 : i32
    %c0_i32_1 = arith.constant 0 : i32
    %c0_i32_2 = arith.constant 0 : i32
    %c0_i32_3 = arith.constant 0 : i32
    return %c0_i32, %c0_i32_0, %c0_i32_1, %c0_i32_2 : i32, i32, i32, i32
  }
  func.func @transform_4(%arg0: i32) -> (i32, i32, i32) {
    %c0_i32 = arith.constant 0 : i32
    %c0_i32_0 = arith.constant 0 : i32
    %c0_i32_1 = arith.constant 0 : i32
    %c0_i32_2 = arith.constant 0 : i32
    return %c0_i32, %c0_i32_0, %c0_i32_1 : i32, i32, i32
  }
  func.func @transform_5(%arg0: i32) -> (i32, i32, i32) {
    %c0_i32 = arith.constant 0 : i32
    %c0_i32_0 = arith.constant 0 : i32
    %c0_i32_1 = arith.constant 0 : i32
    %c0_i32_2 = arith.constant 0 : i32
    return %c0_i32, %c0_i32_0, %c0_i32_1 : i32, i32, i32
  }
  func.func @transform_6(%arg0: i32) -> (i32, i32) {
    %c0_i32 = arith.constant 0 : i32
    %c0_i32_0 = arith.constant 0 : i32
    %c0_i32_1 = arith.constant 0 : i32
    return %c0_i32, %c0_i32_0 : i32, i32
  }
  func.func @transform_7(%arg0: i32) -> (i32, i32, i32) {
    %c0_i32 = arith.constant 0 : i32
    %c0_i32_0 = arith.constant 0 : i32
    %c0_i32_1 = arith.constant 0 : i32
    return %arg0, %c0_i32, %c0_i32_0 : i32, i32, i32
  }
}

</mosaic_0001>

<bundles_post_ra>
// kernel: tpu_custom_call.1
= control target key start
LH: loop header
LB: loop body
LE: loop exit
PB: predicated region body
PF: predicated region fallthrough
CT: control target
= control target key end

     0   :  { %s8359_s0 = inlined_call_operand.vmem [shape: f32[2,38,16], index: 0, kind: input, shape index: {}]   ;;  %s8360_s1 = inlined_call_operand.hbm [shape: f32[7,16,128], index: 1, kind: input, shape index: {}]   ;;  %s8361_s2 = inlined_call_operand.hbm [shape: f32[1,128], index: 2, kind: input, shape index: {}]   ;;  %s8362_s3 = inlined_call_operand.hbm [shape: f32[9,3,128,128], index: 3, kind: input, shape index: {}]   ;;  %s8363_s4 = inlined_call_operand.hbm [shape: f32[9,1,128], index: 4, kind: input, shape index: {}]   ;;  %s8364_s5 = inlined_call_operand.vmem [shape: f32[3,128,64], index: 5, kind: input, shape index: {}]   ;;  %s8365_s6 = inlined_call_operand.hbm [shape: f32[1,64], index: 6, kind: input, shape index: {}]   ;;  %s8366_s7 = inlined_call_operand.hbm [shape: f32[2,1,64], index: 7, kind: output, shape index: {}]  }
   0x1   :  { %8373 = sst [smem:[#allocation20_spill]] %s8361_s2 }
   0x2   :  { %8374 = sst [smem:[#allocation21_spill]] %s8363_s4 }
   0x3   :  { %12 = vsyncpa [#allocation4], 0 }
   0x4   :  { %13 = vsyncpa [#allocation7], 0 }
   0x5   :  { %14 = vsyncpa [#allocation10], 0 }
   0x6   :  { %15 = vsyncpa [#allocation5], 0 }
   0x7   :  { %17 = vsyncpa [#allocation5 + $0x1], 0  ;;  %s7686_s24 = smov 0   ;;  %s7688_s25 = smov 0  }
   0x8   :  { %s7690_s26 = smov 0   ;;  %s7692_s27 = smov 0  }
   0x9 LB: > { %8375 = sst [smem:[#allocation17_spill]] %s7627_s26  ;;  %s7707_s28 = sadd.s32 4294967295, %s7631_s27   ;;  %s7631_s27 = sphi %s7692_s27, %s8396_s27   ;;  %s7627_s26 = sphi %s7690_s26, %s8398_s26   ;;  %s7623_s25 = sphi %s7688_s25, %s8400_s25   ;;  %s7619_s24 = sphi %s7686_s24, %s8399_s24  }
   0xa   : > { %s4492_s29 = sadd.s32 4294967294, %s7631_s27   ;;  %s7711_s30 = sadd.s32 1, %s7631_s27  }
   0xb   : > { %8376 = sst [smem:[#allocation18_spill]] %s7711_s30  ;;  %s182_s8 = sadd.s32 1, %s7627_s26 }
   0xc   : > { %s179_s9 = ssub.s32 %s7631_s27, %s7711_s30  ;;  %p192_p0 = scmp.ne.s32.totalorder %s7627_s26, %s7623_s25 }
   0xd   : > { %p180_p1 = scmp.eq.s32.totalorder %s179_s9, 0  ;;  %p193_p2 = scmp.eq.s32.totalorder %s7707_s28, 1 }
   0xe   : > { %p198_p3 = scmp.ne.s32.totalorder %s7623_s25, %s7619_s24  ;;  %p199_p4 = scmp.eq.s32.totalorder %s4492_s29, 1 }
   0xf   : > { %s7722_s10 = scalar_select %p180_p1, %s7627_s26, %s182_s8  }
  0x10   : > { %p7724_p5 = por %p193_p2, %p192_p0  ;;  %p7728_p6 = por %p199_p4, %p198_p3 }
  0x11   : > { %8377 = sst [smem:[#allocation19_spill]] %s7722_s10  ;;  %p4493_p7 = scmp.ge.s32.totalorder %s7631_s27, 1 }
  0x12   : > { %s8378_s11 = scalar_select %p7724_p5, 1, 0 }
  0x13   : > { %s8379_s12 = scalar_select %p7728_p6, 1, 0 }
  0x14   : > { %p206_p8 = scmp.lt.s32.totalorder %s7631_s27, 3  ;;  %p8367_p9 = scmp.eq.s32.totalorder %s7707_s28, 0 }
  0x15   : > { %s7633_s14 = smov [#allocation6]   ;;  %s7634_s16 = smov [#allocation9]  }
  0x16   : > { %p7735_p10 = pnand %p4493_p7, %p206_p8  ;;  %s232_s15 = sshll.u32 %s7633_s14, 4  ;;  %s233_s15 = int_to_ptr.vmem [resolvable:$true] %s232_s15 }
  0x17   : > { %s255_s17 = sshll.u32 %s7634_s16, 4  ;;  %s7635_s19 = smov [#allocation3]   ;;  %s7747_s17 = int_to_ptr.vmem [resolvable:$true] %s255_s17 }
  0x18   : > { %s8380_s13 = scalar_select %p7735_p10, 1, 0 }
  0x19   : > { %p7342_p11 = pneg %p7735_p10  ;;  %s7749_s20 = sshll.u32 %s7635_s19, 4  ;;  %s219_s20 = int_to_ptr.vmem [resolvable:$true] %s7749_s20 }
  0x1a   : > { %s8382_s2 = sld [smem:[#allocation20_spill]] }
  0x1b   : > { %p7743_p12 = pnand %p8367_p9, %p7342_p11 }
  0x1d   : > { %p7759_p0 = pneg %p7743_p12 }
  0x20   : > { %s7417_s23 = scalar_lea.hbm %s8382_s2, 16 }
  0x21   : > { %p7418_p13 = scmp.ne.s32.totalorder %s8382_s2, %s7417_s23  ;;  %p7424_p3 = scmp.lt.u32.totalorder %s7417_s23, %s8382_s2 }
  0x23   : > { %p7420_p1 = pnand %p7759_p0, %p7418_p13 }
  0x25   : > { %p7421_p2 = pneg %p7420_p1 }
  0x27   : > { %p7426_p4 = pnand %p7424_p3, %p7421_p2 }
  0x29   : > { %7429 = shalt.err (!%p7426_p4)
}
  0x2a   : > { %s7430_s19 = scalar_lea.vmem %s233_s15, 16  ;;  %s7437_s21 = scalar_lea.vmem %s233_s15, 32 }
  0x2b   : > { %p7431_p7 = scmp.ne.s32.totalorder %s233_s15, %s7430_s19  ;;  %p7438_p9 = scmp.lt.s32.totalorder %s233_s15, %s233_s15 }
  0x2c   : > { %p7439_p6 = scmp.lt.s32.totalorder %s7437_s21, %s7430_s19 }
  0x2d   : > { %p7433_p8 = pnand %p7431_p7, %p7759_p0 }
  0x2e   : > { %p7440_p5 = por %p7439_p6, %p7438_p9 }
  0x2f   : > { %p7434_p11 = pneg %p7433_p8 }
  0x31   : > { %p7441_p10 = pnand %p7440_p5, %p7434_p11 }
  0x33   : > { %7444 = shalt.err (!%p7441_p10)
}
  0x34   : > { %7348 = dma.hbm_to_vmem [thread:$0]  (!%p7743_p12), %s8382_s2, 16, %s233_s15, [#allocation7]  }
  0x35   : > { %s8384_s4 = sld [smem:[#allocation21_spill]] }
  0x3b   : > { %s7445_s14 = scalar_lea.hbm %s8384_s4, 144 }
  0x3c   : > { %p7446_p13 = scmp.ne.s32.totalorder %s8384_s4, %s7445_s14  ;;  %p7452_p5 = scmp.lt.u32.totalorder %s7445_s14, %s8384_s4 }
  0x3e   : > { %p7448_p1 = pnand %p7446_p13, %p7759_p0 }
  0x40   : > { %p7449_p6 = pneg %p7448_p1 }
  0x42   : > { %p7454_p9 = pnand %p7452_p5, %p7449_p6 }
  0x44   : > { %7457 = shalt.err (!%p7454_p9)
}
  0x45   : > { %s7458_s15 = scalar_lea.vmem %s7747_s17, 144  ;;  %s7465_s10 = scalar_lea.vmem %s7747_s17, 160 }
  0x46   : > { %p7459_p10 = scmp.ne.s32.totalorder %s7747_s17, %s7458_s15  ;;  %p7466_p4 = scmp.lt.s32.totalorder %s7747_s17, %s7747_s17 }
  0x47   : > { %p7467_p7 = scmp.lt.s32.totalorder %s7465_s10, %s7458_s15 }
  0x48   : > { %p7461_p2 = pnand %p7459_p10, %p7759_p0 }
  0x49   : > { %p7468_p8 = por %p7467_p7, %p7466_p4 }
  0x4a   : > { %p7462_p3 = pneg %p7461_p2 }
  0x4c   : > { %p7469_p11 = pnand %p7468_p8, %p7462_p3 }
  0x4e   : > { %7472 = shalt.err (!%p7469_p11)
}
  0x4f   : > { %s7636_s22 = smov 16   ;;  %s7637_s29 = smov 1  }
  0x50   : > { %7354 = dma.hbm_to_vmem [thread:$0]  (!%p7743_p12), %s8384_s4, 144, %s7747_s17, [#allocation10], %s7636_s22, %s7636_s22, %s7637_s29  }
  0x51   : > { %s7473_s19 = scalar_lea.hbm %s8360_s1, 1792 }
  0x52   : > { %p7474_p13 = scmp.ne.s32.totalorder %s8360_s1, %s7473_s19  ;;  %p7480_p5 = scmp.lt.u32.totalorder %s7473_s19, %s8360_s1 }
  0x54   : > { %p7476_p1 = pnand %p7474_p13, %p7759_p0 }
  0x56   : > { %p7477_p6 = pneg %p7476_p1 }
  0x58   : > { %p7482_p9 = pnand %p7480_p5, %p7477_p6 }
  0x5a   : > { %7485 = shalt.err (!%p7482_p9)
}
  0x5b   : > { %s7486_s23 = scalar_lea.vmem %s219_s20, 1792  ;;  %p7494_p4 = scmp.lt.s32.totalorder %s219_s20, %s219_s20 }
  0x5c   : > { %p7487_p10 = scmp.ne.s32.totalorder %s219_s20, %s7486_s23  ;;  %p7495_p7 = scmp.lt.s32.totalorder %s7486_s23, %s7486_s23 }
  0x5e   : > { %p7489_p2 = pnand %p7487_p10, %p7759_p0  ;;  %p7496_p8 = por %p7495_p7, %p7494_p4 }
  0x60   : > { %p7490_p3 = pneg %p7489_p2 }
  0x62   : > { %p7497_p11 = pnand %p7496_p8, %p7490_p3 }
  0x64   : > { %7500 = shalt.err (!%p7497_p11)
}
  0x65   : > { %s7638_s17 = smov 128   ;;  %s7639_s22 = smov 8  }
  0x66   : > { %7345 = dma.hbm_to_vmem [thread:$0]  (!%p7743_p12), %s8360_s1, 1792, %s219_s20, [#allocation4], %s7638_s17, %s7638_s17, %s7639_s22  }
  0x67   : > { %s7640_s8 = smov [#allocation8]   ;;  %s7641_s16 = smov [#allocation11]  }
  0x68   : > { %s242_s14 = sshll.u32 %s7640_s8, 4  ;;  %s272_s19 = sshll.u32 %s7641_s16, 4  ;;  %s243_s14 = int_to_ptr.vmem [resolvable:$true] %s242_s14  ;;  %s273_s19 = int_to_ptr.vmem [resolvable:$true] %s272_s19 }
  0x69   : > { %s7501_s10 = scalar_lea.hbm %s8362_s3, 55296 }
  0x6a   : > { %p7502_p13 = scmp.ne.s32.totalorder %s8362_s3, %s7501_s10  ;;  %p7508_p5 = scmp.lt.u32.totalorder %s7501_s10, %s8362_s3 }
  0x6c   : > { %p7504_p1 = pnand %p7502_p13, %p7759_p0 }
  0x6e   : > { %p7505_p6 = pneg %p7504_p1 }
  0x70   : > { %p7510_p9 = pnand %p7508_p5, %p7505_p6 }
  0x72   : > { %7513 = shalt.err (!%p7510_p9)
}
  0x73   : > { %s7514_s20 = scalar_lea.vmem %s243_s14, 55296  ;;  %p7522_p4 = scmp.lt.s32.totalorder %s243_s14, %s243_s14 }
  0x74   : > { %p7515_p10 = scmp.ne.s32.totalorder %s243_s14, %s7514_s20  ;;  %p7523_p7 = scmp.lt.s32.totalorder %s7514_s20, %s7514_s20 }
  0x76   : > { %p7517_p2 = pnand %p7515_p10, %p7759_p0  ;;  %p7524_p8 = por %p7523_p7, %p7522_p4 }
  0x78   : > { %p7518_p3 = pneg %p7517_p2 }
  0x7a   : > { %p7525_p11 = pnand %p7524_p8, %p7518_p3 }
  0x7c   : > { %7528 = shalt.err (!%p7525_p11)
}
  0x7d   : > { %7351 = dma.hbm_to_vmem [thread:$0]  (!%p7743_p12), %s8362_s3, 55296, %s243_s14, [#allocation7], %s7638_s17, %s7638_s17, %s7639_s22  }
  0x7e   : > { %s7529_s29 = scalar_lea.hbm %s8365_s6, 16 }
  0x7f   : > { %p7530_p13 = scmp.ne.s32.totalorder %s8365_s6, %s7529_s29  ;;  %p7536_p5 = scmp.lt.u32.totalorder %s7529_s29, %s8365_s6 }
  0x81   : > { %p7532_p1 = pnand %p7530_p13, %p7759_p0 }
  0x83   : > { %p7533_p6 = pneg %p7532_p1 }
  0x85   : > { %p7538_p9 = pnand %p7536_p5, %p7533_p6 }
  0x87   : > { %7541 = shalt.err (!%p7538_p9)
}
  0x88   : > { %s7542_s10 = scalar_lea.vmem %s273_s19, 16  ;;  %s7549_s17 = scalar_lea.vmem %s273_s19, 32 }
  0x89   : > { %p7543_p10 = scmp.ne.s32.totalorder %s273_s19, %s7542_s10  ;;  %p7550_p4 = scmp.lt.s32.totalorder %s273_s19, %s273_s19 }
  0x8a   : > { %p7551_p7 = scmp.lt.s32.totalorder %s7549_s17, %s7542_s10 }
  0x8b   : > { %p7545_p2 = pnand %p7543_p10, %p7759_p0 }
  0x8c   : > { %p7552_p8 = por %p7551_p7, %p7550_p4 }
  0x8d   : > { %p7546_p3 = pneg %p7545_p2 }
  0x8f   : > { %p7553_p11 = pnand %p7552_p8, %p7546_p3 }
  0x91   : > { %7556 = shalt.err (!%p7553_p11)
}
  0x92   : > { %7357 = dma.hbm_to_vmem [thread:$0]  (!%p7743_p12), %s8365_s6, 16, %s273_s19, [#allocation10]  }
  0x93   : > { %p8385_p13 = scmp.ne.s32.totalorder %s8380_s13, 0 }
  0x94   : > { %p8386_p1 = scmp.eq.s32.totalorder (!%p8385_p13), %s7707_s28, 0 }
  0x95   : > { %293 = sbr.rel (%p8385_p13) target bundleno = 3894 (0xf36), region = 48 }
  0x9c   : > { %7602 = dma.done.wait (%p8386_p1), [#allocation4], 1792   ;;  %p8387_p0 = pmov %p8386_p1 }
  0x9e   : > { %7604 = vsyncadd (%p8387_p0), [#allocation4], 4294965504  ;;  %p8388_p6 = pmov %p8387_p0 }
  0x9f   : > { %p8389_p5 = pmov %p8387_p0 }
  0xa0   : > { %7606 = dma.done.wait (%p8388_p6), [#allocation7], 55312  }
  0xa1   : > { %7608 = vsyncadd (%p8389_p5), [#allocation7], 4294911984  ;;  %p8390_p9 = pmov %p8387_p0 }
  0xa2   : > { %p8391_p12 = pmov %p8387_p0 }
  0xa3   : > { %7610 = dma.done.wait (%p8390_p9), [#allocation10], 160  }
  0xa4   : > { %7612 = vsyncadd (%p8391_p12), [#allocation10], 4294967136  ;;  %p340_p10 = scmp.lt.s32.totalorder %s7707_s28, 1  ;;  %vm358_vm0 = vcmask 130048   ;;  %v356_v0 = vld [vmem:[#allocation3 + $0x10] sm:$0xff]  ;;  %v357_v1 = vld [vmem:[#allocation3 + $0x18] sm:$0xff] }
  0xa5   : > { %v6356_v3 = vpack.c.bf16 %v357_v1, %v356_v0  ;;  %v349_v4 = vld [vmem:[#allocation3] sm:$0xff]  ;;  %v350_v5 = vld [vmem:[#allocation3 + $0x8] sm:$0xff]  ;;  %v666_v14 = vld [vmem:[#allocation3 + $0x30] sm:$0xff]  ;;  %vm2135_vm2 = vcmask 261120   ;;  %vm7644_vm4 = vmmov 0   ;;  %vm4014_vm5 = vcmask 64512  }
  0xa6   : > { %s341_s13 = scalar_select %p340_p10, %s7707_s28, 1  ;;  %v6360_v6 = vpack.c.bf16 %v350_v5, %v349_v4  ;;  %v558_v7 = vld [vmem:[#allocation3 + $0x20] sm:$0xff]  ;;  %v559_v8 = vld [vmem:[#allocation3 + $0x28] sm:$0xff]  ;;  %v667_v15 = vld [vmem:[#allocation3 + $0x38] sm:$0xff]  ;;  %vm4363_vm6 = vcmask 519168   ;;  %vm4372_vm7 = vcmask 516096  }
  0xa7   : > { %6357 = vmatprep.subr.bf16.mxu0 %v6356_v3  ;;  %v6364_v11 = vpack.c.bf16 %v559_v8, %v558_v7  ;;  %v6368_v18 = vpack.c.bf16 %v667_v15, %v666_v14  ;;  %v1108_v19 = vld [vmem:[#allocation8] sm:$0xff]  ;;  %v1109_v20 = vld [vmem:[#allocation8 + $0x8] sm:$0xff]  ;;  %v1110_v21 = vld [vmem:[#allocation8 + $0x10] sm:$0xff]  ;;  %s338_s4 = sand.u32 1, %s7623_s25   ;;  %s4584_s2 = sshll.u32 %s7707_s28, 4 }
  0xa8   : > { %s7319_s18 = smul.u32 40, %s341_s13  ;;  %6359 = vmatpush3.bf16.msra.mxu0 %v6356_v3  ;;  %v6384_v22 = vpack.c.bf16 %v1109_v20, %v1108_v19  ;;  %v1111_v23 = vld [vmem:[#allocation8 + $0x18] sm:$0xff]  ;;  %v1112_v26 = vld [vmem:[#allocation8 + $0x20] sm:$0xff]  ;;  %v1113_v27 = vld [vmem:[#allocation8 + $0x28] sm:$0xff]  ;;  %s339_s26 = scalar_lea.vmem [#allocation12], %s338_s4 }
  0xa9   : > { %6361 = vmatprep.subr.bf16.mxu0 %v6360_v6  ;;  %v6388_v25 = vpack.c.bf16 %v1111_v23, %v1110_v21  ;;  %v774_v29 = vld [vmem:[#allocation3 + $0x40] sm:$0xff]  ;;  %v775_v30 = vld [vmem:[#allocation3 + $0x48] sm:$0xff]  ;;  %v6392_v31 = vpack.c.bf16 %v1113_v27, %v1112_v26  ;;  %v1116_v39 = vld [vmem:[#allocation8 + $0x40] sm:$0xff]  ;;  %s4387_s30 = sshll.u32 %s339_s26, 4  ;;  %s8317_s16 = scalar_lea.hbm %s8366_s7, %s4584_s2  ;;  %s8319_s30 = int_to_ptr.vmem [resolvable:$true] %s4387_s30 }
  0xaa   : > { %s7873_s23 = scalar_lea.vmem %s8359_s0, %s7319_s18  ;;  %6385 = vmatprep.subr.bf16.mxu1 %v6384_v22  ;;  %v1114_v33 = vld [vmem:[#allocation8 + $0x30] sm:$0xff]  ;;  %v1115_v34 = vld [vmem:[#allocation8 + $0x38] sm:$0xff]  ;;  %v6372_v36 = vpack.c.bf16 %v775_v30, %v774_v29  ;;  %v1117_v40 = vld [vmem:[#allocation8 + $0x48] sm:$0xff]  ;;  %s4375_s21 = scalar_lea.sflag [#allocation5], %s338_s4 }
  0xab   : > { %v351_v2 = vld [vmem:[%s7873_s23 + $0x1] sm:$0xff]  ;;  %v352_v9 = vld [vmem:[%s7873_s23 + $0x9] sm:$0xff]  ;;  %v353_v10 = vld [vmem:[%s7873_s23 + $0x11] sm:$0xff]  ;;  %6387 = vmatpush3.bf16.msra.mxu1 %v6384_v22  ;;  %v6396_v37 = vpack.c.bf16 %v1115_v34, %v1114_v33  ;;  %v6400_v44 = vpack.c.bf16 %v1117_v40, %v1116_v39  ;;  %s7557_s15 = scalar_lea.vmem %s8319_s30, 16  ;;  %p8394_p3 = scmp.ne.s32.totalorder %s8378_s11, 0 }
  0xac   : > { %5190 = vmatprep.mubr.msk.f32.mxu0 %vm358_vm0, %v351_v2  ;;  %v354_v12 = vld [vmem:[%s7873_s23 + $0x19] sm:$0xff]  ;;  %v346_v16 = vld [vmem:[%s7873_s23 + $0x8] sm:$0xff]  ;;  %v347_v17 = vld [vmem:[%s7873_s23 + $0x10] sm:$0xff]  ;;  %6389 = vmatprep.subr.bf16.mxu1 %v6388_v25  ;;  %p7558_p2 = scmp.ne.s32.totalorder %s8319_s30, %s7557_s15  ;;  %s7645_s28 = smov [#allocation12]  }
  0xad   : > { %5191 = vmatmul.mubr.msk.f32.vlgmr.msra.gmra.mrb[0].mxu0 %vm358_vm0, %v352_v9  ;;  %v345_v13 = vld [vmem:[%s7873_s23] sm:$0xff]  ;;  %v348_v24 = vld [vmem:[%s7873_s23 + $0x18] sm:$0xff]  ;;  %v554_v32 = vld [vmem:[%s7873_s23 + $0xa] sm:$0xff]  ;;  %s7561_s10 = sshll.u32 %s7645_s28, 4  ;;  %s7562_s10 = int_to_ptr.vmem [resolvable:$false] %s7561_s10 }
  0xae   : > { %5193 = vmatprep.mubr.msk.f32.mxu0 %vm358_vm0, %v353_v10  ;;  %6363 = vmatpush3.bf16.msra.mxu0 %v6360_v6  ;;  %v553_v28 = vld [vmem:[%s7873_s23 + $0x2] sm:$0xff]  ;;  %v555_v35 = vld [vmem:[%s7873_s23 + $0x12] sm:$0xff]  ;;  %v556_v38 = vld [vmem:[%s7873_s23 + $0x1a] sm:$0xff]  ;;  %v7642_v6 = vmov 0.0   ;;  %p7559_p4 = pnand %p7558_p2, %p8394_p3  ;;  %s7563_s17 = scalar_lea.vmem %s7562_s10, 32 }
  0xaf   : > { %6365 = vmatprep.subr.bf16.mxu0 %v6364_v11  ;;  %6391 = vmatpush3.bf16.msra.mxu1 %v6388_v25  ;;  %v661_v41 = vld [vmem:[%s7873_s23 + $0x3] sm:$0xff]  ;;  %v883_v43 = vld [vmem:[#allocation3 + $0x58] sm:$0xff]  ;;  %v664_v48 = vld [vmem:[%s7873_s23 + $0x1b] sm:$0xff]  ;;  %1159 = vst [vmem:[#allocation2] sm:$0x1] %v7642_v6  ;;  %p7564_p8 = scmp.lt.s32.totalorder %s8319_s30, %s7562_s10  ;;  %p7565_p11 = scmp.lt.s32.totalorder %s7563_s17, %s7557_s15 }
  0xb0   : > { %6393 = vmatprep.subr.bf16.mxu1 %v6392_v31  ;;  %v882_v42 = vld [vmem:[#allocation3 + $0x50] sm:$0xff]  ;;  %v663_v46 = vld [vmem:[%s7873_s23 + $0x13] sm:$0xff]  ;;  %v991_v51 = vld [vmem:[#allocation3 + $0x68] sm:$0xff]  ;;  %1164 = vst [vmem:[#allocation2 + $0x21] sm:$0x1] %v7642_v6  ;;  %p7560_p7 = pneg %p7559_p4 }
  0xb1   : > { %5194 = vmatmul.mubr.msk.f32.gmra.mrb[2].mxu0 %vm358_vm0, %v354_v12  ;;  %v662_v45 = vld [vmem:[%s7873_s23 + $0xb] sm:$0xff]  ;;  %v6376_v47 = vpack.c.bf16 %v883_v43, %v882_v42  ;;  %v990_v50 = vld [vmem:[#allocation3 + $0x60] sm:$0xff]  ;;  %v1119_v1 = vld [vmem:[#allocation8 + $0x58] sm:$0xff]  ;;  %p7566_p13 = por %p7565_p11, %p7564_p8 }
  0xb2   : > { %5200 = vmatprep.mubr.msk.f32.mxu0 %vm358_vm0, %v345_v13  ;;  %v769_v49 = vld [vmem:[%s7873_s23 + $0x4] sm:$0xff]  ;;  %v770_v52 = vld [vmem:[%s7873_s23 + $0xc] sm:$0xff]  ;;  %v771_v53 = vld [vmem:[%s7873_s23 + $0x14] sm:$0xff]  ;;  %v6380_v54 = vpack.c.bf16 %v991_v51, %v990_v50 }
  0xb3   : > { %6395 = vmatpush3.bf16.msra.mxu1 %v6392_v31  ;;  %v772_v55 = vld [vmem:[%s7873_s23 + $0x1c] sm:$0xff]  ;;  %v877_v56 = vld [vmem:[%s7873_s23 + $0x5] sm:$0xff]  ;;  %v878_v57 = vld [vmem:[%s7873_s23 + $0xd] sm:$0xff]  ;;  %p7567_p1 = pnand %p7566_p13, %p7560_p7 }
  0xb4   : > { %6397 = vmatprep.subr.bf16.mxu1 %v6396_v37  ;;  %v879_v58 = vld [vmem:[%s7873_s23 + $0x15] sm:$0xff]  ;;  %v880_v59 = vld [vmem:[%s7873_s23 + $0x1d] sm:$0xff]  ;;  %v985_v60 = vld [vmem:[%s7873_s23 + $0x6] sm:$0xff] }
  0xb5   : > { %5201 = vmatmul.mubr.msk.f32.vlgmr.msra.gmra.mrb[0].mxu0 %vm358_vm0, %v346_v16  ;;  %v986_v61 = vld [vmem:[%s7873_s23 + $0xe] sm:$0xff]  ;;  %v987_v62 = vld [vmem:[%s7873_s23 + $0x16] sm:$0xff]  ;;  %v988_v63 = vld [vmem:[%s7873_s23 + $0x1e] sm:$0xff] }
  0xb6   : > { %5203 = vmatprep.mubr.msk.f32.mxu0 %vm358_vm0, %v347_v17  ;;  %6367 = vmatpush3.bf16.msra.mxu0 %v6364_v11  ;;  %v1118_v0 = vld [vmem:[#allocation8 + $0x50] sm:$0xff]  ;;  %v1120_v3 = vld [vmem:[#allocation8 + $0x60] sm:$0xff]  ;;  %v1121_v4 = vld [vmem:[#allocation8 + $0x68] sm:$0xff] }
  0xb7   : > { %6369 = vmatprep.subr.bf16.mxu0 %v6368_v18  ;;  %6399 = vmatpush3.bf16.msra.mxu1 %v6396_v37  ;;  %v6404_v2 = vpack.c.bf16 %v1119_v1, %v1118_v0  ;;  %v6408_v5 = vpack.c.bf16 %v1121_v4, %v1120_v3  ;;  %v1122_v7 = vld [vmem:[#allocation8 + $0x70] sm:$0xff]  ;;  %v1123_v8 = vld [vmem:[#allocation8 + $0x78] sm:$0xff]  ;;  %v1125_v10 = vld [vmem:[#allocation8 + $0x80] sm:$0xff] }
  0xb8   : > { %6401 = vmatprep.subr.bf16.mxu1 %v6400_v44  ;;  %v6412_v9 = vpack.c.bf16 %v1123_v8, %v1122_v7  ;;  %v1126_v11 = vld [vmem:[#allocation8 + $0x88] sm:$0xff]  ;;  %v1447_v13 = vld [vmem:[#allocation8 + $0x180] sm:$0xff]  ;;  %v1449_v15 = vld [vmem:[#allocation8 + $0x190] sm:$0xff] }
  0xb9   : > { %5204 = vmatmul.mubr.msk.f32.gmra.mrb[2].mxu0 %vm358_vm0, %v348_v24  ;;  %v6416_v12 = vpack.c.bf16 %v1126_v11, %v1125_v10  ;;  %v1448_v14 = vld [vmem:[#allocation8 + $0x188] sm:$0xff]  ;;  %v1450_v17 = vld [vmem:[#allocation8 + $0x198] sm:$0xff]  ;;  %v1451_v19 = vld [vmem:[#allocation8 + $0x1a0] sm:$0xff] }
  0xba   : > { %5210 = vmatprep.mubr.msk.f32.mxu0 %vm358_vm0, %v553_v28  ;;  %v6480_v16 = vpack.c.bf16 %v1448_v14, %v1447_v13  ;;  %v1452_v20 = vld [vmem:[#allocation8 + $0x1a8] sm:$0xff]  ;;  %v1453_v22 = vld [vmem:[#allocation8 + $0x1b0] sm:$0xff]  ;;  %v1454_v23 = vld [vmem:[#allocation8 + $0x1b8] sm:$0xff] }
  0xbb   : > { %6403 = vmatpush3.bf16.msra.mxu1 %v6400_v44  ;;  %v6488_v21 = vpack.c.bf16 %v1452_v20, %v1451_v19  ;;  %v6492_v24 = vpack.c.bf16 %v1454_v23, %v1453_v22  ;;  %v1455_v25 = vld [vmem:[#allocation8 + $0x1c0] sm:$0xff]  ;;  %v1456_v26 = vld [vmem:[#allocation8 + $0x1c8] sm:$0xff]  ;;  %v4535_v28 = vld [vmem:[#allocation6] ss:$0 sm:$0xff] }
  0xbc   : > { %6405 = vmatprep.subr.bf16.mxu1 %v6404_v2  ;;  %v6496_v27 = vpack.c.bf16 %v1456_v26, %v1455_v25  ;;  %v1128_v42 = vld [vmem:[#allocation8 + $0x98] sm:$0xff]  ;;  %v1139_v0 = vld [vmem:[#allocation8 + $0xf0] sm:$0xff]  ;;  %v1142_v3 = vld [vmem:[#allocation8 + $0x100] sm:$0xff] }
  0xbd   : > { %5211 = vmatmul.mubr.msk.f32.vlgmr.msra.gmra.mrb[0].mxu0 %vm358_vm0, %v554_v32  ;;  %v1140_v1 = vld [vmem:[#allocation8 + $0xf8] sm:$0xff]  ;;  %v1143_v4 = vld [vmem:[#allocation8 + $0x108] sm:$0xff]  ;;  %v1144_v7 = vld [vmem:[#allocation8 + $0x110] sm:$0xff] }
  0xbe   : > { %5213 = vmatprep.mubr.msk.f32.mxu0 %vm358_vm0, %v555_v35  ;;  %6371 = vmatpush3.bf16.msra.mxu0 %v6368_v18  ;;  %v6484_v18 = vpack.c.bf16 %v1450_v17, %v1449_v15  ;;  %v1145_v8 = vld [vmem:[#allocation8 + $0x118] sm:$0xff]  ;;  %v1146_v10 = vld [vmem:[#allocation8 + $0x120] sm:$0xff]  ;;  %v1147_v11 = vld [vmem:[#allocation8 + $0x128] sm:$0xff] }
  0xbf   : > { %6373 = vmatprep.subr.bf16.mxu0 %v6372_v36  ;;  %6407 = vmatpush3.bf16.msra.mxu1 %v6404_v2  ;;  %v6444_v2 = vpack.c.bf16 %v1140_v1, %v1139_v0  ;;  %v1148_v13 = vld [vmem:[#allocation8 + $0x130] sm:$0xff]  ;;  %v1149_v14 = vld [vmem:[#allocation8 + $0x138] sm:$0xff]  ;;  %v1150_v17 = vld [vmem:[#allocation8 + $0x140] sm:$0xff] }
  0xc0   : > { %6409 = vmatprep.subr.bf16.mxu1 %v6408_v5  ;;  %v1152_v20 = vld [vmem:[#allocation8 + $0x150] sm:$0xff]  ;;  %v1154_v23 = vld [vmem:[#allocation8 + $0x160] sm:$0xff] }
  0xc1   : > { %5214 = vmatmul.mubr.msk.f32.gmra.mrb[2].mxu0 %vm358_vm0, %v556_v38  ;;  %v1156_v26 = vld [vmem:[#allocation8 + $0x170] sm:$0xff] }
  0xc2   : > { %5220 = vmatprep.mubr.msk.f32.mxu0 %vm358_vm0, %v661_v41  ;;  %v1127_v41 = vld [vmem:[#allocation8 + $0x90] sm:$0xff] }
  0xc3   : > { %6411 = vmatpush3.bf16.msra.mxu1 %v6408_v5  ;;  %v6448_v5 = vpack.c.bf16 %v1143_v4, %v1142_v3 }
  0xc4   : > { %6413 = vmatprep.subr.bf16.mxu1 %v6412_v9 }
  0xc5   : > { %5221 = vmatmul.mubr.msk.f32.vlgmr.msra.gmra.mrb[0].mxu0 %vm358_vm0, %v662_v45  ;;  %v6420_v45 = vpack.c.bf16 %v1128_v42, %v1127_v41  ;;  %v1461_v41 = vld [vmem:[#allocation8 + $0x1f0] sm:$0xff]  ;;  %v1462_v42 = vld [vmem:[#allocation8 + $0x1f8] sm:$0xff] }
  0xc6   : > { %5223 = vmatprep.mubr.msk.f32.mxu0 %vm358_vm0, %v663_v46  ;;  %6375 = vmatpush3.bf16.msra.mxu0 %v6372_v36  ;;  %v1129_v46 = vld [vmem:[#allocation8 + $0xa0] sm:$0xff] }
  0xc7   : > { %6377 = vmatprep.subr.bf16.mxu0 %v6376_v47  ;;  %6415 = vmatpush3.bf16.msra.mxu1 %v6412_v9  ;;  %v6452_v9 = vpack.c.bf16 %v1145_v8, %v1144_v7 }
  0xc8   : > { %6417 = vmatprep.subr.bf16.mxu1 %v6416_v12 }
  0xc9   : > { %5224 = vmatmul.mubr.msk.f32.gmra.mrb[2].mxu0 %vm358_vm0, %v664_v48 }
  0xca   : > { %5230 = vmatprep.mubr.msk.f32.mxu0 %vm358_vm0, %v769_v49 }
  0xcd   : > { %5231 = vmatmul.mubr.msk.f32.vlgmr.msra.gmra.mrb[0].mxu0 %vm358_vm0, %v770_v52  ;;  %v1131_v52 = vld [vmem:[#allocation8 + $0xb0] sm:$0xff] }
  0xce   : > { %5233 = vmatprep.mubr.msk.f32.mxu0 %vm358_vm0, %v771_v53  ;;  %6379 = vmatpush3.bf16.msra.mxu0 %v6376_v47  ;;  %v1130_v47 = vld [vmem:[#allocation8 + $0xa8] sm:$0xff]  ;;  %v1132_v53 = vld [vmem:[#allocation8 + $0xb8] sm:$0xff] }
  0xcf   : > { %6381 = vmatprep.subr.bf16.mxu0 %v6380_v54  ;;  %v6424_v51 = vpack.c.bf16 %v1130_v47, %v1129_v46  ;;  %v1787_v47 = vld [vmem:[#allocation8 + $0x300] sm:$0xff] }
  0xd1   : > { %5234 = vmatmul.mubr.msk.f32.gmra.mrb[2].mxu0 %vm358_vm0, %v772_v55  ;;  %v1133_v55 = vld [vmem:[#allocation8 + $0xc0] sm:$0xff] }
  0xd2   : > { %5240 = vmatprep.mubr.msk.f32.mxu0 %vm358_vm0, %v877_v56  ;;  %v1134_v56 = vld [vmem:[#allocation8 + $0xc8] sm:$0xff] }
  0xd5   : > { %5241 = vmatmul.mubr.msk.f32.vlgmr.msra.gmra.mrb[0].mxu0 %vm358_vm0, %v878_v57  ;;  %v6432_v57 = vpack.c.bf16 %v1134_v56, %v1133_v55  ;;  %v1793_v56 = vld [vmem:[#allocation8 + $0x330] sm:$0xff] }
  0xd6   : > { %5243 = vmatprep.mubr.msk.f32.mxu0 %vm358_vm0, %v879_v58  ;;  %6383 = vmatpush3.bf16.msra.mxu0 %v6380_v54  ;;  %v6428_v54 = vpack.c.bf16 %v1132_v53, %v1131_v52  ;;  %v1135_v58 = vld [vmem:[#allocation8 + $0xd0] sm:$0xff]  ;;  %v1791_v53 = vld [vmem:[#allocation8 + $0x320] sm:$0xff] }
  0xd7   : > { %6481 = vmatprep.subr.bf16.mxu0 %v6480_v16 }
  0xd9   : > { %5244 = vmatmul.mubr.msk.f32.gmra.mrb[2].mxu0 %vm358_vm0, %v880_v59  ;;  %v1136_v59 = vld [vmem:[#allocation8 + $0xd8] sm:$0xff] }
  0xda   : > { %5250 = vmatprep.mubr.msk.f32.mxu0 %vm358_vm0, %v985_v60  ;;  %v6436_v60 = vpack.c.bf16 %v1136_v59, %v1135_v58  ;;  %v1795_v59 = vld [vmem:[#allocation8 + $0x340] sm:$0xff] }
  0xdd   : > { %5251 = vmatmul.mubr.msk.f32.vlgmr.msra.gmra.mrb[0].mxu0 %vm358_vm0, %v986_v61  ;;  %v1137_v61 = vld [vmem:[#allocation8 + $0xe0] sm:$0xff] }
  0xde   : > { %5253 = vmatprep.mubr.msk.f32.mxu0 %vm358_vm0, %v987_v62  ;;  %6483 = vmatpush3.bf16.msra.mxu0 %v6480_v16  ;;  %v1138_v62 = vld [vmem:[#allocation8 + $0xe8] sm:$0xff]  ;;  %v6460_v16 = vpack.c.bf16 %v1149_v14, %v1148_v13  ;;  %v1467_v13 = vld [vmem:[#allocation8 + $0x218] sm:$0xff] }
  0xdf   : > { %6485 = vmatprep.subr.bf16.mxu0 %v6484_v18 }
  0xe1   : > { %5254 = vmatmul.mubr.msk.f32.gmra.mrb[2].mxu0 %vm358_vm0, %v988_v63  ;;  %v6440_v63 = vpack.c.bf16 %v1138_v62, %v1137_v61  ;;  %v4536_v62 = vld [vmem:[#allocation9] ss:$0 sm:$0xff] }
  0xe2   : > { %6487 = vmatpush3.bf16.msra.mxu0 %v6484_v18  ;;  %v1151_v18 = vld [vmem:[#allocation8 + $0x148] sm:$0xff] }
  0xe3   : > { %6489 = vmatprep.subr.bf16.mxu0 %v6488_v21  ;;  %v6464_v19 = vpack.c.bf16 %v1151_v18, %v1150_v17  ;;  %v1468_v17 = vld [vmem:[#allocation8 + $0x220] sm:$0xff]  ;;  %v1469_v18 = vld [vmem:[#allocation8 + $0x228] sm:$0xff] }
  0xe6   : > { %6491 = vmatpush3.bf16.msra.mxu0 %v6488_v21  ;;  %v1153_v21 = vld [vmem:[#allocation8 + $0x158] sm:$0xff] }
  0xe7   : > { %6493 = vmatprep.subr.bf16.mxu0 %v6492_v24  ;;  %v6468_v22 = vpack.c.bf16 %v1153_v21, %v1152_v20 }
  0xea   : > { %6495 = vmatpush3.bf16.msra.mxu0 %v6492_v24  ;;  %v1155_v24 = vld [vmem:[#allocation8 + $0x168] sm:$0xff] }
  0xeb   : > { %6497 = vmatprep.subr.bf16.mxu0 %v6496_v27  ;;  %v6472_v25 = vpack.c.bf16 %v1155_v24, %v1154_v23  ;;  %v1470_v23 = vld [vmem:[#allocation8 + $0x230] sm:$0xff]  ;;  %v1471_v24 = vld [vmem:[#allocation8 + $0x238] sm:$0xff] }
  0xee   : > { %6499 = vmatpush3.bf16.msra.mxu0 %v6496_v27  ;;  %v1157_v27 = vld [vmem:[#allocation8 + $0x178] sm:$0xff] }
 0x1b0   : > { %v5252_v29 = vpop.f32.mrb[0].mxu0 }
 0x1b1   : > { %v1101_v30 = vadd.f32 %v5252_v29, %v4535_v28  ;;  %v1070_v31 = vpop.f32.mrb[1].mxu0 }
 0x1b2   : > { %v1100_v32 = vadd.f32 %v4535_v28, %v1070_v31  ;;  %v1457_v31 = vld [vmem:[#allocation8 + $0x1d0] sm:$0xff] }
 0x1b3   : > { %v7933_v33 = vmax.f32 %v1101_v30, 0.0 }
 0x1b4   : > { %v7935_v34 = vmax.f32 %v1100_v32, 0.0  ;;  %v5255_v35 = vpop.f32.mrb[2].mxu0  ;;  %v1458_v32 = vld [vmem:[#allocation8 + $0x1d8] sm:$0xff] }
 0x1b5   : > { %1161 = vst [vmem:[#allocation2 + $0x9] sm:$0xff] %v7933_v33  ;;  %v1103_v36 = vadd.f32 %v5255_v35, %v4535_v28  ;;  %v1080_v37 = vpop.f32.mrb[3].mxu0  ;;  %v6500_v35 = vpack.c.bf16 %v1458_v32, %v1457_v31  ;;  %v1476_v32 = vld [vmem:[#allocation8 + $0x260] sm:$0xff] }
 0x1b6   : > { %1160 = vst [vmem:[#allocation2 + $0x1] sm:$0xff] %v7935_v34  ;;  %v1102_v38 = vadd.f32 %v4535_v28, %v1080_v37  ;;  %v6476_v28 = vpack.c.bf16 %v1157_v27, %v1156_v26  ;;  %v1460_v37 = vld [vmem:[#allocation8 + $0x1e8] sm:$0xff]  ;;  %v1472_v26 = vld [vmem:[#allocation8 + $0x240] sm:$0xff] }
 0x1b7   : > { %v7939_v39 = vmax.f32 %v1103_v36, 0.0  ;;  %6501 = vmatprep.subr.bf16.mxu0 %v6500_v35  ;;  %v1459_v36 = vld [vmem:[#allocation8 + $0x1e0] sm:$0xff]  ;;  %v1473_v27 = vld [vmem:[#allocation8 + $0x248] sm:$0xff] }
 0x1b8   : > { %v7941_v40 = vmax.f32 %v1102_v38, 0.0  ;;  %6503 = vmatpush3.bf16.msra.mxu0 %v6500_v35  ;;  %v6504_v38 = vpack.c.bf16 %v1460_v37, %v1459_v36  ;;  %v1477_v35 = vld [vmem:[#allocation8 + $0x268] sm:$0xff]  ;;  %v1478_v37 = vld [vmem:[#allocation8 + $0x270] sm:$0xff] }
 0x1b9   : > { %1163 = vst [vmem:[#allocation2 + $0x19] sm:$0xff] %v7939_v39  ;;  %v6536_v36 = vpack.c.bf16 %v1477_v35, %v1476_v32 }
 0x1ba   : > { %1162 = vst [vmem:[#allocation2 + $0x11] sm:$0xff] %v7941_v40  ;;  %6505 = vmatprep.subr.bf16.mxu0 %v6504_v38 }
 0x1bc   : > { %6507 = vmatpush3.bf16.msra.mxu0 %v6504_v38  ;;  %v1479_v38 = vld [vmem:[#allocation8 + $0x278] sm:$0xff] }
 0x1bd   : > { %v1165_v43 = vld [vmem:[#allocation2] sm:$0xff]  ;;  %v1166_v44 = vld [vmem:[#allocation2 + $0x8] sm:$0xff] }
 0x1be   : > { %1499 = vst [vmem:[#allocation2] sm:$0x1] %v7642_v6  ;;  %5288 = vmatprep.mubr.f32.mxu1 %v1165_v43  ;;  %v1339_v15 = vld [vmem:[#allocation2 + $0x2] sm:$0xff]  ;;  %v6508_v43 = vpack.c.bf16 %v1462_v42, %v1461_v41  ;;  %v6540_v41 = vpack.c.bf16 %v1479_v38, %v1478_v37  ;;  %v1481_v42 = vld [vmem:[#allocation8 + $0x280] sm:$0xff] }
 0x1bf   : > { %5289 = vmatmul.mubr.f32.vlgmr.msra.gmra.mrb[0].mxu1 %v1166_v44  ;;  %v1464_v44 = vld [vmem:[#allocation8 + $0x200] sm:$0xff]  ;;  %v1809_v37 = vld [vmem:[#allocation8 + $0x3a8] sm:$0xff] }
 0x1c0   : > { %6419 = vmatpush3.bf16.msra.mxu1 %v6416_v12  ;;  %v7946_v48 = vld [vmem:[#allocation2 + $0x1a] sm:$0xff]  ;;  %v6456_v12 = vpack.c.bf16 %v1147_v11, %v1146_v10  ;;  %6509 = vmatprep.subr.bf16.mxu0 %v6508_v43 }
 0x1c1   : > { %v1167_v49 = vld [vmem:[#allocation2 + $0x10] sm:$0xff]  ;;  %6421 = vmatprep.subr.bf16.mxu1 %v6420_v45  ;;  %v1168_v50 = vld [vmem:[#allocation2 + $0x18] sm:$0xff]  ;;  %1504 = vst [vmem:[#allocation2 + $0x21] sm:$0x1] %v7642_v6  ;;  %6511 = vmatpush3.bf16.msra.mxu0 %v6508_v43  ;;  %v1482_v43 = vld [vmem:[#allocation8 + $0x288] sm:$0xff] }
 0x1c2   : > { %5291 = vmatprep.mubr.f32.mxu1 %v1167_v49  ;;  %v1340_v29 = vld [vmem:[#allocation2 + $0xa] sm:$0xff]  ;;  %v1341_v30 = vld [vmem:[#allocation2 + $0x12] sm:$0xff] }
 0x1c3   : > { %5292 = vmatmul.mubr.f32.gmra.mrb[2].mxu1 %v1168_v50  ;;  %v1789_v49 = vld [vmem:[#allocation8 + $0x310] sm:$0xff] }
 0x1c4   : > { %6423 = vmatpush3.bf16.msra.mxu1 %v6420_v45  ;;  %5326 = vmatprep.mubr.f32.mxu1 %v7935_v34  ;;  %v1465_v45 = vld [vmem:[#allocation8 + $0x208] sm:$0xff] }
 0x1c5   : > { %6425 = vmatprep.subr.bf16.mxu1 %v6424_v51  ;;  %v6512_v46 = vpack.c.bf16 %v1465_v45, %v1464_v44  ;;  %v6544_v44 = vpack.c.bf16 %v1482_v43, %v1481_v42  ;;  %v1483_v45 = vld [vmem:[#allocation8 + $0x290] sm:$0xff]  ;;  %v1811_v43 = vld [vmem:[#allocation8 + $0x3b8] sm:$0xff] }
 0x1c6   : > { %v1810_v42 = vld [vmem:[#allocation8 + $0x3b0] sm:$0xff] }
 0x1c7   : > { %6513 = vmatprep.subr.bf16.mxu0 %v6512_v46 }
 0x1c8   : > { %6427 = vmatpush3.bf16.msra.mxu1 %v6424_v51  ;;  %v1790_v51 = vld [vmem:[#allocation8 + $0x318] sm:$0xff] }
 0x1c9   : > { %6429 = vmatprep.subr.bf16.mxu1 %v6428_v54  ;;  %v6580_v52 = vpack.c.bf16 %v1790_v51, %v1789_v49  ;;  %v1486_v49 = vld [vmem:[#allocation8 + $0x2a8] sm:$0xff]  ;;  %v1487_v51 = vld [vmem:[#allocation8 + $0x2b0] sm:$0xff] }
 0x1cc   : > { %6431 = vmatpush3.bf16.msra.mxu1 %v6428_v54  ;;  %v1792_v54 = vld [vmem:[#allocation8 + $0x328] sm:$0xff] }
 0x1cd   : > { %6433 = vmatprep.subr.bf16.mxu1 %v6432_v57  ;;  %v6584_v55 = vpack.c.bf16 %v1792_v54, %v1791_v53 }
 0x1d0   : > { %6435 = vmatpush3.bf16.msra.mxu1 %v6432_v57  ;;  %v1794_v57 = vld [vmem:[#allocation8 + $0x338] sm:$0xff] }
 0x1d1   : > { %6437 = vmatprep.subr.bf16.mxu1 %v6436_v60  ;;  %v6588_v58 = vpack.c.bf16 %v1794_v57, %v1793_v56  ;;  %v1490_v56 = vld [vmem:[#allocation8 + $0x2c8] sm:$0xff] }
 0x1d4   : > { %6439 = vmatpush3.bf16.msra.mxu1 %v6436_v60  ;;  %v1796_v60 = vld [vmem:[#allocation8 + $0x348] sm:$0xff] }
 0x1d5   : > { %6441 = vmatprep.subr.bf16.mxu1 %v6440_v63  ;;  %v6592_v61 = vpack.c.bf16 %v1796_v60, %v1795_v59  ;;  %v1492_v59 = vld [vmem:[#allocation8 + $0x2d8] sm:$0xff] }
 0x1d8   : > { %6443 = vmatpush3.bf16.msra.mxu1 %v6440_v63 }
 0x1d9   : > { %6445 = vmatprep.subr.bf16.mxu1 %v6444_v2 }
 0x1dc   : > { %6447 = vmatpush3.bf16.msra.mxu1 %v6444_v2 }
 0x1dd   : > { %6449 = vmatprep.subr.bf16.mxu1 %v6448_v5 }
 0x1df   : > { %5327 = vmatmul.mubr.f32.vlgmr.msra.gmra.mrb[0].mxu1 %v7933_v33 }
 0x1e0   : > { %5329 = vmatprep.mubr.f32.mxu1 %v7941_v40  ;;  %6451 = vmatpush3.bf16.msra.mxu1 %v6448_v5 }
 0x1e1   : > { %6453 = vmatprep.subr.bf16.mxu1 %v6452_v9 }
 0x1e3   : > { %5330 = vmatmul.mubr.f32.gmra.mrb[2].mxu1 %v7939_v39 }
 0x1e4   : > { %6455 = vmatpush3.bf16.msra.mxu1 %v6452_v9  ;;  %5364 = vmatprep.mubr.f32.mxu1 %v1339_v15 }
 0x1e5   : > { %6457 = vmatprep.subr.bf16.mxu1 %v6456_v12 }
 0x1e8   : > { %6459 = vmatpush3.bf16.msra.mxu1 %v6456_v12  ;;  %v1466_v12 = vld [vmem:[#allocation8 + $0x210] sm:$0xff] }
 0x1e9   : > { %6461 = vmatprep.subr.bf16.mxu1 %v6460_v16 }
 0x1ec   : > { %6463 = vmatpush3.bf16.msra.mxu1 %v6460_v16  ;;  %v6516_v16 = vpack.c.bf16 %v1467_v13, %v1466_v12  ;;  %v1801_v12 = vld [vmem:[#allocation8 + $0x370] sm:$0xff]  ;;  %v1802_v13 = vld [vmem:[#allocation8 + $0x378] sm:$0xff] }
 0x1ed   : > { %6465 = vmatprep.subr.bf16.mxu1 %v6464_v19 }
 0x1f0   : > { %6467 = vmatpush3.bf16.msra.mxu1 %v6464_v19 }
 0x1f1   : > { %6469 = vmatprep.subr.bf16.mxu1 %v6468_v22 }
 0x1f4   : > { %6471 = vmatpush3.bf16.msra.mxu1 %v6468_v22  ;;  %v6520_v22 = vpack.c.bf16 %v1469_v18, %v1468_v17  ;;  %v4537_v18 = vld [vmem:[#allocation9 + $0x1] ss:$0 sm:$0xff] }
 0x1f5   : > { %6473 = vmatprep.subr.bf16.mxu1 %v6472_v25 }
 0x1f8   : > { %6475 = vmatpush3.bf16.msra.mxu1 %v6472_v25  ;;  %v6524_v25 = vpack.c.bf16 %v1471_v24, %v1470_v23 }
 0x1f9   : > { %6477 = vmatprep.subr.bf16.mxu1 %v6476_v28 }
 0x1fc   : > { %6479 = vmatpush3.bf16.msra.mxu1 %v6476_v28  ;;  %v6528_v28 = vpack.c.bf16 %v1473_v27, %v1472_v26 }
 0x1ff   : > { %5365 = vmatmul.mubr.f32.vlgmr.msra.gmra.mrb[0].mxu1 %v1340_v29  ;;  %v1474_v29 = vld [vmem:[#allocation8 + $0x250] sm:$0xff] }
 0x200   : > { %5367 = vmatprep.mubr.f32.mxu1 %v1341_v30  ;;  %v1475_v30 = vld [vmem:[#allocation8 + $0x258] sm:$0xff] }
 0x201   : > { %v6532_v31 = vpack.c.bf16 %v1475_v30, %v1474_v29 }
 0x203   : > { %5368 = vmatmul.mubr.f32.gmra.mrb[2].mxu1 %v7946_v48  ;;  %v1788_v48 = vld [vmem:[#allocation8 + $0x308] sm:$0xff] }
 0x204   : > { %v6576_v50 = vpack.c.bf16 %v1788_v48, %v1787_v47  ;;  %v1485_v48 = vld [vmem:[#allocation8 + $0x2a0] sm:$0xff] }
 0x206   : > { %6577 = vmatprep.subr.bf16.mxu1 %v6576_v50 }
 0x207   : > { %6579 = vmatpush3.bf16.msra.mxu1 %v6576_v50  ;;  %v6552_v50 = vpack.c.bf16 %v1486_v49, %v1485_v48  ;;  %v1814_v48 = vld [vmem:[#allocation8 + $0x3d0] sm:$0xff]  ;;  %v1815_v49 = vld [vmem:[#allocation8 + $0x3d8] sm:$0xff] }
 0x208   : > { %6581 = vmatprep.subr.bf16.mxu1 %v6580_v52 }
 0x20b   : > { %6583 = vmatpush3.bf16.msra.mxu1 %v6580_v52  ;;  %v1488_v52 = vld [vmem:[#allocation8 + $0x2b8] sm:$0xff] }
 0x20c   : > { %6585 = vmatprep.subr.bf16.mxu1 %v6584_v55  ;;  %v6556_v54 = vpack.c.bf16 %v1488_v52, %v1487_v51  ;;  %v1816_v51 = vld [vmem:[#allocation8 + $0x3e0] sm:$0xff]  ;;  %v1817_v52 = vld [vmem:[#allocation8 + $0x3e8] sm:$0xff] }
 0x20f   : > { %6587 = vmatpush3.bf16.msra.mxu1 %v6584_v55  ;;  %v1489_v55 = vld [vmem:[#allocation8 + $0x2c0] sm:$0xff] }
 0x210   : > { %6589 = vmatprep.subr.bf16.mxu1 %v6588_v58  ;;  %v6560_v57 = vpack.c.bf16 %v1490_v56, %v1489_v55  ;;  %v1819_v55 = vld [vmem:[#allocation8 + $0x3f8] sm:$0xff] }
 0x213   : > { %6591 = vmatpush3.bf16.msra.mxu1 %v6588_v58  ;;  %v1491_v58 = vld [vmem:[#allocation8 + $0x2d0] sm:$0xff] }
 0x214   : > { %6593 = vmatprep.subr.bf16.mxu1 %v6592_v61  ;;  %v6564_v60 = vpack.c.bf16 %v1492_v59, %v1491_v58  ;;  %v1822_v58 = vld [vmem:[#allocation8 + $0x408] sm:$0xff] }
 0x217   : > { %6595 = vmatpush3.bf16.msra.mxu1 %v6592_v61  ;;  %v1493_v61 = vld [vmem:[#allocation8 + $0x2e0] sm:$0xff] }
 0x2d2   : > { %v5366_v63 = vpop.f32.mrb[0].mxu1 }
 0x2d3   : > { %v7954_v0 = vadd.f32 %v5366_v63, %v4536_v62  ;;  %v1409_v1 = vpop.f32.mrb[1].mxu1 }
 0x2d4   : > { %v1438_v2 = vadd.f32 %v4536_v62, %v1409_v1  ;;  %v1496_v1 = vld [vmem:[#allocation8 + $0x2f8] sm:$0xff] }
 0x2d5   : > { %v1443_v3 = vmax.f32 %v7954_v0, 0.0  ;;  %v1495_v0 = vld [vmem:[#allocation8 + $0x2f0] sm:$0xff] }
 0x2d6   : > { %v1442_v4 = vmax.f32 %v1438_v2, 0.0  ;;  %v5369_v5 = vpop.f32.mrb[2].mxu1  ;;  %v6572_v2 = vpack.c.bf16 %v1496_v1, %v1495_v0  ;;  %v1826_v0 = vld [vmem:[#allocation8 + $0x428] sm:$0xff] }
 0x2d7   : > { %1501 = vst [vmem:[#allocation2 + $0x9] sm:$0xff] %v1443_v3  ;;  %v7959_v7 = vadd.f32 %v5369_v5, %v4536_v62  ;;  %v1419_v8 = vpop.f32.mrb[3].mxu1  ;;  %v1797_v5 = vld [vmem:[#allocation8 + $0x350] sm:$0xff] }
 0x2d8   : > { %1500 = vst [vmem:[#allocation2 + $0x1] sm:$0xff] %v1442_v4  ;;  %v7961_v9 = vadd.f32 %v4536_v62, %v1419_v8  ;;  %v1494_v62 = vld [vmem:[#allocation8 + $0x2e8] sm:$0xff] }
 0x2d9   : > { %v1445_v10 = vmax.f32 %v7959_v7, 0.0  ;;  %v6568_v63 = vpack.c.bf16 %v1494_v62, %v1493_v61  ;;  %v1798_v7 = vld [vmem:[#allocation8 + $0x358] sm:$0xff] }
 0x2da   : > { %v1444_v11 = vmax.f32 %v7961_v9, 0.0  ;;  %v6596_v8 = vpack.c.bf16 %v1798_v7, %v1797_v5  ;;  %v1799_v9 = vld [vmem:[#allocation8 + $0x360] sm:$0xff]  ;;  %v1824_v61 = vld [vmem:[#allocation8 + $0x418] sm:$0xff] }
 0x2db   : > { %1503 = vst [vmem:[#allocation2 + $0x19] sm:$0xff] %v1445_v10  ;;  %v1829_v7 = vld [vmem:[#allocation8 + $0x440] sm:$0xff] }
 0x2dc   : > { %1502 = vst [vmem:[#allocation2 + $0x11] sm:$0xff] %v1444_v11  ;;  %6597 = vmatprep.subr.bf16.mxu1 %v6596_v8 }
 0x2dd   : > { %6599 = vmatpush3.bf16.msra.mxu1 %v6596_v8  ;;  %v1830_v8 = vld [vmem:[#allocation8 + $0x448] sm:$0xff] }
 0x2df   : > { %v1505_v14 = vld [vmem:[#allocation2] sm:$0xff]  ;;  %v1506_v15 = vld [vmem:[#allocation2 + $0x8] sm:$0xff] }
 0x2e0   : > { %1839 = vst [vmem:[#allocation2] sm:$0x1] %v7642_v6  ;;  %5402 = vmatprep.mubr.f32.mxu0 %v1505_v14  ;;  %v1679_v53 = vld [vmem:[#allocation2 + $0x2] sm:$0xff]  ;;  %v6604_v14 = vpack.c.bf16 %v1802_v13, %v1801_v12  ;;  %v1833_v13 = vld [vmem:[#allocation8 + $0x460] sm:$0xff] }
 0x2e1   : > { %5403 = vmatmul.mubr.f32.vlgmr.msra.gmra.mrb[4].mxu0 %v1506_v15  ;;  %v1804_v15 = vld [vmem:[#allocation8 + $0x380] sm:$0xff] }
 0x2e2   : > { %6515 = vmatpush3.bf16.msra.mxu0 %v6512_v46  ;;  %v7968_v19 = vld [vmem:[#allocation2 + $0x1a] sm:$0xff]  ;;  %v1484_v46 = vld [vmem:[#allocation8 + $0x298] sm:$0xff] }
 0x2e3   : > { %v1507_v20 = vld [vmem:[#allocation2 + $0x10] sm:$0xff]  ;;  %6517 = vmatprep.subr.bf16.mxu0 %v6516_v16  ;;  %v1508_v21 = vld [vmem:[#allocation2 + $0x18] sm:$0xff]  ;;  %1844 = vst [vmem:[#allocation2 + $0x21] sm:$0x1] %v7642_v6  ;;  %v6548_v47 = vpack.c.bf16 %v1484_v46, %v1483_v45  ;;  %v1813_v46 = vld [vmem:[#allocation8 + $0x3c8] sm:$0xff] }
 0x2e4   : > { %5405 = vmatprep.mubr.f32.mxu0 %v1507_v20  ;;  %v1812_v45 = vld [vmem:[#allocation8 + $0x3c0] sm:$0xff] }
 0x2e5   : > { %5406 = vmatmul.mubr.f32.gmra.mrb[6].mxu0 %v1508_v21 }
 0x2e6   : > { %6519 = vmatpush3.bf16.msra.mxu0 %v6516_v16  ;;  %5440 = vmatprep.mubr.f32.mxu0 %v1442_v4  ;;  %v1681_v4 = vld [vmem:[#allocation2 + $0x12] sm:$0xff]  ;;  %v1805_v16 = vld [vmem:[#allocation8 + $0x388] sm:$0xff] }
 0x2e7   : > { %6521 = vmatprep.subr.bf16.mxu0 %v6520_v22  ;;  %v6608_v17 = vpack.c.bf16 %v1805_v16, %v1804_v15  ;;  %v1835_v16 = vld [vmem:[#allocation8 + $0x470] sm:$0xff] }
 0x2ea   : > { %6523 = vmatpush3.bf16.msra.mxu0 %v6520_v22 }
 0x2eb   : > { %6525 = vmatprep.subr.bf16.mxu0 %v6524_v25 }
 0x2ee   : > { %6527 = vmatpush3.bf16.msra.mxu0 %v6524_v25 }
 0x2ef   : > { %6529 = vmatprep.subr.bf16.mxu0 %v6528_v28 }
 0x2f2   : > { %6531 = vmatpush3.bf16.msra.mxu0 %v6528_v28 }
 0x2f3   : > { %6533 = vmatprep.subr.bf16.mxu0 %v6532_v31 }
 0x2f6   : > { %6535 = vmatpush3.bf16.msra.mxu0 %v6532_v31  ;;  %v1806_v31 = vld [vmem:[#allocation8 + $0x390] sm:$0xff] }
 0x2f7   : > { %6537 = vmatprep.subr.bf16.mxu0 %v6536_v36 }
 0x2fa   : > { %6539 = vmatpush3.bf16.msra.mxu0 %v6536_v36  ;;  %v1808_v36 = vld [vmem:[#allocation8 + $0x3a0] sm:$0xff] }
 0x2fb   : > { %6541 = vmatprep.subr.bf16.mxu0 %v6540_v41 }
 0x2fe   : > { %6543 = vmatpush3.bf16.msra.mxu0 %v6540_v41  ;;  %v6616_v41 = vpack.c.bf16 %v1809_v37, %v1808_v36 }
 0x2ff   : > { %6545 = vmatprep.subr.bf16.mxu0 %v6544_v44 }
 0x301   : > { %5441 = vmatmul.mubr.f32.vlgmr.msra.gmra.mrb[4].mxu0 %v1443_v3  ;;  %v1680_v3 = vld [vmem:[#allocation2 + $0xa] sm:$0xff] }
 0x302   : > { %5443 = vmatprep.mubr.f32.mxu0 %v1444_v11  ;;  %6547 = vmatpush3.bf16.msra.mxu0 %v6544_v44  ;;  %v6620_v44 = vpack.c.bf16 %v1811_v43, %v1810_v42  ;;  %v2222_v43 = vld [vmem:[#allocation8 + $0x490] sm:$0xff] }
 0x303   : > { %6549 = vmatprep.subr.bf16.mxu0 %v6548_v47 }
 0x305   : > { %5444 = vmatmul.mubr.f32.gmra.mrb[6].mxu0 %v1445_v10  ;;  %v1800_v10 = vld [vmem:[#allocation8 + $0x368] sm:$0xff] }
 0x306   : > { %6551 = vmatpush3.bf16.msra.mxu0 %v6548_v47  ;;  %5478 = vmatprep.mubr.f32.mxu0 %v1679_v53  ;;  %v6600_v11 = vpack.c.bf16 %v1800_v10, %v1799_v9  ;;  %v6624_v47 = vpack.c.bf16 %v1813_v46, %v1812_v45  ;;  %v6632_v53 = vpack.c.bf16 %v1817_v52, %v1816_v51  ;;  %v1831_v10 = vld [vmem:[#allocation8 + $0x450] sm:$0xff]  ;;  %v2227_v51 = vld [vmem:[#allocation8 + $0x4b8] sm:$0xff] }
 0x307   : > { %6553 = vmatprep.subr.bf16.mxu0 %v6552_v50  ;;  %v6656_v9 = vpack.c.bf16 %v1830_v8, %v1829_v7  ;;  %v2520_v7 = vld [vmem:[#allocation8 + $0x610] sm:$0xff] }
 0x308   : > { %6601 = vmatprep.subr.bf16.mxu1 %v6600_v11 }
 0x309   : > { %6603 = vmatpush3.bf16.msra.mxu1 %v6600_v11  ;;  %v1832_v11 = vld [vmem:[#allocation8 + $0x458] sm:$0xff] }
 0x30a   : > { %6555 = vmatpush3.bf16.msra.mxu0 %v6552_v50  ;;  %6605 = vmatprep.subr.bf16.mxu1 %v6604_v14  ;;  %v6628_v50 = vpack.c.bf16 %v1815_v49, %v1814_v48  ;;  %v6660_v12 = vpack.c.bf16 %v1832_v11, %v1831_v10  ;;  %v2225_v48 = vld [vmem:[#allocation8 + $0x4a8] sm:$0xff]  ;;  %v2522_v11 = vld [vmem:[#allocation8 + $0x620] sm:$0xff] }
 0x30b   : > { %6557 = vmatprep.subr.bf16.mxu0 %v6556_v54 }
 0x30d   : > { %6607 = vmatpush3.bf16.msra.mxu1 %v6604_v14  ;;  %v1834_v14 = vld [vmem:[#allocation8 + $0x468] sm:$0xff] }
 0x30e   : > { %6559 = vmatpush3.bf16.msra.mxu0 %v6556_v54  ;;  %6609 = vmatprep.subr.bf16.mxu1 %v6608_v17  ;;  %v1818_v54 = vld [vmem:[#allocation8 + $0x3f0] sm:$0xff]  ;;  %v6664_v15 = vpack.c.bf16 %v1834_v14, %v1833_v13 }
 0x30f   : > { %6561 = vmatprep.subr.bf16.mxu0 %v6560_v57  ;;  %v6636_v56 = vpack.c.bf16 %v1819_v55, %v1818_v54  ;;  %v2229_v54 = vld [vmem:[#allocation8 + $0x4c8] sm:$0xff]  ;;  %v2524_v14 = vld [vmem:[#allocation8 + $0x630] sm:$0xff] }
 0x312   : > { %6563 = vmatpush3.bf16.msra.mxu0 %v6560_v57  ;;  %v1821_v57 = vld [vmem:[#allocation8 + $0x400] sm:$0xff] }
 0x313   : > { %6565 = vmatprep.subr.bf16.mxu0 %v6564_v60  ;;  %v6640_v59 = vpack.c.bf16 %v1822_v58, %v1821_v57  ;;  %v2231_v57 = vld [vmem:[#allocation8 + $0x4d8] sm:$0xff] }
 0x316   : > { %6567 = vmatpush3.bf16.msra.mxu0 %v6564_v60  ;;  %v1823_v60 = vld [vmem:[#allocation8 + $0x410] sm:$0xff] }
 0x317   : > { %6569 = vmatprep.subr.bf16.mxu0 %v6568_v63  ;;  %v6644_v62 = vpack.c.bf16 %v1824_v61, %v1823_v60  ;;  %v2233_v60 = vld [vmem:[#allocation8 + $0x4e8] sm:$0xff] }
 0x31a   : > { %6571 = vmatpush3.bf16.msra.mxu0 %v6568_v63  ;;  %v1825_v63 = vld [vmem:[#allocation8 + $0x420] sm:$0xff] }
 0x31b   : > { %6573 = vmatprep.subr.bf16.mxu0 %v6572_v2  ;;  %v6648_v1 = vpack.c.bf16 %v1826_v0, %v1825_v63  ;;  %v2235_v63 = vld [vmem:[#allocation8 + $0x4f8] sm:$0xff] }
 0x31e   : > { %6575 = vmatpush3.bf16.msra.mxu0 %v6572_v2  ;;  %v1827_v2 = vld [vmem:[#allocation8 + $0x430] sm:$0xff] }
 0x321   : > { %5479 = vmatmul.mubr.f32.vlgmr.msra.gmra.mrb[4].mxu0 %v1680_v3  ;;  %v1828_v3 = vld [vmem:[#allocation8 + $0x438] sm:$0xff] }
 0x322   : > { %5481 = vmatprep.mubr.f32.mxu0 %v1681_v4  ;;  %v6652_v5 = vpack.c.bf16 %v1828_v3, %v1827_v2  ;;  %v2238_v2 = vld [vmem:[#allocation8 + $0x508] sm:$0xff] }
 0x325   : > { %5482 = vmatmul.mubr.f32.gmra.mrb[6].mxu0 %v7968_v19 }
 0x3f4   : > { %v5480_v19 = vpop.f32.mrb[4].mxu0 }
 0x3f5   : > { %v1779_v20 = vadd.f32 %v5480_v19, %v4537_v18  ;;  %v1749_v21 = vpop.f32.mrb[5].mxu0 }
 0x3f6   : > { %v1778_v22 = vadd.f32 %v4537_v18, %v1749_v21  ;;  %v2122_v21 = vlaneseq }
 0x3f7   : > { %v7977_v23 = vadd.f32 %v1779_v20, %v7933_v33  ;;  %v1807_v33 = vld [vmem:[#allocation8 + $0x398] sm:$0xff] }
 0x3f8   : > { %v1782_v24 = vadd.f32 %v1778_v22, %v7935_v34  ;;  %v5483_v25 = vpop.f32.mrb[6].mxu0  ;;  %v6612_v34 = vpack.c.bf16 %v1807_v33, %v1806_v31  ;;  %v2123_v22 = vshrl.u32 %v2122_v21, 7 }
 0x3f9   : > { %1841 = vst [vmem:[#allocation2 + $0x9] sm:$0xff] %v7977_v23  ;;  %v1781_v26 = vadd.f32 %v5483_v25, %v4537_v18  ;;  %v1759_v27 = vpop.f32.mrb[7].mxu0 }
 0x3fa   : > { %1840 = vst [vmem:[#allocation2 + $0x1] sm:$0xff] %v1782_v24  ;;  %v1780_v28 = vadd.f32 %v4537_v18, %v1759_v27  ;;  %v2127_v25 = vmul.u32 2, %v2123_v22 }
 0x3fb   : > { %v7982_v29 = vadd.f32 %v1781_v26, %v7939_v39 }
 0x3fc   : > { %v1784_v30 = vadd.f32 %v1780_v28, %v7941_v40 }
 0x3fd   : > { %1843 = vst [vmem:[#allocation2 + $0x19] sm:$0xff] %v7982_v29 }
 0x3fe   : > { %1842 = vst [vmem:[#allocation2 + $0x11] sm:$0xff] %v1784_v30 }
 0x401   : > { %v1845_v32 = vld [vmem:[#allocation2] sm:$0xff]  ;;  %v1846_v35 = vld [vmem:[#allocation2 + $0x8] sm:$0xff] }
 0x402   : > { %5516 = vmatprep.mubr.f32.mxu1 %v1845_v32  ;;  %2272 = vst [vmem:[#allocation2] sm:$0x1] %v7642_v6  ;;  %v2019_v4 = vld [vmem:[#allocation2 + $0x2] sm:$0xff] }
 0x403   : > { %5517 = vmatmul.mubr.f32.vlgmr.msra.gmra.mrb[4].mxu1 %v1846_v35 }
 0x404   : > { %6611 = vmatpush3.bf16.msra.mxu1 %v6608_v17  ;;  %v1836_v17 = vld [vmem:[#allocation8 + $0x478] sm:$0xff]  ;;  %v2022_v20 = vld [vmem:[#allocation2 + $0x1a] sm:$0xff] }
 0x405   : > { %v1847_v38 = vld [vmem:[#allocation2 + $0x10] sm:$0xff]  ;;  %6613 = vmatprep.subr.bf16.mxu1 %v6612_v34  ;;  %v1848_v39 = vld [vmem:[#allocation2 + $0x18] sm:$0xff]  ;;  %v6668_v18 = vpack.c.bf16 %v1836_v17, %v1835_v16 }
 0x406   : > { %v7987_v40 = vld [vmem:[#allocation2 + $0xa] sm:$0xff]  ;;  %5519 = vmatprep.mubr.f32.mxu1 %v1847_v38  ;;  %v2021_v19 = vld [vmem:[#allocation2 + $0x12] sm:$0xff]  ;;  %v2220_v38 = vld [vmem:[#allocation8 + $0x480] sm:$0xff] }
 0x407   : > { %2275 = vst [vmem:[#allocation2 + $0x11] sm:$0x1] %v7642_v6  ;;  %5520 = vmatmul.mubr.f32.gmra.mrb[6].mxu1 %v1848_v39  ;;  %v2221_v39 = vld [vmem:[#allocation8 + $0x488] sm:$0xff]  ;;  %v2526_v17 = vld [vmem:[#allocation8 + $0x640] sm:$0xff] }
 0x408   : > { %6615 = vmatpush3.bf16.msra.mxu1 %v6612_v34  ;;  %5554 = vmatprep.mubr.f32.mxu1 %v1782_v24  ;;  %v2126_v24 = vand.u32 127, %v2122_v21  ;;  %v6680_v42 = vpack.c.bf16 %v2221_v39, %v2220_v38  ;;  %v2246_v38 = vld [vmem:[#allocation8 + $0x548] sm:$0xff] }
 0x409   : > { %6617 = vmatprep.subr.bf16.mxu1 %v6616_v41 }
 0x40a   : > { %vm2129_vm1 = vcmp.eq.s32.totalorder %v2126_v24, %v2127_v25  ;;  %v2240_v25 = vld [vmem:[#allocation8 + $0x518] sm:$0xff] }
 0x40b   : > { %v7998_v28 = vsel %vm2129_vm1, 1.0, %v7642_v6 }
 0x40c   : > { %6619 = vmatpush3.bf16.msra.mxu1 %v6616_v41  ;;  %5606 = vmatprep.mubr.msk.f32.mxu0 %vm2135_vm2, %v7998_v28 }
 0x40d   : > { %6621 = vmatprep.subr.bf16.mxu1 %v6620_v44 }
 0x410   : > { %6623 = vmatpush3.bf16.msra.mxu1 %v6620_v44  ;;  %v2223_v44 = vld [vmem:[#allocation8 + $0x498] sm:$0xff] }
 0x411   : > { %6625 = vmatprep.subr.bf16.mxu1 %v6624_v47  ;;  %v6684_v46 = vpack.c.bf16 %v2223_v44, %v2222_v43  ;;  %v2249_v43 = vld [vmem:[#allocation8 + $0x560] sm:$0xff]  ;;  %v2250_v44 = vld [vmem:[#allocation8 + $0x568] sm:$0xff] }
 0x414   : > { %6627 = vmatpush3.bf16.msra.mxu1 %v6624_v47  ;;  %v2224_v47 = vld [vmem:[#allocation8 + $0x4a0] sm:$0xff] }
 0x415   : > { %6629 = vmatprep.subr.bf16.mxu1 %v6628_v50  ;;  %v6688_v49 = vpack.c.bf16 %v2225_v48, %v2224_v47  ;;  %v2252_v47 = vld [vmem:[#allocation8 + $0x578] sm:$0xff] }
 0x418   : > { %6631 = vmatpush3.bf16.msra.mxu1 %v6628_v50  ;;  %v2226_v50 = vld [vmem:[#allocation8 + $0x4b0] sm:$0xff] }
 0x419   : > { %6633 = vmatprep.subr.bf16.mxu1 %v6632_v53  ;;  %v6692_v52 = vpack.c.bf16 %v2227_v51, %v2226_v50  ;;  %v2255_v50 = vld [vmem:[#allocation8 + $0x588] sm:$0xff] }
 0x41c   : > { %6635 = vmatpush3.bf16.msra.mxu1 %v6632_v53  ;;  %v2228_v53 = vld [vmem:[#allocation8 + $0x4c0] sm:$0xff] }
 0x41d   : > { %6637 = vmatprep.subr.bf16.mxu1 %v6636_v56  ;;  %v6696_v55 = vpack.c.bf16 %v2229_v54, %v2228_v53  ;;  %v2257_v53 = vld [vmem:[#allocation8 + $0x598] sm:$0xff] }
 0x420   : > { %6639 = vmatpush3.bf16.msra.mxu1 %v6636_v56  ;;  %v2230_v56 = vld [vmem:[#allocation8 + $0x4d0] sm:$0xff] }
 0x421   : > { %6641 = vmatprep.subr.bf16.mxu1 %v6640_v59  ;;  %v6700_v58 = vpack.c.bf16 %v2231_v57, %v2230_v56  ;;  %v2259_v56 = vld [vmem:[#allocation8 + $0x5a8] sm:$0xff] }
 0x423   : > { %5555 = vmatmul.mubr.f32.vlgmr.msra.gmra.mrb[4].mxu1 %v7977_v23  ;;  %v2124_v23 = vadd.s32 8, %v2123_v22 }
 0x424   : > { %5557 = vmatprep.mubr.f32.mxu1 %v1784_v30  ;;  %6643 = vmatpush3.bf16.msra.mxu1 %v6640_v59  ;;  %v2232_v59 = vld [vmem:[#allocation8 + $0x4e0] sm:$0xff] }
 0x425   : > { %6645 = vmatprep.subr.bf16.mxu1 %v6644_v62  ;;  %v2128_v26 = vmul.u32 2, %v2124_v23  ;;  %v6704_v61 = vpack.c.bf16 %v2233_v60, %v2232_v59  ;;  %v2260_v59 = vld [vmem:[#allocation8 + $0x5b0] sm:$0xff]  ;;  %v2261_v60 = vld [vmem:[#allocation8 + $0x5b8] sm:$0xff] }
 0x427   : > { %5558 = vmatmul.mubr.f32.gmra.mrb[6].mxu1 %v7982_v29  ;;  %vm7993_vm3 = vcmp.eq.s32.totalorder %v2126_v24, %v2128_v26  ;;  %v4538_v29 = vld [vmem:[#allocation9 + $0x2] ss:$0 sm:$0xff]  ;;  %v2239_v24 = vld [vmem:[#allocation8 + $0x510] sm:$0xff] }
 0x428   : > { %6647 = vmatpush3.bf16.msra.mxu1 %v6644_v62  ;;  %5592 = vmatprep.mubr.f32.mxu1 %v2019_v4  ;;  %v4540_v45 = vsel %vm7993_vm3, 1.0, %v7642_v6  ;;  %v2234_v62 = vld [vmem:[#allocation8 + $0x4f0] sm:$0xff]  ;;  %v2518_v4 = vld [vmem:[#allocation8 + $0x600] sm:$0xff] }
 0x429   : > { %6649 = vmatprep.subr.bf16.mxu1 %v6648_v1  ;;  %v6708_v0 = vpack.c.bf16 %v2235_v63, %v2234_v62  ;;  %v2262_v62 = vld [vmem:[#allocation8 + $0x5c0] sm:$0xff]  ;;  %v2263_v63 = vld [vmem:[#allocation8 + $0x5c8] sm:$0xff] }
 0x42c   : > { %6651 = vmatpush3.bf16.msra.mxu1 %v6648_v1  ;;  %v2237_v1 = vld [vmem:[#allocation8 + $0x500] sm:$0xff] }
 0x42d   : > { %6653 = vmatprep.subr.bf16.mxu1 %v6652_v5  ;;  %v6712_v3 = vpack.c.bf16 %v2238_v2, %v2237_v1  ;;  %v2264_v1 = vld [vmem:[#allocation8 + $0x5d0] sm:$0xff]  ;;  %v2265_v2 = vld [vmem:[#allocation8 + $0x5d8] sm:$0xff] }
 0x430   : > { %6655 = vmatpush3.bf16.msra.mxu1 %v6652_v5  ;;  %v2519_v5 = vld [vmem:[#allocation8 + $0x608] sm:$0xff] }
 0x431   : > { %6657 = vmatprep.subr.bf16.mxu1 %v6656_v9  ;;  %v6776_v8 = vpack.c.bf16 %v2519_v5, %v2518_v4  ;;  %v2266_v4 = vld [vmem:[#allocation8 + $0x5e0] sm:$0xff]  ;;  %v2267_v5 = vld [vmem:[#allocation8 + $0x5e8] sm:$0xff] }
 0x434   : > { %6659 = vmatpush3.bf16.msra.mxu1 %v6656_v9  ;;  %v2521_v9 = vld [vmem:[#allocation8 + $0x618] sm:$0xff] }
 0x435   : > { %6661 = vmatprep.subr.bf16.mxu1 %v6660_v12  ;;  %v6780_v10 = vpack.c.bf16 %v2521_v9, %v2520_v7  ;;  %v6768_v7 = vpack.c.bf16 %v2267_v5, %v2266_v4  ;;  %v2269_v9 = vld [vmem:[#allocation8 + $0x5f8] sm:$0xff]  ;;  %v2549_v5 = vld [vmem:[#allocation8 + $0x6f0] sm:$0xff] }
 0x438   : > { %6663 = vmatpush3.bf16.msra.mxu1 %v6660_v12  ;;  %v2523_v12 = vld [vmem:[#allocation8 + $0x628] sm:$0xff] }
 0x439   : > { %6665 = vmatprep.subr.bf16.mxu1 %v6664_v15  ;;  %v6784_v13 = vpack.c.bf16 %v2523_v12, %v2522_v11  ;;  %v2528_v11 = vld [vmem:[#allocation8 + $0x650] sm:$0xff]  ;;  %v2529_v12 = vld [vmem:[#allocation8 + $0x658] sm:$0xff] }
 0x43c   : > { %6667 = vmatpush3.bf16.msra.mxu1 %v6664_v15  ;;  %v2525_v15 = vld [vmem:[#allocation8 + $0x638] sm:$0xff] }
 0x43d   : > { %6669 = vmatprep.subr.bf16.mxu1 %v6668_v18  ;;  %v6788_v16 = vpack.c.bf16 %v2525_v15, %v2524_v14  ;;  %v2530_v14 = vld [vmem:[#allocation8 + $0x660] sm:$0xff]  ;;  %v2531_v15 = vld [vmem:[#allocation8 + $0x668] sm:$0xff] }
 0x440   : > { %6671 = vmatpush3.bf16.msra.mxu1 %v6668_v18  ;;  %v2527_v18 = vld [vmem:[#allocation8 + $0x648] sm:$0xff] }
 0x441   : > { %6777 = vmatprep.subr.bf16.mxu1 %v6776_v8 }
 0x443   : > { %5593 = vmatmul.mubr.f32.vlgmr.msra.gmra.mrb[4].mxu1 %v7987_v40 }
 0x444   : > { %5595 = vmatprep.mubr.f32.mxu1 %v2021_v19  ;;  %6779 = vmatpush3.bf16.msra.mxu1 %v6776_v8  ;;  %v6792_v19 = vpack.c.bf16 %v2527_v18, %v2526_v17  ;;  %v2268_v8 = vld [vmem:[#allocation8 + $0x5f0] sm:$0xff]  ;;  %v2533_v18 = vld [vmem:[#allocation8 + $0x678] sm:$0xff] }
 0x445   : > { %6781 = vmatprep.subr.bf16.mxu1 %v6780_v10  ;;  %v2532_v17 = vld [vmem:[#allocation8 + $0x670] sm:$0xff] }
 0x447   : > { %5596 = vmatmul.mubr.f32.gmra.mrb[6].mxu1 %v2022_v20 }
 0x448   : > { %6783 = vmatpush3.bf16.msra.mxu1 %v6780_v10  ;;  %v6772_v10 = vpack.c.bf16 %v2269_v9, %v2268_v8  ;;  %v2552_v9 = vld [vmem:[#allocation8 + $0x700] sm:$0xff] }
 0x449   : > { %6785 = vmatprep.subr.bf16.mxu1 %v6784_v13 }
 0x44c   : > { %6787 = vmatpush3.bf16.msra.mxu1 %v6784_v13  ;;  %v6796_v13 = vpack.c.bf16 %v2529_v12, %v2528_v11  ;;  %v2554_v12 = vld [vmem:[#allocation8 + $0x710] sm:$0xff] }
 0x44d   : > { %6789 = vmatprep.subr.bf16.mxu1 %v6788_v16 }
 0x450   : > { %6791 = vmatpush3.bf16.msra.mxu1 %v6788_v16  ;;  %v6800_v16 = vpack.c.bf16 %v2531_v15, %v2530_v14  ;;  %v2556_v15 = vld [vmem:[#allocation8 + $0x720] sm:$0xff] }
 0x451   : > { %6793 = vmatprep.subr.bf16.mxu1 %v6792_v19 }
 0x454   : > { %6795 = vmatpush3.bf16.msra.mxu1 %v6792_v19  ;;  %v6804_v19 = vpack.c.bf16 %v2533_v18, %v2532_v17 }
 0x455   : > { %6797 = vmatprep.subr.bf16.mxu1 %v6796_v13 }
 0x458   : > { %6799 = vmatpush3.bf16.msra.mxu1 %v6796_v13  ;;  %v2555_v13 = vld [vmem:[#allocation8 + $0x718] sm:$0xff] }
 0x459   : > { %6801 = vmatprep.subr.bf16.mxu1 %v6800_v16  ;;  %v6844_v14 = vpack.c.bf16 %v2555_v13, %v2554_v12  ;;  %v2847_v12 = vld [vmem:[#allocation8 + $0x870] sm:$0xff]  ;;  %v2848_v13 = vld [vmem:[#allocation8 + $0x878] sm:$0xff] }
 0x45c   : > { %6803 = vmatpush3.bf16.msra.mxu1 %v6800_v16  ;;  %v2557_v16 = vld [vmem:[#allocation8 + $0x728] sm:$0xff] }
 0x45d   : > { %6805 = vmatprep.subr.bf16.mxu1 %v6804_v19  ;;  %v6848_v18 = vpack.c.bf16 %v2557_v16, %v2556_v15  ;;  %v2850_v15 = vld [vmem:[#allocation8 + $0x880] sm:$0xff]  ;;  %v2851_v16 = vld [vmem:[#allocation8 + $0x888] sm:$0xff] }
 0x460   : > { %6807 = vmatpush3.bf16.msra.mxu1 %v6804_v19  ;;  %v2558_v19 = vld [vmem:[#allocation8 + $0x730] sm:$0xff] }
 0x516   : > { %v5594_v30 = vpop.f32.mrb[4].mxu1 }
 0x517   : > { %v2119_v31 = vadd.f32 %v5594_v30, %v4538_v29  ;;  %v2089_v33 = vpop.f32.mrb[5].mxu1  ;;  %v6716_v30 = vpack.c.bf16 %v2240_v25, %v2239_v24  ;;  %v2816_v25 = vld [vmem:[#allocation8 + $0x780] sm:$0xff] }
 0x518   : > { %v2118_v32 = vadd.f32 %v4538_v29, %v2089_v33  ;;  %v2242_v33 = vld [vmem:[#allocation8 + $0x528] sm:$0xff] }
 0x51a   : > { %v6672_v35 = vpack.c.bf16 %v2119_v31, %v2118_v32  ;;  %v5597_v34 = vpop.f32.mrb[6].mxu1  ;;  %v2241_v31 = vld [vmem:[#allocation8 + $0x520] sm:$0xff] }
 0x51b   : > { %v2121_v36 = vadd.f32 %v5597_v34, %v4538_v29  ;;  %v2099_v37 = vpop.f32.mrb[7].mxu1  ;;  %v6720_v32 = vpack.c.bf16 %v2242_v33, %v2241_v31  ;;  %v2244_v34 = vld [vmem:[#allocation8 + $0x538] sm:$0xff]  ;;  %v2820_v33 = vld [vmem:[#allocation8 + $0x7a0] sm:$0xff] }
 0x51c   : > { %v2120_v41 = vadd.f32 %v4538_v29, %v2099_v37  ;;  %6673 = vmatprep.subr.bf16.mxu0 %v6672_v35  ;;  %v2245_v37 = vld [vmem:[#allocation8 + $0x540] sm:$0xff] }
 0x51d   : > { %6675 = vmatpush3.bf16.msra.mxu0 %v6672_v35  ;;  %v2243_v35 = vld [vmem:[#allocation8 + $0x530] sm:$0xff]  ;;  %v6728_v39 = vpack.c.bf16 %v2246_v38, %v2245_v37  ;;  %v2824_v38 = vld [vmem:[#allocation8 + $0x7c0] sm:$0xff] }
 0x51e   : > { %v6676_v40 = vpack.c.bf16 %v2121_v36, %v2120_v41  ;;  %v6724_v36 = vpack.c.bf16 %v2244_v34, %v2243_v35  ;;  %v2247_v41 = vld [vmem:[#allocation8 + $0x550] sm:$0xff] }
 0x51f   : > { %v2822_v34 = vld [vmem:[#allocation8 + $0x7b0] sm:$0xff] }
 0x520   : > { %6677 = vmatprep.subr.bf16.mxu0 %v6676_v40 }
 0x521   : > { %6679 = vmatpush3.bf16.msra.mxu0 %v6676_v40  ;;  %v2248_v40 = vld [vmem:[#allocation8 + $0x558] sm:$0xff] }
 0x522   : > { %6681 = vmatprep.subr.bf16.mxu0 %v6680_v42 }
 0x524   : > { %5607 = vmatmul.mubr.msk.f32.vlgmr.msra.gmra.mrb[8].mxu0 %vm2135_vm2, %v4540_v45  ;;  %v6736_v45 = vpack.c.bf16 %v2250_v44, %v2249_v43 }
 0x525   : > { %6683 = vmatpush3.bf16.msra.mxu0 %v6680_v42  ;;  %v6732_v42 = vpack.c.bf16 %v2248_v40, %v2247_v41  ;;  %v4543_v40 = vld [vmem:[#allocation9 + $0x3] ss:$0 sm:$0xff] }
 0x526   : > { %6685 = vmatprep.subr.bf16.mxu0 %v6684_v46 }
 0x529   : > { %6687 = vmatpush3.bf16.msra.mxu0 %v6684_v46  ;;  %v2251_v46 = vld [vmem:[#allocation8 + $0x570] sm:$0xff] }
 0x52a   : > { %6689 = vmatprep.subr.bf16.mxu0 %v6688_v49  ;;  %v6740_v48 = vpack.c.bf16 %v2252_v47, %v2251_v46 }
 0x52d   : > { %6691 = vmatpush3.bf16.msra.mxu0 %v6688_v49  ;;  %v2254_v49 = vld [vmem:[#allocation8 + $0x580] sm:$0xff] }
 0x52e   : > { %6693 = vmatprep.subr.bf16.mxu0 %v6692_v52  ;;  %v6744_v51 = vpack.c.bf16 %v2255_v50, %v2254_v49  ;;  %v2538_v49 = vld [vmem:[#allocation8 + $0x698] sm:$0xff] }
 0x531   : > { %6695 = vmatpush3.bf16.msra.mxu0 %v6692_v52  ;;  %v2256_v52 = vld [vmem:[#allocation8 + $0x590] sm:$0xff] }
 0x532   : > { %6697 = vmatprep.subr.bf16.mxu0 %v6696_v55  ;;  %v6748_v54 = vpack.c.bf16 %v2257_v53, %v2256_v52 }
 0x535   : > { %6699 = vmatpush3.bf16.msra.mxu0 %v6696_v55  ;;  %v2258_v55 = vld [vmem:[#allocation8 + $0x5a0] sm:$0xff] }
 0x536   : > { %6701 = vmatprep.subr.bf16.mxu0 %v6700_v58 }
 0x539   : > { %6703 = vmatpush3.bf16.msra.mxu0 %v6700_v58  ;;  %v6752_v58 = vpack.c.bf16 %v2259_v56, %v2258_v55  ;;  %v2540_v55 = vld [vmem:[#allocation8 + $0x6a8] sm:$0xff] }
 0x53a   : > { %6705 = vmatprep.subr.bf16.mxu0 %v6704_v61 }
 0x53d   : > { %6707 = vmatpush3.bf16.msra.mxu0 %v6704_v61  ;;  %v6756_v61 = vpack.c.bf16 %v2261_v60, %v2260_v59  ;;  %v2543_v60 = vld [vmem:[#allocation8 + $0x6c0] sm:$0xff] }
 0x53e   : > { %6709 = vmatprep.subr.bf16.mxu0 %v6708_v0 }
 0x541   : > { %6711 = vmatpush3.bf16.msra.mxu0 %v6708_v0  ;;  %v6760_v0 = vpack.c.bf16 %v2263_v63, %v2262_v62  ;;  %v2545_v63 = vld [vmem:[#allocation8 + $0x6d0] sm:$0xff] }
 0x542   : > { %6713 = vmatprep.subr.bf16.mxu0 %v6712_v3 }
 0x5f7   : > { %v5608_v20 = vpop.f32.mrb[8].mxu0 }
 0x5f8   : > { %v8006_v21 = vmax.f32 %v5608_v20, 0.0  ;;  %v2208_v22 = vpop.f32.mrb[9].mxu0  ;;  %v2535_v20 = vld [vmem:[#allocation8 + $0x680] sm:$0xff] }
 0x5f9   : > { %v8008_v23 = vmax.f32 %v2208_v22, 0.0  ;;  %v2536_v22 = vld [vmem:[#allocation8 + $0x688] sm:$0xff] }
 0x5fa   : > { %2274 = vst [vmem:[#allocation2 + $0x9] sm:$0xff] %v8006_v21  ;;  %v6808_v24 = vpack.c.bf16 %v2536_v22, %v2535_v20  ;;  %v2559_v20 = vld [vmem:[#allocation8 + $0x738] sm:$0xff] }
 0x5fb   : > { %2273 = vst [vmem:[#allocation2 + $0x1] sm:$0xff] %v8008_v23  ;;  %v6852_v22 = vpack.c.bf16 %v2559_v20, %v2558_v19  ;;  %v2853_v19 = vld [vmem:[#allocation8 + $0x898] sm:$0xff] }
 0x5fc   : > { %6809 = vmatprep.subr.bf16.mxu1 %v6808_v24 }
 0x601   : > { %v8012_v26 = vld [vmem:[#allocation2 + $0xa] sm:$0xff] }
 0x602   : > { %v2276_v27 = vld [vmem:[#allocation2] sm:$0xff]  ;;  %v2277_v29 = vld [vmem:[#allocation2 + $0x8] sm:$0xff]  ;;  %2573 = vst [vmem:[#allocation2 + $0x11] sm:$0x1] %v7642_v6 }
 0x603   : > { %5641 = vmatprep.mubr.f32.mxu0 %v2276_v27  ;;  %2570 = vst [vmem:[#allocation2] sm:$0x1] %v7642_v6  ;;  %v2428_v57 = vld [vmem:[#allocation2 + $0x2] sm:$0xff]  ;;  %v2818_v27 = vld [vmem:[#allocation8 + $0x790] sm:$0xff] }
 0x604   : > { %5642 = vmatmul.mubr.f32.vlgmr.msra.gmra.mrb[10].mxu0 %v2277_v29 }
 0x605   : > { %6715 = vmatpush3.bf16.msra.mxu0 %v6712_v3  ;;  %5676 = vmatprep.mubr.f32.mxu0 %v8008_v23  ;;  %v6764_v3 = vpack.c.bf16 %v2265_v2, %v2264_v1  ;;  %v2547_v2 = vld [vmem:[#allocation8 + $0x6e0] sm:$0xff] }
 0x606   : > { %6717 = vmatprep.subr.bf16.mxu0 %v6716_v30 }
 0x609   : > { %6719 = vmatpush3.bf16.msra.mxu0 %v6716_v30  ;;  %v2819_v30 = vld [vmem:[#allocation8 + $0x798] sm:$0xff] }
 0x60a   : > { %6721 = vmatprep.subr.bf16.mxu0 %v6720_v32  ;;  %v6876_v31 = vpack.c.bf16 %v2819_v30, %v2818_v27  ;;  %v2562_v27 = vld [vmem:[#allocation8 + $0x750] sm:$0xff] }
 0x60d   : > { %6723 = vmatpush3.bf16.msra.mxu0 %v6720_v32  ;;  %v2821_v32 = vld [vmem:[#allocation8 + $0x7a8] sm:$0xff] }
 0x60e   : > { %6725 = vmatprep.subr.bf16.mxu0 %v6724_v36  ;;  %v6880_v35 = vpack.c.bf16 %v2821_v32, %v2820_v33  ;;  %v2565_v33 = vld [vmem:[#allocation8 + $0x768] sm:$0xff] }
 0x611   : > { %6727 = vmatpush3.bf16.msra.mxu0 %v6724_v36  ;;  %v2823_v36 = vld [vmem:[#allocation8 + $0x7b8] sm:$0xff] }
 0x612   : > { %6729 = vmatprep.subr.bf16.mxu0 %v6728_v39  ;;  %v6884_v37 = vpack.c.bf16 %v2823_v36, %v2822_v34  ;;  %v2567_v34 = vld [vmem:[#allocation8 + $0x778] sm:$0xff] }
 0x615   : > { %6731 = vmatpush3.bf16.msra.mxu0 %v6728_v39  ;;  %v2825_v39 = vld [vmem:[#allocation8 + $0x7c8] sm:$0xff] }
 0x616   : > { %6733 = vmatprep.subr.bf16.mxu0 %v6732_v42  ;;  %v6888_v41 = vpack.c.bf16 %v2825_v39, %v2824_v38  ;;  %v2827_v38 = vld [vmem:[#allocation8 + $0x7d8] sm:$0xff] }
 0x619   : > { %6735 = vmatpush3.bf16.msra.mxu0 %v6732_v42 }
 0x61a   : > { %6737 = vmatprep.subr.bf16.mxu0 %v6736_v45 }
 0x61d   : > { %6739 = vmatpush3.bf16.msra.mxu0 %v6736_v45 }
 0x61e   : > { %6741 = vmatprep.subr.bf16.mxu0 %v6740_v48 }
 0x621   : > { %6743 = vmatpush3.bf16.msra.mxu0 %v6740_v48  ;;  %v2537_v48 = vld [vmem:[#allocation8 + $0x690] sm:$0xff] }
 0x622   : > { %6745 = vmatprep.subr.bf16.mxu0 %v6744_v51  ;;  %v6812_v53 = vpack.c.bf16 %v2538_v49, %v2537_v48  ;;  %v4544_v49 = vld [vmem:[#allocation9 + $0x4] ss:$0 sm:$0xff] }
 0x624   : > { %5677 = vmatmul.mubr.f32.vlgmr.msra.gmra.mrb[10].mxu0 %v8006_v21 }
 0x625   : > { %6747 = vmatpush3.bf16.msra.mxu0 %v6744_v51  ;;  %5711 = vmatprep.mubr.f32.mxu0 %v2428_v57  ;;  %v2541_v57 = vld [vmem:[#allocation8 + $0x6b0] sm:$0xff] }
 0x626   : > { %6749 = vmatprep.subr.bf16.mxu0 %v6748_v54 }
 0x629   : > { %6751 = vmatpush3.bf16.msra.mxu0 %v6748_v54  ;;  %v2539_v54 = vld [vmem:[#allocation8 + $0x6a0] sm:$0xff] }
 0x62a   : > { %6753 = vmatprep.subr.bf16.mxu0 %v6752_v58  ;;  %v6816_v56 = vpack.c.bf16 %v2540_v55, %v2539_v54 }
 0x62d   : > { %6755 = vmatpush3.bf16.msra.mxu0 %v6752_v58  ;;  %v2542_v58 = vld [vmem:[#allocation8 + $0x6b8] sm:$0xff] }
 0x62e   : > { %6757 = vmatprep.subr.bf16.mxu0 %v6756_v61  ;;  %v6820_v59 = vpack.c.bf16 %v2542_v58, %v2541_v57  ;;  %v2836_v57 = vld [vmem:[#allocation8 + $0x818] sm:$0xff] }
 0x631   : > { %6759 = vmatpush3.bf16.msra.mxu0 %v6756_v61  ;;  %v2544_v61 = vld [vmem:[#allocation8 + $0x6c8] sm:$0xff] }
 0x632   : > { %6761 = vmatprep.subr.bf16.mxu0 %v6760_v0  ;;  %v6824_v62 = vpack.c.bf16 %v2544_v61, %v2543_v60 }
 0x635   : > { %6763 = vmatpush3.bf16.msra.mxu0 %v6760_v0  ;;  %v2546_v0 = vld [vmem:[#allocation8 + $0x6d8] sm:$0xff] }
 0x636   : > { %6765 = vmatprep.subr.bf16.mxu0 %v6764_v3  ;;  %v6828_v1 = vpack.c.bf16 %v2546_v0, %v2545_v63  ;;  %v2838_v63 = vld [vmem:[#allocation8 + $0x828] sm:$0xff]  ;;  %v2840_v0 = vld [vmem:[#allocation8 + $0x838] sm:$0xff] }
 0x639   : > { %6767 = vmatpush3.bf16.msra.mxu0 %v6764_v3  ;;  %v2548_v3 = vld [vmem:[#allocation8 + $0x6e8] sm:$0xff] }
 0x63a   : > { %6769 = vmatprep.subr.bf16.mxu0 %v6768_v7  ;;  %v6832_v4 = vpack.c.bf16 %v2548_v3, %v2547_v2  ;;  %v2841_v2 = vld [vmem:[#allocation8 + $0x840] sm:$0xff]  ;;  %v2842_v3 = vld [vmem:[#allocation8 + $0x848] sm:$0xff] }
 0x63d   : > { %6771 = vmatpush3.bf16.msra.mxu0 %v6768_v7  ;;  %v2550_v7 = vld [vmem:[#allocation8 + $0x6f8] sm:$0xff] }
 0x63e   : > { %6773 = vmatprep.subr.bf16.mxu0 %v6772_v10  ;;  %v6836_v8 = vpack.c.bf16 %v2550_v7, %v2549_v5  ;;  %v2843_v5 = vld [vmem:[#allocation8 + $0x850] sm:$0xff]  ;;  %v2844_v7 = vld [vmem:[#allocation8 + $0x858] sm:$0xff] }
 0x641   : > { %6775 = vmatpush3.bf16.msra.mxu0 %v6772_v10  ;;  %v2553_v10 = vld [vmem:[#allocation8 + $0x708] sm:$0xff] }
 0x642   : > { %v6840_v11 = vpack.c.bf16 %v2553_v10, %v2552_v9  ;;  %v2845_v9 = vld [vmem:[#allocation8 + $0x860] sm:$0xff]  ;;  %v2846_v10 = vld [vmem:[#allocation8 + $0x868] sm:$0xff] }
 0x644   : > { %5712 = vmatmul.mubr.f32.vlgmr.msra.gmra.mrb[10].mxu0 %v8012_v26  ;;  %v2817_v26 = vld [vmem:[#allocation8 + $0x788] sm:$0xff] }
 0x645   : > { %v6872_v29 = vpack.c.bf16 %v2817_v26, %v2816_v25  ;;  %v2561_v25 = vld [vmem:[#allocation8 + $0x748] sm:$0xff] }
 0x647   : > { %6873 = vmatprep.subr.bf16.mxu0 %v6872_v29 }
 0x648   : > { %6875 = vmatpush3.bf16.msra.mxu0 %v6872_v29  ;;  %v2563_v29 = vld [vmem:[#allocation8 + $0x758] sm:$0xff] }
 0x649   : > { %6877 = vmatprep.subr.bf16.mxu0 %v6876_v31  ;;  %v6860_v30 = vpack.c.bf16 %v2563_v29, %v2562_v27  ;;  %v2857_v27 = vld [vmem:[#allocation8 + $0x8b8] sm:$0xff] }
 0x64c   : > { %6879 = vmatpush3.bf16.msra.mxu0 %v6876_v31  ;;  %v2564_v31 = vld [vmem:[#allocation8 + $0x760] sm:$0xff] }
 0x64d   : > { %6881 = vmatprep.subr.bf16.mxu0 %v6880_v35  ;;  %v6864_v32 = vpack.c.bf16 %v2565_v33, %v2564_v31  ;;  %v2859_v31 = vld [vmem:[#allocation8 + $0x8c8] sm:$0xff] }
 0x650   : > { %6883 = vmatpush3.bf16.msra.mxu0 %v6880_v35  ;;  %v2566_v35 = vld [vmem:[#allocation8 + $0x770] sm:$0xff] }
 0x651   : > { %6885 = vmatprep.subr.bf16.mxu0 %v6884_v37  ;;  %v6868_v36 = vpack.c.bf16 %v2567_v34, %v2566_v35  ;;  %v2861_v35 = vld [vmem:[#allocation8 + $0x8d8] sm:$0xff] }
 0x654   : > { %6887 = vmatpush3.bf16.msra.mxu0 %v6884_v37  ;;  %v2826_v37 = vld [vmem:[#allocation8 + $0x7d0] sm:$0xff] }
 0x655   : > { %6889 = vmatprep.subr.bf16.mxu0 %v6888_v41  ;;  %v6892_v39 = vpack.c.bf16 %v2827_v38, %v2826_v37  ;;  %v2863_v37 = vld [vmem:[#allocation8 + $0x8e8] sm:$0xff] }
 0x658   : > { %6891 = vmatpush3.bf16.msra.mxu0 %v6888_v41  ;;  %v2828_v41 = vld [vmem:[#allocation8 + $0x7e0] sm:$0xff] }
 0x659   : > { %6893 = vmatprep.subr.bf16.mxu0 %v6892_v39 }
 0x65c   : > { %6895 = vmatpush3.bf16.msra.mxu0 %v6892_v39  ;;  %v2864_v39 = vld [vmem:[#allocation8 + $0x8f0] sm:$0xff] }
 0x717   : > { %v5713_v42 = vpop.f32.mrb[10].mxu0 }
 0x718   : > { %v2514_v43 = vadd.f32 %v5713_v42, %v4543_v40  ;;  %v2496_v44 = vpop.f32.mrb[11].mxu0 }
 0x719   : > { %v2513_v45 = vadd.f32 %v4543_v40, %v2496_v44  ;;  %v2829_v40 = vld [vmem:[#allocation8 + $0x7e8] sm:$0xff]  ;;  %v2831_v44 = vld [vmem:[#allocation8 + $0x7f8] sm:$0xff] }
 0x71a   : > { %v2516_v46 = vmax.f32 %v2514_v43, 0.0  ;;  %v6896_v42 = vpack.c.bf16 %v2829_v40, %v2828_v41  ;;  %v2830_v43 = vld [vmem:[#allocation8 + $0x7f0] sm:$0xff]  ;;  %v2865_v41 = vld [vmem:[#allocation8 + $0x8f8] sm:$0xff] }
 0x71b   : > { %v2515_v47 = vmax.f32 %v2513_v45, 0.0  ;;  %v6900_v45 = vpack.c.bf16 %v2831_v44, %v2830_v43  ;;  %v6964_v40 = vpack.c.bf16 %v2865_v41, %v2864_v39  ;;  %v7643_v43 = vmov 0.0|0.0   ;;  %v3185_v44 = vld [vmem:[#allocation8 + $0x900] sm:$0xff]  ;;  %v3203_v41 = vld [vmem:[#allocation8 + $0x988] sm:$0xff] }
 0x71c   : > { %2572 = vst [vmem:[#allocation2 + $0x9] sm:$0xff] %v2516_v46  ;;  %6897 = vmatprep.subr.bf16.mxu0 %v6896_v42  ;;  %v3202_v39 = vld [vmem:[#allocation8 + $0x980] sm:$0xff] }
 0x71d   : > { %2571 = vst [vmem:[#allocation2 + $0x1] sm:$0xff] %v2515_v47  ;;  %6899 = vmatpush3.bf16.msra.mxu0 %v6896_v42 }
 0x71e   : > { %6901 = vmatprep.subr.bf16.mxu0 %v6900_v45 }
 0x721   : > { %6903 = vmatpush3.bf16.msra.mxu0 %v6900_v45  ;;  %v3186_v45 = vld [vmem:[#allocation8 + $0x908] sm:$0xff] }
 0x723   : > { %v8019_v50 = vld [vmem:[#allocation2 + $0xa] sm:$0xff] }
 0x724   : > { %v2574_v51 = vld [vmem:[#allocation2] sm:$0xff]  ;;  %v2575_v52 = vld [vmem:[#allocation2 + $0x8] sm:$0xff]  ;;  %2871 = vst [vmem:[#allocation2 + $0x11] sm:$0x1] %v7642_v6 }
 0x725   : > { %5746 = vmatprep.mubr.f32.mxu1 %v2574_v51  ;;  %2868 = vst [vmem:[#allocation2] sm:$0x1] %v7642_v6  ;;  %v2726_v17 = vld [vmem:[#allocation2 + $0x2] sm:$0xff] }
 0x726   : > { %5747 = vmatmul.mubr.f32.vlgmr.msra.gmra.mrb[8].mxu1 %v2575_v52 }
 0x727   : > { %6811 = vmatpush3.bf16.msra.mxu1 %v6808_v24  ;;  %5781 = vmatprep.mubr.f32.mxu1 %v2515_v47  ;;  %v2560_v24 = vld [vmem:[#allocation8 + $0x740] sm:$0xff]  ;;  %v2834_v47 = vld [vmem:[#allocation8 + $0x808] sm:$0xff] }
 0x728   : > { %6813 = vmatprep.subr.bf16.mxu1 %v6812_v53  ;;  %v6856_v26 = vpack.c.bf16 %v2561_v25, %v2560_v24  ;;  %v2855_v24 = vld [vmem:[#allocation8 + $0x8a8] sm:$0xff] }
 0x72b   : > { %6815 = vmatpush3.bf16.msra.mxu1 %v6812_v53 }
 0x72c   : > { %6817 = vmatprep.subr.bf16.mxu1 %v6816_v56 }
 0x72f   : > { %6819 = vmatpush3.bf16.msra.mxu1 %v6816_v56  ;;  %v2835_v56 = vld [vmem:[#allocation8 + $0x810] sm:$0xff] }
 0x730   : > { %6821 = vmatprep.subr.bf16.mxu1 %v6820_v59  ;;  %v6908_v60 = vpack.c.bf16 %v2836_v57, %v2835_v56  ;;  %v3193_v56 = vld [vmem:[#allocation8 + $0x940] sm:$0xff]  ;;  %v3194_v57 = vld [vmem:[#allocation8 + $0x948] sm:$0xff] }
 0x733   : > { %6823 = vmatpush3.bf16.msra.mxu1 %v6820_v59 }
 0x734   : > { %6825 = vmatprep.subr.bf16.mxu1 %v6824_v62 }
 0x737   : > { %6827 = vmatpush3.bf16.msra.mxu1 %v6824_v62  ;;  %v2837_v62 = vld [vmem:[#allocation8 + $0x820] sm:$0xff] }
 0x738   : > { %6829 = vmatprep.subr.bf16.mxu1 %v6828_v1 }
 0x73b   : > { %6831 = vmatpush3.bf16.msra.mxu1 %v6828_v1 }
 0x73c   : > { %6833 = vmatprep.subr.bf16.mxu1 %v6832_v4 }
 0x73f   : > { %6835 = vmatpush3.bf16.msra.mxu1 %v6832_v4  ;;  %v6920_v4 = vpack.c.bf16 %v2842_v3, %v2841_v2  ;;  %v3220_v2 = vld [vmem:[#allocation8 + $0xa08] sm:$0xff] }
 0x740   : > { %6837 = vmatprep.subr.bf16.mxu1 %v6836_v8 }
 0x743   : > { %6839 = vmatpush3.bf16.msra.mxu1 %v6836_v8  ;;  %v6924_v8 = vpack.c.bf16 %v2844_v7, %v2843_v5  ;;  %v3221_v5 = vld [vmem:[#allocation8 + $0xa10] sm:$0xff]  ;;  %v3222_v7 = vld [vmem:[#allocation8 + $0xa18] sm:$0xff] }
 0x744   : > { %6841 = vmatprep.subr.bf16.mxu1 %v6840_v11 }
 0x746   : > { %5782 = vmatmul.mubr.f32.vlgmr.msra.gmra.mrb[8].mxu1 %v2516_v46  ;;  %v2833_v46 = vld [vmem:[#allocation8 + $0x800] sm:$0xff] }
 0x747   : > { %6843 = vmatpush3.bf16.msra.mxu1 %v6840_v11  ;;  %5816 = vmatprep.mubr.f32.mxu1 %v2726_v17  ;;  %v6904_v48 = vpack.c.bf16 %v2834_v47, %v2833_v46  ;;  %v6928_v11 = vpack.c.bf16 %v2846_v10, %v2845_v9  ;;  %v6936_v17 = vpack.c.bf16 %v2851_v16, %v2850_v15  ;;  %v3187_v47 = vld [vmem:[#allocation8 + $0x910] sm:$0xff]  ;;  %v3223_v9 = vld [vmem:[#allocation8 + $0xa20] sm:$0xff]  ;;  %v3224_v10 = vld [vmem:[#allocation8 + $0xa28] sm:$0xff] }
 0x748   : > { %6845 = vmatprep.subr.bf16.mxu1 %v6844_v14  ;;  %v6972_v46 = vpack.c.bf16 %v3186_v45, %v3185_v44  ;;  %v3227_v15 = vld [vmem:[#allocation8 + $0xa40] sm:$0xff]  ;;  %v3228_v16 = vld [vmem:[#allocation8 + $0xa48] sm:$0xff]  ;;  %v3205_v44 = vld [vmem:[#allocation8 + $0x998] sm:$0xff] }
 0x749   : > { %6905 = vmatprep.subr.bf16.mxu0 %v6904_v48 }
 0x74b   : > { %6847 = vmatpush3.bf16.msra.mxu1 %v6844_v14  ;;  %v6932_v14 = vpack.c.bf16 %v2848_v13, %v2847_v12  ;;  %v3225_v12 = vld [vmem:[#allocation8 + $0xa30] sm:$0xff]  ;;  %v3226_v13 = vld [vmem:[#allocation8 + $0xa38] sm:$0xff] }
 0x74c   : > { %6849 = vmatprep.subr.bf16.mxu1 %v6848_v18 }
 0x74f   : > { %6851 = vmatpush3.bf16.msra.mxu1 %v6848_v18  ;;  %v2852_v18 = vld [vmem:[#allocation8 + $0x890] sm:$0xff] }
 0x750   : > { %6853 = vmatprep.subr.bf16.mxu1 %v6852_v22  ;;  %v6940_v20 = vpack.c.bf16 %v2853_v19, %v2852_v18  ;;  %v3229_v18 = vld [vmem:[#allocation8 + $0xa50] sm:$0xff]  ;;  %v3230_v19 = vld [vmem:[#allocation8 + $0xa58] sm:$0xff] }
 0x753   : > { %6855 = vmatpush3.bf16.msra.mxu1 %v6852_v22  ;;  %v2854_v22 = vld [vmem:[#allocation8 + $0x8a0] sm:$0xff] }
 0x754   : > { %6857 = vmatprep.subr.bf16.mxu1 %v6856_v26  ;;  %v6944_v25 = vpack.c.bf16 %v2855_v24, %v2854_v22  ;;  %v3197_v22 = vld [vmem:[#allocation8 + $0x960] sm:$0xff]  ;;  %v3198_v24 = vld [vmem:[#allocation8 + $0x968] sm:$0xff] }
 0x757   : > { %6859 = vmatpush3.bf16.msra.mxu1 %v6856_v26  ;;  %v2856_v26 = vld [vmem:[#allocation8 + $0x8b0] sm:$0xff] }
 0x758   : > { %6861 = vmatprep.subr.bf16.mxu1 %v6860_v30  ;;  %v6948_v29 = vpack.c.bf16 %v2857_v27, %v2856_v26  ;;  %v3231_v26 = vld [vmem:[#allocation8 + $0xa60] sm:$0xff]  ;;  %v3232_v27 = vld [vmem:[#allocation8 + $0xa68] sm:$0xff] }
 0x75b   : > { %6863 = vmatpush3.bf16.msra.mxu1 %v6860_v30  ;;  %v2858_v30 = vld [vmem:[#allocation8 + $0x8c0] sm:$0xff] }
 0x75c   : > { %6865 = vmatprep.subr.bf16.mxu1 %v6864_v32  ;;  %v6952_v33 = vpack.c.bf16 %v2859_v31, %v2858_v30  ;;  %v3199_v30 = vld [vmem:[#allocation8 + $0x970] sm:$0xff]  ;;  %v3200_v31 = vld [vmem:[#allocation8 + $0x978] sm:$0xff] }
 0x75f   : > { %6867 = vmatpush3.bf16.msra.mxu1 %v6864_v32  ;;  %v2860_v32 = vld [vmem:[#allocation8 + $0x8d0] sm:$0xff] }
 0x760   : > { %6869 = vmatprep.subr.bf16.mxu1 %v6868_v36  ;;  %v6956_v34 = vpack.c.bf16 %v2861_v35, %v2860_v32  ;;  %v6993_v32 = vpack.c.bf16 %v3200_v31, %v3199_v30  ;;  %v3234_v35 = vld [vmem:[#allocation8 + $0xa78] sm:$0xff]  ;;  %v3489_v31 = vld [vmem:[#allocation8 + $0xb50] sm:$0xff] }
 0x763   : > { %6871 = vmatpush3.bf16.msra.mxu1 %v6868_v36  ;;  %v2862_v36 = vld [vmem:[#allocation8 + $0x8e0] sm:$0xff] }
 0x764   : > { %v6960_v38 = vpack.c.bf16 %v2863_v37, %v2862_v36  ;;  %6971 = vmatprep.subr.bf16.mxu1 %v7643_v43 }
 0x766   : > { %5817 = vmatmul.mubr.f32.vlgmr.msra.gmra.mrb[8].mxu1 %v8019_v50 }
 0x767   : > { %5963 = vmatprep.mubr.msk.f32.mxu1 %vm7644_vm4, %v7642_v6  ;;  %6973 = vmatpush3.bf16.msra.mxu1 %v6972_v46 }
 0x768   : > { %6974 = vmatprep.subr.bf16.mxu1 %v7643_v43 }
 0x839   : > { %v5818_v50 = vpop.f32.mrb[8].mxu1 }
 0x83a   : > { %v2812_v51 = vadd.f32 %v5818_v50, %v4544_v49  ;;  %v2794_v52 = vpop.f32.mrb[9].mxu1  ;;  %v3189_v50 = vld [vmem:[#allocation8 + $0x920] sm:$0xff] }
 0x83b   : > { %v2811_v53 = vadd.f32 %v4544_v49, %v2794_v52 }
 0x83c   : > { %v2814_v54 = vadd.f32 %v2812_v51, %v8006_v21  ;;  %v6912_v21 = vpack.c.bf16 %v2838_v63, %v2837_v62  ;;  %v3190_v51 = vld [vmem:[#allocation8 + $0x928] sm:$0xff]  ;;  %v4545_v62 = vld [vmem:[#allocation9 + $0x5] ss:$0 sm:$0xff] }
 0x83d   : > { %v2813_v55 = vadd.f32 %v2811_v53, %v8008_v23  ;;  %v2839_v23 = vld [vmem:[#allocation8 + $0x830] sm:$0xff]  ;;  %v6978_v52 = vpack.c.bf16 %v3190_v51, %v3189_v50 }
 0x83e   : > { %2870 = vst [vmem:[#allocation2 + $0x9] sm:$0xff] %v2814_v54  ;;  %v6916_v1 = vpack.c.bf16 %v2840_v0, %v2839_v23  ;;  %v3191_v53 = vld [vmem:[#allocation8 + $0x930] sm:$0xff] }
 0x83f   : > { %2869 = vst [vmem:[#allocation2 + $0x1] sm:$0xff] %v2813_v55  ;;  %v3208_v51 = vld [vmem:[#allocation8 + $0x9b0] sm:$0xff] }
 0x845   : > { %v3025_v42 = vld [vmem:[#allocation2 + $0xa] sm:$0xff] }
 0x846   : > { %v2872_v58 = vld [vmem:[#allocation2] sm:$0xff]  ;;  %v2873_v59 = vld [vmem:[#allocation2 + $0x8] sm:$0xff] }
 0x847   : > { %v3024_v61 = vld [vmem:[#allocation2 + $0x2] sm:$0xff]  ;;  %5851 = vmatprep.mubr.f32.mxu0 %v2872_v58  ;;  %3237 = vst [vmem:[#allocation2] sm:$0x1] %v7642_v6  ;;  %v6984_v58 = vpack.c.bf16 %v3194_v57, %v3193_v56  ;;  %v3212_v57 = vld [vmem:[#allocation8 + $0x9d0] sm:$0xff] }
 0x848   : > { %3239 = vst [vmem:[#allocation2 + $0x9] sm:$0x1] %v7642_v6  ;;  %5852 = vmatmul.mubr.f32.vlgmr.msra.gmra.mrb[12].mxu0 %v2873_v59  ;;  %v3195_v59 = vld [vmem:[#allocation8 + $0x950] sm:$0xff] }
 0x849   : > { %6907 = vmatpush3.bf16.msra.mxu0 %v6904_v48  ;;  %5886 = vmatprep.mubr.f32.mxu0 %v2813_v55  ;;  %v3188_v48 = vld [vmem:[#allocation8 + $0x918] sm:$0xff] }
 0x84a   : > { %6909 = vmatprep.subr.bf16.mxu0 %v6908_v60  ;;  %v6975_v49 = vpack.c.bf16 %v3188_v48, %v3187_v47  ;;  %v3206_v48 = vld [vmem:[#allocation8 + $0x9a0] sm:$0xff] }
 0x84c   : > { %6976 = vmatpush3.bf16.msra.mxu1 %v6975_v49  ;;  %v3207_v49 = vld [vmem:[#allocation8 + $0x9a8] sm:$0xff] }
 0x84d   : > { %6911 = vmatpush3.bf16.msra.mxu0 %v6908_v60  ;;  %6977 = vmatprep.subr.bf16.mxu1 %v7643_v43  ;;  %v3196_v60 = vld [vmem:[#allocation8 + $0x958] sm:$0xff]  ;;  %v7002_v50 = vpack.c.bf16 %v3207_v49, %v3206_v48  ;;  %v3474_v48 = vld [vmem:[#allocation8 + $0xae0] sm:$0xff]  ;;  %v3475_v49 = vld [vmem:[#allocation8 + $0xae8] sm:$0xff] }
 0x84e   : > { %6913 = vmatprep.subr.bf16.mxu0 %v6912_v21 }
 0x850   : > { %6979 = vmatpush3.bf16.msra.mxu1 %v6978_v52  ;;  %v3209_v52 = vld [vmem:[#allocation8 + $0x9b8] sm:$0xff] }
 0x851   : > { %6915 = vmatpush3.bf16.msra.mxu0 %v6912_v21  ;;  %6980 = vmatprep.subr.bf16.mxu1 %v7643_v43 }
 0x852   : > { %6917 = vmatprep.subr.bf16.mxu0 %v6916_v1 }
 0x855   : > { %6919 = vmatpush3.bf16.msra.mxu0 %v6916_v1  ;;  %v3219_v1 = vld [vmem:[#allocation8 + $0xa00] sm:$0xff] }
 0x856   : > { %6921 = vmatprep.subr.bf16.mxu0 %v6920_v4 }
 0x859   : > { %6923 = vmatpush3.bf16.msra.mxu0 %v6920_v4  ;;  %v7020_v4 = vpack.c.bf16 %v3220_v2, %v3219_v1  ;;  %v3480_v1 = vld [vmem:[#allocation8 + $0xb08] sm:$0xff]  ;;  %v3481_v2 = vld [vmem:[#allocation8 + $0xb10] sm:$0xff] }
 0x85a   : > { %6925 = vmatprep.subr.bf16.mxu0 %v6924_v8 }
 0x85d   : > { %6927 = vmatpush3.bf16.msra.mxu0 %v6924_v8  ;;  %v7023_v8 = vpack.c.bf16 %v3222_v7, %v3221_v5  ;;  %v3462_v5 = vld [vmem:[#allocation8 + $0xa80] sm:$0xff]  ;;  %v3463_v7 = vld [vmem:[#allocation8 + $0xa88] sm:$0xff] }
 0x85e   : > { %6929 = vmatprep.subr.bf16.mxu0 %v6928_v11 }
 0x861   : > { %6931 = vmatpush3.bf16.msra.mxu0 %v6928_v11  ;;  %v7026_v11 = vpack.c.bf16 %v3224_v10, %v3223_v9  ;;  %v3464_v9 = vld [vmem:[#allocation8 + $0xa90] sm:$0xff] }
 0x862   : > { %6933 = vmatprep.subr.bf16.mxu0 %v6932_v14 }
 0x865   : > { %6935 = vmatpush3.bf16.msra.mxu0 %v6932_v14  ;;  %v7029_v14 = vpack.c.bf16 %v3226_v13, %v3225_v12  ;;  %v3483_v12 = vld [vmem:[#allocation8 + $0xb20] sm:$0xff]  ;;  %v3484_v13 = vld [vmem:[#allocation8 + $0xb28] sm:$0xff] }
 0x866   : > { %6937 = vmatprep.subr.bf16.mxu0 %v6936_v17 }
 0x868   : > { %5887 = vmatmul.mubr.f32.vlgmr.msra.gmra.mrb[12].mxu0 %v2814_v54  ;;  %v3192_v54 = vld [vmem:[#allocation8 + $0x938] sm:$0xff] }
 0x869   : > { %6939 = vmatpush3.bf16.msra.mxu0 %v6936_v17  ;;  %5921 = vmatprep.mubr.f32.mxu0 %v3024_v61  ;;  %v6981_v55 = vpack.c.bf16 %v3192_v54, %v3191_v53  ;;  %v6987_v61 = vpack.c.bf16 %v3196_v60, %v3195_v59  ;;  %v7032_v17 = vpack.c.bf16 %v3228_v16, %v3227_v15  ;;  %v3210_v54 = vld [vmem:[#allocation8 + $0x9c0] sm:$0xff]  ;;  %v3467_v16 = vld [vmem:[#allocation8 + $0xaa8] sm:$0xff] }
 0x86a   : > { %6941 = vmatprep.subr.bf16.mxu0 %v6940_v20  ;;  %v7005_v53 = vpack.c.bf16 %v3209_v52, %v3208_v51  ;;  %v3214_v60 = vld [vmem:[#allocation8 + $0x9e0] sm:$0xff]  ;;  %v3476_v51 = vld [vmem:[#allocation8 + $0xaf0] sm:$0xff]  ;;  %v3477_v52 = vld [vmem:[#allocation8 + $0xaf8] sm:$0xff] }
 0x86b   : > { %6982 = vmatpush3.bf16.msra.mxu1 %v6981_v55  ;;  %v3211_v55 = vld [vmem:[#allocation8 + $0x9c8] sm:$0xff]  ;;  %v3466_v15 = vld [vmem:[#allocation8 + $0xaa0] sm:$0xff] }
 0x86c   : > { %6983 = vmatprep.subr.bf16.mxu1 %v7643_v43  ;;  %v7008_v56 = vpack.c.bf16 %v3211_v55, %v3210_v54 }
 0x86d   : > { %6943 = vmatpush3.bf16.msra.mxu0 %v6940_v20  ;;  %v7035_v20 = vpack.c.bf16 %v3230_v19, %v3229_v18  ;;  %v3485_v18 = vld [vmem:[#allocation8 + $0xb30] sm:$0xff]  ;;  %v3486_v19 = vld [vmem:[#allocation8 + $0xb38] sm:$0xff] }
 0x86e   : > { %6945 = vmatprep.subr.bf16.mxu0 %v6944_v25 }
 0x86f   : > { %6985 = vmatpush3.bf16.msra.mxu1 %v6984_v58  ;;  %v3213_v58 = vld [vmem:[#allocation8 + $0x9d8] sm:$0xff] }
 0x870   : > { %6986 = vmatprep.subr.bf16.mxu1 %v7643_v43  ;;  %v7011_v59 = vpack.c.bf16 %v3213_v58, %v3212_v57 }
 0x871   : > { %6947 = vmatpush3.bf16.msra.mxu0 %v6944_v25  ;;  %v6990_v25 = vpack.c.bf16 %v3198_v24, %v3197_v22  ;;  %v3468_v22 = vld [vmem:[#allocation8 + $0xab0] sm:$0xff]  ;;  %v3469_v24 = vld [vmem:[#allocation8 + $0xab8] sm:$0xff] }
 0x872   : > { %6949 = vmatprep.subr.bf16.mxu0 %v6948_v29 }
 0x873   : > { %6988 = vmatpush3.bf16.msra.mxu1 %v6987_v61  ;;  %v3215_v61 = vld [vmem:[#allocation8 + $0x9e8] sm:$0xff] }
 0x874   : > { %6989 = vmatprep.subr.bf16.mxu1 %v7643_v43 }
 0x875   : > { %6951 = vmatpush3.bf16.msra.mxu0 %v6948_v29  ;;  %v7038_v29 = vpack.c.bf16 %v3232_v27, %v3231_v26  ;;  %v3487_v26 = vld [vmem:[#allocation8 + $0xb40] sm:$0xff]  ;;  %v3488_v27 = vld [vmem:[#allocation8 + $0xb48] sm:$0xff] }
 0x876   : > { %6953 = vmatprep.subr.bf16.mxu0 %v6952_v33  ;;  %v7080_v30 = vpack.c.bf16 %v3488_v27, %v3487_v26  ;;  %v3511_v26 = vld [vmem:[#allocation8 + $0xbf8] sm:$0xff] }
 0x877   : > { %6991 = vmatpush3.bf16.msra.mxu1 %v6990_v25  ;;  %v7077_v25 = vpack.c.bf16 %v3486_v19, %v3485_v18  ;;  %v3507_v18 = vld [vmem:[#allocation8 + $0xbd8] sm:$0xff] }
 0x878   : > { %6992 = vmatprep.subr.bf16.mxu1 %v7643_v43 }
 0x879   : > { %6955 = vmatpush3.bf16.msra.mxu0 %v6952_v33  ;;  %v3233_v33 = vld [vmem:[#allocation8 + $0xa70] sm:$0xff] }
 0x87a   : > { %6957 = vmatprep.subr.bf16.mxu0 %v6956_v34 }
 0x87b   : > { %6994 = vmatpush3.bf16.msra.mxu1 %v6993_v32 }
 0x87c   : > { %6995 = vmatprep.subr.bf16.mxu1 %v7643_v43 }
 0x87d   : > { %6959 = vmatpush3.bf16.msra.mxu0 %v6956_v34  ;;  %v7041_v34 = vpack.c.bf16 %v3234_v35, %v3233_v33  ;;  %v3490_v33 = vld [vmem:[#allocation8 + $0xb58] sm:$0xff]  ;;  %v3470_v35 = vld [vmem:[#allocation8 + $0xac0] sm:$0xff] }
 0x87e   : > { %6961 = vmatprep.subr.bf16.mxu0 %v6960_v38  ;;  %v7083_v32 = vpack.c.bf16 %v3490_v33, %v3489_v31  ;;  %v3758_v31 = vld [vmem:[#allocation8 + $0xc90] sm:$0xff] }
 0x881   : > { %6963 = vmatpush3.bf16.msra.mxu0 %v6960_v38 }
 0x882   : > { %6965 = vmatprep.subr.bf16.mxu0 %v6964_v40 }
 0x885   : > { %6967 = vmatpush3.bf16.msra.mxu0 %v6964_v40  ;;  %v6996_v40 = vpack.c.bf16 %v3203_v41, %v3202_v39  ;;  %v3492_v39 = vld [vmem:[#allocation8 + $0xb68] sm:$0xff] }
 0x886   : > { %6968 = vmatprep.subr.bf16.mxu0 %v7643_v43 }
 0x888   : > { %5922 = vmatmul.mubr.f32.vlgmr.msra.gmra.mrb[12].mxu0 %v3025_v42  ;;  %v3204_v42 = vld [vmem:[#allocation8 + $0x990] sm:$0xff] }
 0x889   : > { %5928 = vmatprep.mubr.msk.f32.mxu0 %vm7644_vm4, %v7642_v6  ;;  %v6999_v47 = vpack.c.bf16 %v3205_v44, %v3204_v42  ;;  %v3473_v42 = vld [vmem:[#allocation8 + $0xad8] sm:$0xff] }
 0x95b   : > { %v5923_v63 = vpop.f32.mrb[12].mxu0 }
 0x95c   : > { %v3110_v21 = vadd.f32 %v5923_v63, %v4545_v62  ;;  %v3092_v23 = vpop.f32.mrb[13].mxu0  ;;  %v3216_v63 = vld [vmem:[#allocation8 + $0x9f0] sm:$0xff] }
 0x95d   : > { %v3109_v0 = vadd.f32 %v4545_v62, %v3092_v23  ;;  %v7014_v62 = vpack.c.bf16 %v3215_v61, %v3214_v60  ;;  %v4547_v61 = vld [vmem:[#allocation9 + $0x6] ss:$0 sm:$0xff] }
 0x95f   : > { %v6969_v3 = vpack.c.bf16 %v3110_v21, %v3109_v0  ;;  %v3217_v21 = vld [vmem:[#allocation8 + $0x9f8] sm:$0xff]  ;;  %v3479_v0 = vld [vmem:[#allocation8 + $0xb00] sm:$0xff] }
 0x960   : > { %v7017_v23 = vpack.c.bf16 %v3217_v21, %v3216_v63 }
 0x961   : > { %6970 = vmatpush3.bf16.msra.mxu0 %v6969_v3  ;;  %v7068_v3 = vpack.c.bf16 %v3480_v1, %v3479_v0  ;;  %v3497_v0 = vld [vmem:[#allocation8 + $0xb88] sm:$0xff] }
 0x962   : > { %7019 = vmatprep.subr.bf16.mxu0 %v7643_v43 }
 0x964   : > { %5929 = vmatmul.mubr.msk.f32.vlgmr.msra.gmra.mrb[14].mxu0 %vm358_vm0, %v7998_v28 }
 0x965   : > { %7021 = vmatpush3.bf16.msra.mxu0 %v7020_v4  ;;  %6033 = vmatprep.mubr.msk.f32.mxu0 %vm7644_vm4, %v7642_v6  ;;  %v3482_v4 = vld [vmem:[#allocation8 + $0xb18] sm:$0xff] }
 0x966   : > { %7022 = vmatprep.subr.bf16.mxu0 %v7643_v43  ;;  %v7071_v10 = vpack.c.bf16 %v3482_v4, %v3481_v2  ;;  %v3498_v2 = vld [vmem:[#allocation8 + $0xb90] sm:$0xff] }
 0x969   : > { %7024 = vmatpush3.bf16.msra.mxu0 %v7023_v8  ;;  %v7044_v8 = vpack.c.bf16 %v3463_v7, %v3462_v5 }
 0x96a   : > { %7025 = vmatprep.subr.bf16.mxu0 %v7643_v43 }
 0x96d   : > { %7027 = vmatpush3.bf16.msra.mxu0 %v7026_v11  ;;  %v3465_v11 = vld [vmem:[#allocation8 + $0xa98] sm:$0xff] }
 0x96e   : > { %7028 = vmatprep.subr.bf16.mxu0 %v7643_v43 }
 0x971   : > { %7030 = vmatpush3.bf16.msra.mxu0 %v7029_v14  ;;  %v7047_v14 = vpack.c.bf16 %v3465_v11, %v3464_v9  ;;  %v3501_v9 = vld [vmem:[#allocation8 + $0xba8] sm:$0xff]  ;;  %v3502_v11 = vld [vmem:[#allocation8 + $0xbb0] sm:$0xff] }
 0x972   : > { %7031 = vmatprep.subr.bf16.mxu0 %v7643_v43 }
 0x975   : > { %7033 = vmatpush3.bf16.msra.mxu0 %v7032_v17  ;;  %v7074_v17 = vpack.c.bf16 %v3484_v13, %v3483_v12  ;;  %v3503_v12 = vld [vmem:[#allocation8 + $0xbb8] sm:$0xff] }
 0x976   : > { %7034 = vmatprep.subr.bf16.mxu0 %v7643_v43  ;;  %v7101_v13 = vpack.c.bf16 %v3503_v12, %v3502_v11  ;;  %v3753_v11 = vld [vmem:[#allocation8 + $0xc70] sm:$0xff]  ;;  %v3754_v12 = vld [vmem:[#allocation8 + $0xc78] sm:$0xff] }
 0x979   : > { %7036 = vmatpush3.bf16.msra.mxu0 %v7035_v20  ;;  %v7050_v20 = vpack.c.bf16 %v3467_v16, %v3466_v15  ;;  %v3505_v15 = vld [vmem:[#allocation8 + $0xbc8] sm:$0xff] }
 0x97a   : > { %7037 = vmatprep.subr.bf16.mxu0 %v7643_v43 }
 0x97d   : > { %7039 = vmatpush3.bf16.msra.mxu0 %v7038_v29  ;;  %v7053_v29 = vpack.c.bf16 %v3469_v24, %v3468_v22  ;;  %v3509_v22 = vld [vmem:[#allocation8 + $0xbe8] sm:$0xff] }
 0x97e   : > { %7040 = vmatprep.subr.bf16.mxu0 %v7643_v43 }
 0x981   : > { %7042 = vmatpush3.bf16.msra.mxu0 %v7041_v34  ;;  %v3471_v34 = vld [vmem:[#allocation8 + $0xac8] sm:$0xff] }
 0x982   : > { %7067 = vmatprep.subr.bf16.mxu0 %v7643_v43 }
 0xa37   : > { %v3179_v36 = vpop.f32.mrb[14].mxu0 }
 0xa38   : > { %v8055_v37 = vmax.f32 %v3179_v36, 0.0  ;;  %v5930_v38 = vpop.f32.mrb[15].mxu0  ;;  %v7056_v36 = vpack.c.bf16 %v3471_v34, %v3470_v35  ;;  %v3739_v35 = vld [vmem:[#allocation8 + $0xc00] sm:$0xff]  ;;  %v3740_v34 = vld [vmem:[#allocation8 + $0xc08] sm:$0xff] }
 0xa39   : > { %v3491_v38 = vld [vmem:[#allocation8 + $0xb60] sm:$0xff] }
 0xa3a   : > { %3238 = vst [vmem:[#allocation2 + $0x1] sm:$0xff] %v8055_v37  ;;  %v7086_v41 = vpack.c.bf16 %v3492_v39, %v3491_v38  ;;  %v3741_v38 = vld [vmem:[#allocation8 + $0xc10] sm:$0xff] }
 0xa41   : > { %v3240_v45 = vld [vmem:[#allocation2] sm:$0xff] }
 0xa42   : > { %v3381_v46 = vld [vmem:[#allocation2 + $0x2] sm:$0xff]  ;;  %5964 = vmatmul.mubr.f32.vlgmr.msra.gmra.mrb[10].mxu1 %v3240_v45  ;;  %3514 = vst [vmem:[#allocation2] sm:$0x1] %v7642_v6  ;;  %v3493_v45 = vld [vmem:[#allocation8 + $0xb70] sm:$0xff] }
 0xa43   : > { %6034 = vmatmul.mubr.f32.vlgmr.msra.gmra.mrb[16].mxu0 %v3381_v46  ;;  %3516 = vst [vmem:[#allocation2 + $0x9] sm:$0x1] %v7642_v6  ;;  %6997 = vmatpush3.bf16.msra.mxu1 %v6996_v40  ;;  %v3472_v40 = vld [vmem:[#allocation8 + $0xad0] sm:$0xff]  ;;  %v3494_v46 = vld [vmem:[#allocation8 + $0xb78] sm:$0xff] }
 0xa44   : > { %5998 = vmatprep.mubr.msk.f32.mxu1 %vm7644_vm4, %v7642_v6  ;;  %6998 = vmatprep.subr.bf16.mxu1 %v7643_v43  ;;  %v7059_v44 = vpack.c.bf16 %v3473_v42, %v3472_v40  ;;  %v3760_v40 = vld [vmem:[#allocation8 + $0xca0] sm:$0xff]  ;;  %v3761_v42 = vld [vmem:[#allocation8 + $0xca8] sm:$0xff] }
 0xa45   : > { %6103 = vmatprep.mubr.msk.f32.mxu0 %vm7644_vm4, %v7642_v6  ;;  %7069 = vmatpush3.bf16.msra.mxu0 %v7068_v3  ;;  %v3499_v3 = vld [vmem:[#allocation8 + $0xb98] sm:$0xff] }
 0xa46   : > { %7070 = vmatprep.subr.bf16.mxu0 %v7643_v43  ;;  %v7095_v7 = vpack.c.bf16 %v3499_v3, %v3498_v2  ;;  %v3750_v2 = vld [vmem:[#allocation8 + $0xc58] sm:$0xff] }
 0xa47   : > { %7000 = vmatpush3.bf16.msra.mxu1 %v6999_v47  ;;  %v7089_v47 = vpack.c.bf16 %v3494_v46, %v3493_v45  ;;  %v3743_v45 = vld [vmem:[#allocation8 + $0xc20] sm:$0xff]  ;;  %v3744_v46 = vld [vmem:[#allocation8 + $0xc28] sm:$0xff] }
 0xa48   : > { %7001 = vmatprep.subr.bf16.mxu1 %v7643_v43 }
 0xa49   : > { %7072 = vmatpush3.bf16.msra.mxu0 %v7071_v10 }
 0xa4a   : > { %7073 = vmatprep.subr.bf16.mxu0 %v7643_v43 }
 0xa4b   : > { %7003 = vmatpush3.bf16.msra.mxu1 %v7002_v50  ;;  %v7062_v50 = vpack.c.bf16 %v3475_v49, %v3474_v48  ;;  %v3762_v48 = vld [vmem:[#allocation8 + $0xcb0] sm:$0xff]  ;;  %v3763_v49 = vld [vmem:[#allocation8 + $0xcb8] sm:$0xff] }
 0xa4c   : > { %7004 = vmatprep.subr.bf16.mxu1 %v7643_v43 }
 0xa4d   : > { %7075 = vmatpush3.bf16.msra.mxu0 %v7074_v17  ;;  %v3506_v17 = vld [vmem:[#allocation8 + $0xbd0] sm:$0xff] }
 0xa4e   : > { %7076 = vmatprep.subr.bf16.mxu0 %v7643_v43  ;;  %v7107_v19 = vpack.c.bf16 %v3507_v18, %v3506_v17 }
 0xa4f   : > { %7006 = vmatpush3.bf16.msra.mxu1 %v7005_v53  ;;  %v7065_v53 = vpack.c.bf16 %v3477_v52, %v3476_v51  ;;  %v3745_v51 = vld [vmem:[#allocation8 + $0xc30] sm:$0xff]  ;;  %v3746_v52 = vld [vmem:[#allocation8 + $0xc38] sm:$0xff] }
 0xa50   : > { %7007 = vmatprep.subr.bf16.mxu1 %v7643_v43 }
 0xa51   : > { %7078 = vmatpush3.bf16.msra.mxu0 %v7077_v25  ;;  %v3510_v25 = vld [vmem:[#allocation8 + $0xbf0] sm:$0xff] }
 0xa52   : > { %7079 = vmatprep.subr.bf16.mxu0 %v7643_v43  ;;  %v7113_v27 = vpack.c.bf16 %v3511_v26, %v3510_v25 }
 0xa53   : > { %7009 = vmatpush3.bf16.msra.mxu1 %v7008_v56 }
 0xa54   : > { %7010 = vmatprep.subr.bf16.mxu1 %v7643_v43 }
 0xa55   : > { %7081 = vmatpush3.bf16.msra.mxu0 %v7080_v30  ;;  %v3757_v30 = vld [vmem:[#allocation8 + $0xc88] sm:$0xff] }
 0xa56   : > { %7082 = vmatprep.subr.bf16.mxu0 %v7643_v43 }
 0xa57   : > { %7012 = vmatpush3.bf16.msra.mxu1 %v7011_v59 }
 0xa58   : > { %7013 = vmatprep.subr.bf16.mxu1 %v7643_v43 }
 0xa59   : > { %7084 = vmatpush3.bf16.msra.mxu0 %v7083_v32  ;;  %v3759_v32 = vld [vmem:[#allocation8 + $0xc98] sm:$0xff] }
 0xa5a   : > { %7085 = vmatprep.subr.bf16.mxu0 %v7643_v43  ;;  %v7143_v39 = vpack.c.bf16 %v3759_v32, %v3758_v31  ;;  %v3775_v31 = vld [vmem:[#allocation8 + $0xd10] sm:$0xff] }
 0xa5b   : > { %7015 = vmatpush3.bf16.msra.mxu1 %v7014_v62 }
 0xa5c   : > { %7016 = vmatprep.subr.bf16.mxu1 %v7643_v43 }
 0xa5d   : > { %7087 = vmatpush3.bf16.msra.mxu0 %v7086_v41  ;;  %v3742_v41 = vld [vmem:[#allocation8 + $0xc18] sm:$0xff] }
 0xa5e   : > { %7088 = vmatprep.subr.bf16.mxu0 %v7643_v43 }
 0xa5f   : > { %7018 = vmatpush3.bf16.msra.mxu1 %v7017_v23  ;;  %v3496_v23 = vld [vmem:[#allocation8 + $0xb80] sm:$0xff] }
 0xa60   : > { %7043 = vmatprep.subr.bf16.mxu1 %v7643_v43  ;;  %v7092_v1 = vpack.c.bf16 %v3497_v0, %v3496_v23  ;;  %v3769_v23 = vld [vmem:[#allocation8 + $0xce8] sm:$0xff] }
 0xa61   : > { %7090 = vmatpush3.bf16.msra.mxu0 %v7089_v47  ;;  %v7146_v47 = vpack.c.bf16 %v3761_v42, %v3760_v40  ;;  %v3781_v42 = vld [vmem:[#allocation8 + $0xd40] sm:$0xff] }
 0xa62   : > { %5999 = vmatmul.mubr.f32.vlgmr.msra.gmra.mrb[12].mxu1 %v8055_v37  ;;  %7115 = vmatprep.subr.bf16.mxu0 %v7643_v43 }
 0xa63   : > { %6068 = vmatprep.mubr.msk.f32.mxu1 %vm7644_vm4, %v7642_v6  ;;  %7045 = vmatpush3.bf16.msra.mxu1 %v7044_v8  ;;  %v3500_v8 = vld [vmem:[#allocation8 + $0xba0] sm:$0xff] }
 0xa64   : > { %7046 = vmatprep.subr.bf16.mxu1 %v7643_v43  ;;  %v7098_v10 = vpack.c.bf16 %v3501_v9, %v3500_v8  ;;  %v3751_v8 = vld [vmem:[#allocation8 + $0xc60] sm:$0xff]  ;;  %v3752_v9 = vld [vmem:[#allocation8 + $0xc68] sm:$0xff] }
 0xa67   : > { %7048 = vmatpush3.bf16.msra.mxu1 %v7047_v14  ;;  %v3504_v14 = vld [vmem:[#allocation8 + $0xbc0] sm:$0xff] }
 0xa68   : > { %7049 = vmatprep.subr.bf16.mxu1 %v7643_v43  ;;  %v7104_v16 = vpack.c.bf16 %v3505_v15, %v3504_v14 }
 0xa6b   : > { %7051 = vmatpush3.bf16.msra.mxu1 %v7050_v20  ;;  %v3508_v20 = vld [vmem:[#allocation8 + $0xbe0] sm:$0xff] }
 0xa6c   : > { %7052 = vmatprep.subr.bf16.mxu1 %v7643_v43  ;;  %v7110_v24 = vpack.c.bf16 %v3509_v22, %v3508_v20 }
 0xa6f   : > { %7054 = vmatpush3.bf16.msra.mxu1 %v7053_v29  ;;  %v3756_v29 = vld [vmem:[#allocation8 + $0xc80] sm:$0xff] }
 0xa70   : > { %7055 = vmatprep.subr.bf16.mxu1 %v7643_v43  ;;  %v7140_v33 = vpack.c.bf16 %v3757_v30, %v3756_v29  ;;  %v3774_v29 = vld [vmem:[#allocation8 + $0xd08] sm:$0xff] }
 0xa73   : > { %7057 = vmatpush3.bf16.msra.mxu1 %v7056_v36  ;;  %v7116_v36 = vpack.c.bf16 %v3740_v34, %v3739_v35 }
 0xa74   : > { %7058 = vmatprep.subr.bf16.mxu1 %v7643_v43 }
 0xa77   : > { %7060 = vmatpush3.bf16.msra.mxu1 %v7059_v44  ;;  %v7119_v44 = vpack.c.bf16 %v3742_v41, %v3741_v38  ;;  %v3780_v41 = vld [vmem:[#allocation8 + $0xd38] sm:$0xff] }
 0xa78   : > { %7061 = vmatprep.subr.bf16.mxu1 %v7643_v43 }
 0xa7b   : > { %7063 = vmatpush3.bf16.msra.mxu1 %v7062_v50  ;;  %v7122_v50 = vpack.c.bf16 %v3744_v46, %v3743_v45  ;;  %v3783_v46 = vld [vmem:[#allocation8 + $0xd50] sm:$0xff] }
 0xa7c   : > { %7064 = vmatprep.subr.bf16.mxu1 %v7643_v43 }
 0xa7f   : > { %7066 = vmatpush3.bf16.msra.mxu1 %v7065_v53  ;;  %v7149_v53 = vpack.c.bf16 %v3763_v49, %v3762_v48  ;;  %v3785_v49 = vld [vmem:[#allocation8 + $0xd60] sm:$0xff] }
 0xa80   : > { %7091 = vmatprep.subr.bf16.mxu1 %v7643_v43 }
 0xb15   : > { %v3307_v54 = vpop.f32.mrb[10].mxu1 }
 0xb16   : > { %v3448_v55 = vpop.f32.mrb[16].mxu0  ;;  %v5965_v56 = vpop.f32.mrb[11].mxu1 }
 0xb17   : > { %v6035_v57 = vpop.f32.mrb[17].mxu0  ;;  %v7125_v56 = vpack.c.bf16 %v3746_v52, %v3745_v51  ;;  %v3787_v52 = vld [vmem:[#allocation8 + $0xd70] sm:$0xff] }
 0xb18   : > { %v3747_v57 = vld [vmem:[#allocation8 + $0xc40] sm:$0xff] }
 0xb35   : > { %v3377_v58 = vpop.f32.mrb[12].mxu1 }
 0xb36   : > { %v3378_v59 = vadd.f32 %v3377_v58, %v3307_v54  ;;  %v6000_v60 = vpop.f32.mrb[13].mxu1  ;;  %v3764_v54 = vld [vmem:[#allocation8 + $0xcc0] sm:$0xff]  ;;  %v3748_v58 = vld [vmem:[#allocation8 + $0xc48] sm:$0xff] }
 0xb37   : > { %v3766_v60 = vld [vmem:[#allocation8 + $0xcd0] sm:$0xff] }
 0xb38   : > { %v3452_v62 = vadd.f32 %v3448_v55, %v3378_v59  ;;  %v3765_v55 = vld [vmem:[#allocation8 + $0xcc8] sm:$0xff] }
 0xb39   : > { %v7152_v59 = vpack.c.bf16 %v3765_v55, %v3764_v54  ;;  %v4551_v55 = vld [vmem:[%s8364_s5 + $0x80] sm:$0xff] }
 0xb3a   : > { %v3459_v63 = vadd.f32 %v4547_v61, %v3452_v62  ;;  %v3767_v61 = vld [vmem:[#allocation8 + $0xcd8] sm:$0xff]  ;;  %v7128_v62 = vpack.c.bf16 %v3748_v58, %v3747_v57  ;;  %v4553_v57 = vld [vmem:[%s8364_s5 + $0x90] sm:$0xff] }
 0xb3c   : > { %v3460_v21 = vmax.f32 %v3459_v63, 0.0  ;;  %v7155_v63 = vpack.c.bf16 %v3767_v61, %v3766_v60  ;;  %v4555_v61 = vld [vmem:[%s8364_s5 + $0xa0] sm:$0xff] }
 0xb3e   : > { %3515 = vst [vmem:[#allocation2 + $0x1] sm:$0xff] %v3460_v21  ;;  %6104 = vmatmul.mubr.f32.vlgmr.msra.gmra.mrb[18].mxu0 %v3460_v21  ;;  %v3768_v21 = vld [vmem:[#allocation8 + $0xce0] sm:$0xff] }
 0xb3f   : > { %6173 = vmatprep.mubr.msk.f32.mxu0 %vm7644_vm4, %v7642_v6  ;;  %7117 = vmatpush3.bf16.msra.mxu0 %v7116_v36  ;;  %v7158_v0 = vpack.c.bf16 %v3769_v23, %v3768_v21  ;;  %v3778_v36 = vld [vmem:[#allocation8 + $0xd28] sm:$0xff] }
 0xb40   : > { %7118 = vmatprep.subr.bf16.mxu0 %v7643_v43  ;;  %v4557_v21 = vld [vmem:[%s8364_s5 + $0xb0] sm:$0xff]  ;;  %v4558_v23 = vld [vmem:[%s8364_s5 + $0xb8] sm:$0xff] }
 0xb43   : > { %7120 = vmatpush3.bf16.msra.mxu0 %v7119_v44  ;;  %v3782_v44 = vld [vmem:[#allocation8 + $0xd48] sm:$0xff] }
 0xb44   : > { %7121 = vmatprep.subr.bf16.mxu0 %v7643_v43  ;;  %v7176_v45 = vpack.c.bf16 %v3782_v44, %v3781_v42  ;;  %v4566_v42 = vld [vmem:[%s8364_s5 + $0xf8] sm:$0xff] }
 0xb45   : > { %v3517_v4 = vld [vmem:[#allocation2] sm:$0xff] }
 0xb46   : > { %v3658_v5 = vld [vmem:[#allocation2 + $0x2] sm:$0xff]  ;;  %6069 = vmatmul.mubr.f32.vlgmr.msra.gmra.mrb[14].mxu1 %v3517_v4  ;;  %3791 = vst [vmem:[#allocation2] sm:$0x1] %v7642_v6  ;;  %v3770_v4 = vld [vmem:[#allocation8 + $0xcf0] sm:$0xff] }
 0xb47   : > { %3793 = vst [vmem:[#allocation2 + $0x9] sm:$0x1] %v7642_v6  ;;  %7093 = vmatpush3.bf16.msra.mxu1 %v7092_v1  ;;  %6138 = vmatprep.mubr.msk.f32.mxu1 %vm7644_vm4, %v7642_v6  ;;  %v3749_v1 = vld [vmem:[#allocation8 + $0xc50] sm:$0xff] }
 0xb48   : > { %7094 = vmatprep.subr.bf16.mxu1 %v7643_v43  ;;  %7123 = vmatpush3.bf16.msra.mxu0 %v7122_v50  ;;  %v7131_v3 = vpack.c.bf16 %v3750_v2, %v3749_v1  ;;  %v3786_v50 = vld [vmem:[#allocation8 + $0xd68] sm:$0xff]  ;;  %v4559_v1 = vld [vmem:[%s8364_s5 + $0xc0] sm:$0xff]  ;;  %v4560_v2 = vld [vmem:[%s8364_s5 + $0xc8] sm:$0xff] }
 0xb49   : > { %7124 = vmatprep.subr.bf16.mxu0 %v7643_v43  ;;  %v7182_v51 = vpack.c.bf16 %v3786_v50, %v3785_v49  ;;  %v4103_v49 = vld [vmem:[%s8364_s5 + $0x78] sm:$0xff] }
 0xb4b   : > { %7096 = vmatpush3.bf16.msra.mxu1 %v7095_v7 }
 0xb4c   : > { %7097 = vmatprep.subr.bf16.mxu1 %v7643_v43  ;;  %7126 = vmatpush3.bf16.msra.mxu0 %v7125_v56  ;;  %v4552_v56 = vld [vmem:[%s8364_s5 + $0x88] sm:$0xff] }
 0xb4d   : > { %7127 = vmatprep.subr.bf16.mxu0 %v7643_v43  ;;  %v7212_v58 = vpack.c.bf16 %v4552_v56, %v4551_v55  ;;  %v4568_v55 = vld [vmem:[%s8364_s5 + $0x108] sm:$0xff] }
 0xb4f   : > { %7099 = vmatpush3.bf16.msra.mxu1 %v7098_v10  ;;  %v7134_v10 = vpack.c.bf16 %v3752_v9, %v3751_v8  ;;  %v4563_v8 = vld [vmem:[%s8364_s5 + $0xe0] sm:$0xff]  ;;  %v4564_v9 = vld [vmem:[%s8364_s5 + $0xe8] sm:$0xff] }
 0xb50   : > { %7100 = vmatprep.subr.bf16.mxu1 %v7643_v43  ;;  %7129 = vmatpush3.bf16.msra.mxu0 %v7128_v62  ;;  %v4556_v62 = vld [vmem:[%s8364_s5 + $0xa8] sm:$0xff] }
 0xb51   : > { %7130 = vmatprep.subr.bf16.mxu0 %v7643_v43 }
 0xb53   : > { %7102 = vmatpush3.bf16.msra.mxu1 %v7101_v13  ;;  %v7137_v13 = vpack.c.bf16 %v3754_v12, %v3753_v11 }
 0xb54   : > { %7103 = vmatprep.subr.bf16.mxu1 %v7643_v43  ;;  %7132 = vmatpush3.bf16.msra.mxu0 %v7131_v3  ;;  %v7224_v3 = vpack.c.bf16 %v4560_v2, %v4559_v1  ;;  %v4576_v1 = vld [vmem:[%s8364_s5 + $0x148] sm:$0xff] }
 0xb55   : > { %7133 = vmatprep.subr.bf16.mxu0 %v7643_v43 }
 0xb57   : > { %7105 = vmatpush3.bf16.msra.mxu1 %v7104_v16 }
 0xb58   : > { %7106 = vmatprep.subr.bf16.mxu1 %v7643_v43  ;;  %7135 = vmatpush3.bf16.msra.mxu0 %v7134_v10  ;;  %v7230_v10 = vpack.c.bf16 %v4564_v9, %v4563_v8  ;;  %v4580_v8 = vld [vmem:[%s8364_s5 + $0x168] sm:$0xff] }
 0xb59   : > { %7136 = vmatprep.subr.bf16.mxu0 %v7643_v43 }
 0xb5b   : > { %7108 = vmatpush3.bf16.msra.mxu1 %v7107_v19  ;;  %v4548_v19 = vld [vmem:[#allocation9 + $0x7] ss:$0 sm:$0xff] }
 0xb5c   : > { %7109 = vmatprep.subr.bf16.mxu1 %v7643_v43  ;;  %7138 = vmatpush3.bf16.msra.mxu0 %v7137_v13 }
 0xb5d   : > { %7163 = vmatprep.subr.bf16.mxu0 %v7643_v43 }
 0xb5f   : > { %7111 = vmatpush3.bf16.msra.mxu1 %v7110_v24 }
 0xb60   : > { %7112 = vmatprep.subr.bf16.mxu1 %v7643_v43 }
 0xb63   : > { %7114 = vmatpush3.bf16.msra.mxu1 %v7113_v27  ;;  %v3773_v27 = vld [vmem:[#allocation8 + $0xd00] sm:$0xff] }
 0xb64   : > { %7139 = vmatprep.subr.bf16.mxu1 %v7643_v43  ;;  %v7164_v30 = vpack.c.bf16 %v3774_v29, %v3773_v27  ;;  %v4091_v27 = vld [vmem:[%s8364_s5 + $0x18] sm:$0xff] }
 0xb66   : > { %6139 = vmatmul.mubr.f32.vlgmr.msra.gmra.mrb[16].mxu1 %v3658_v5  ;;  %v3771_v5 = vld [vmem:[#allocation8 + $0xcf8] sm:$0xff] }
 0xb67   : > { %6208 = vmatprep.mubr.msk.f32.mxu1 %vm7644_vm4, %v7642_v6  ;;  %7141 = vmatpush3.bf16.msra.mxu1 %v7140_v33  ;;  %v7161_v7 = vpack.c.bf16 %v3771_v5, %v3770_v4  ;;  %v3776_v33 = vld [vmem:[#allocation8 + $0xd18] sm:$0xff]  ;;  %v4561_v4 = vld [vmem:[%s8364_s5 + $0xd0] sm:$0xff]  ;;  %v4562_v5 = vld [vmem:[%s8364_s5 + $0xd8] sm:$0xff] }
 0xb68   : > { %7142 = vmatprep.subr.bf16.mxu1 %v7643_v43  ;;  %v7167_v34 = vpack.c.bf16 %v3776_v33, %v3775_v31  ;;  %v4093_v31 = vld [vmem:[%s8364_s5 + $0x28] sm:$0xff] }
 0xb6b   : > { %7144 = vmatpush3.bf16.msra.mxu1 %v7143_v39  ;;  %v3779_v39 = vld [vmem:[#allocation8 + $0xd30] sm:$0xff] }
 0xb6c   : > { %7145 = vmatprep.subr.bf16.mxu1 %v7643_v43  ;;  %v7173_v40 = vpack.c.bf16 %v3780_v41, %v3779_v39  ;;  %v4099_v39 = vld [vmem:[%s8364_s5 + $0x58] sm:$0xff] }
 0xb6f   : > { %7147 = vmatpush3.bf16.msra.mxu1 %v7146_v47  ;;  %v3784_v47 = vld [vmem:[#allocation8 + $0xd58] sm:$0xff] }
 0xb70   : > { %7148 = vmatprep.subr.bf16.mxu1 %v7643_v43  ;;  %v7179_v48 = vpack.c.bf16 %v3784_v47, %v3783_v46  ;;  %v4101_v46 = vld [vmem:[%s8364_s5 + $0x68] sm:$0xff] }
 0xb73   : > { %7150 = vmatpush3.bf16.msra.mxu1 %v7149_v53  ;;  %v3788_v53 = vld [vmem:[#allocation8 + $0xd78] sm:$0xff] }
 0xb74   : > { %7151 = vmatprep.subr.bf16.mxu1 %v7643_v43  ;;  %v7185_v54 = vpack.c.bf16 %v3788_v53, %v3787_v52 }
 0xb77   : > { %7153 = vmatpush3.bf16.msra.mxu1 %v7152_v59  ;;  %v4554_v59 = vld [vmem:[%s8364_s5 + $0x98] sm:$0xff] }
 0xb78   : > { %7154 = vmatprep.subr.bf16.mxu1 %v7643_v43  ;;  %v7215_v60 = vpack.c.bf16 %v4554_v59, %v4553_v57  ;;  %v4569_v57 = vld [vmem:[%s8364_s5 + $0x110] sm:$0xff] }
 0xb7b   : > { %7156 = vmatpush3.bf16.msra.mxu1 %v7155_v63  ;;  %v7218_v63 = vpack.c.bf16 %v4556_v62, %v4555_v61  ;;  %v4571_v61 = vld [vmem:[%s8364_s5 + $0x120] sm:$0xff]  ;;  %v4572_v62 = vld [vmem:[%s8364_s5 + $0x128] sm:$0xff] }
 0xb7c   : > { %7157 = vmatprep.subr.bf16.mxu1 %v7643_v43 }
 0xb7f   : > { %7159 = vmatpush3.bf16.msra.mxu1 %v7158_v0  ;;  %v7221_v0 = vpack.c.bf16 %v4558_v23, %v4557_v21  ;;  %v4573_v21 = vld [vmem:[%s8364_s5 + $0x130] sm:$0xff] }
 0xb80   : > { %7160 = vmatprep.subr.bf16.mxu1 %v7643_v43 }
 0xb83   : > { %7162 = vmatpush3.bf16.msra.mxu1 %v7161_v7  ;;  %v7227_v7 = vpack.c.bf16 %v4562_v5, %v4561_v4  ;;  %v4578_v4 = vld [vmem:[%s8364_s5 + $0x158] sm:$0xff] }
 0xb84   : > { %6246 = vmatprep.subr.mxu1 %v7642_v6 }
 0xc11   : > { %v3654_v14 = vpop.f32.mrb[18].mxu0 }
 0xc12   : > { %v6105_v15 = vpop.f32.mrb[19].mxu0 }
 0xc19   : > { %v3584_v16 = vpop.f32.mrb[14].mxu1 }
 0xc1a   : > { %v3655_v17 = vadd.f32 %v3654_v14, %v3584_v16  ;;  %v6070_v18 = vpop.f32.mrb[15].mxu1  ;;  %v4549_v16 = vld [vmem:[#allocation9 + $0x8] ss:$0 sm:$0xff] }
 0xc1b   : > { %v4088_v18 = vld [vmem:[%s8364_s5] sm:$0xff] }
 0xc39   : > { %v3725_v20 = vpop.f32.mrb[16].mxu1 }
 0xc3a   : > { %v3729_v22 = vadd.f32 %v3725_v20, %v3655_v17  ;;  %v6140_v24 = vpop.f32.mrb[17].mxu1 }
 0xc3c   : > { %v3736_v25 = vadd.f32 %v4548_v19, %v3729_v22  ;;  %v4089_v19 = vld [vmem:[%s8364_s5 + $0x8] sm:$0xff] }
 0xc3e   : > { %v3737_v26 = vadd.f32 %v3736_v25, %v8055_v37  ;;  %v3777_v37 = vld [vmem:[#allocation8 + $0xd20] sm:$0xff]  ;;  %v7188_v25 = vpack.c.bf16 %v4089_v19, %v4088_v18  ;;  %v4583_v19 = vld [vmem:[#allocation11] ss:$0 sm:$0xff] }
 0xc3f   : > { %v7170_v38 = vpack.c.bf16 %v3778_v36, %v3777_v37  ;;  %v4097_v37 = vld [vmem:[%s8364_s5 + $0x48] sm:$0xff] }
 0xc40   : > { %3792 = vst [vmem:[#allocation2 + $0x1] sm:$0xff] %v3737_v26  ;;  %6209 = vmatmul.mubr.f32.vlgmr.msra.gmra.mrb[18].mxu1 %v3737_v26  ;;  %v4090_v26 = vld [vmem:[%s8364_s5 + $0x10] sm:$0xff] }
 0xc41   : > { %6248 = vmatprep.mubr.msk.f32.mxu1 %vm7644_vm4, %v7642_v6  ;;  %v7191_v29 = vpack.c.bf16 %v4091_v27, %v4090_v26 }
 0xc47   : > { %v3794_v32 = vld [vmem:[#allocation2] sm:$0xff] }
 0xc48   : > { %v3935_v35 = vld [vmem:[#allocation2 + $0x2] sm:$0xff]  ;;  %6174 = vmatmul.mubr.f32.vlgmr.msra.gmra.mrb[20].mxu0 %v3794_v32  ;;  %4139 = vst [vmem:[#allocation2] sm:$0x1] %v7642_v6 }
 0xc49   : > { %4141 = vst [vmem:[#allocation2 + $0x5] sm:$0x1] %v7642_v6  ;;  %7165 = vmatpush3.bf16.msra.mxu0 %v7164_v30  ;;  %6243 = vmatprep.mubr.msk.f32.mxu0 %vm7644_vm4, %v7642_v6  ;;  %v4092_v30 = vld [vmem:[%s8364_s5 + $0x20] sm:$0xff]  ;;  %v4095_v32 = vld [vmem:[%s8364_s5 + $0x38] sm:$0xff] }
 0xc4a   : > { %7166 = vmatprep.subr.bf16.mxu0 %v7643_v43  ;;  %v7194_v33 = vpack.c.bf16 %v4093_v31, %v4092_v30 }
 0xc4d   : > { %7168 = vmatpush3.bf16.msra.mxu0 %v7167_v34  ;;  %v4096_v34 = vld [vmem:[%s8364_s5 + $0x40] sm:$0xff] }
 0xc4e   : > { %7169 = vmatprep.subr.bf16.mxu0 %v7643_v43  ;;  %v7200_v36 = vpack.c.bf16 %v4097_v37, %v4096_v34 }
 0xc51   : > { %7171 = vmatpush3.bf16.msra.mxu0 %v7170_v38  ;;  %v4098_v38 = vld [vmem:[%s8364_s5 + $0x50] sm:$0xff] }
 0xc52   : > { %7172 = vmatprep.subr.bf16.mxu0 %v7643_v43  ;;  %v7203_v41 = vpack.c.bf16 %v4099_v39, %v4098_v38 }
 0xc55   : > { %7174 = vmatpush3.bf16.msra.mxu0 %v7173_v40  ;;  %v4565_v40 = vld [vmem:[%s8364_s5 + $0xf0] sm:$0xff] }
 0xc56   : > { %7175 = vmatprep.subr.bf16.mxu0 %v7643_v43  ;;  %v7233_v44 = vpack.c.bf16 %v4566_v42, %v4565_v40 }
 0xc59   : > { %7177 = vmatpush3.bf16.msra.mxu0 %v7176_v45  ;;  %v4100_v45 = vld [vmem:[%s8364_s5 + $0x60] sm:$0xff] }
 0xc5a   : > { %7178 = vmatprep.subr.bf16.mxu0 %v7643_v43  ;;  %v7206_v47 = vpack.c.bf16 %v4101_v46, %v4100_v45 }
 0xc5d   : > { %7180 = vmatpush3.bf16.msra.mxu0 %v7179_v48  ;;  %v4102_v48 = vld [vmem:[%s8364_s5 + $0x70] sm:$0xff] }
 0xc5e   : > { %7181 = vmatprep.subr.bf16.mxu0 %v7643_v43  ;;  %v7209_v50 = vpack.c.bf16 %v4103_v49, %v4102_v48 }
 0xc61   : > { %7183 = vmatpush3.bf16.msra.mxu0 %v7182_v51 }
 0xc62   : > { %7184 = vmatprep.subr.bf16.mxu0 %v7643_v43 }
 0xc65   : > { %7186 = vmatpush3.bf16.msra.mxu0 %v7185_v54  ;;  %v4567_v54 = vld [vmem:[%s8364_s5 + $0x100] sm:$0xff] }
 0xc66   : > { %7211 = vmatprep.subr.bf16.mxu0 %v7643_v43  ;;  %v7236_v56 = vpack.c.bf16 %v4568_v55, %v4567_v54 }
 0xc68   : > { %6244 = vmatmul.mubr.f32.vlgmr.msra.gmra.mrb[22].mxu0 %v3935_v35 }
 0xc69   : > { %6318 = vmatprep.mubr.msk.f32.mxu0 %vm7644_vm4, %v7642_v6  ;;  %7213 = vmatpush3.bf16.msra.mxu0 %v7212_v58  ;;  %v4570_v58 = vld [vmem:[%s8364_s5 + $0x118] sm:$0xff] }
 0xc6a   : > { %7214 = vmatprep.subr.bf16.mxu0 %v7643_v43 }
 0xc6d   : > { %7216 = vmatpush3.bf16.msra.mxu0 %v7215_v60  ;;  %v7239_v60 = vpack.c.bf16 %v4570_v58, %v4569_v57 }
 0xc6e   : > { %7217 = vmatprep.subr.bf16.mxu0 %v7643_v43 }
 0xc71   : > { %7219 = vmatpush3.bf16.msra.mxu0 %v7218_v63  ;;  %v7242_v63 = vpack.c.bf16 %v4572_v62, %v4571_v61 }
 0xc72   : > { %7220 = vmatprep.subr.bf16.mxu0 %v7643_v43 }
 0xc75   : > { %7222 = vmatpush3.bf16.msra.mxu0 %v7221_v0  ;;  %v4575_v0 = vld [vmem:[%s8364_s5 + $0x140] sm:$0xff] }
 0xc76   : > { %7223 = vmatprep.subr.bf16.mxu0 %v7643_v43  ;;  %v7248_v2 = vpack.c.bf16 %v4576_v1, %v4575_v0 }
 0xc79   : > { %7225 = vmatpush3.bf16.msra.mxu0 %v7224_v3  ;;  %v4577_v3 = vld [vmem:[%s8364_s5 + $0x150] sm:$0xff] }
 0xc7a   : > { %7226 = vmatprep.subr.bf16.mxu0 %v7643_v43  ;;  %v7251_v5 = vpack.c.bf16 %v4578_v4, %v4577_v3 }
 0xc7d   : > { %7228 = vmatpush3.bf16.msra.mxu0 %v7227_v7  ;;  %v4579_v7 = vld [vmem:[%s8364_s5 + $0x160] sm:$0xff] }
 0xc7e   : > { %7229 = vmatprep.subr.bf16.mxu0 %v7643_v43  ;;  %v7254_v9 = vpack.c.bf16 %v4580_v8, %v4579_v7 }
 0xc81   : > { %7231 = vmatpush3.bf16.msra.mxu0 %v7230_v10  ;;  %v4581_v10 = vld [vmem:[%s8364_s5 + $0x170] sm:$0xff] }
 0xc82   : > { %7232 = vmatprep.subr.bf16.mxu0 %v7643_v43 }
 0xc85   : > { %7234 = vmatpush3.bf16.msra.mxu0 %v7233_v44 }
 0xd13   : > { %v3931_v11 = vpop.f32.mrb[18].mxu1 }
 0xd14   : > { %v6210_v12 = vpop.f32.mrb[19].mxu1 }
 0xd1b   : > { %v3861_v13 = vpop.f32.mrb[20].mxu0 }
 0xd1c   : > { %v3932_v14 = vadd.f32 %v3931_v11, %v3861_v13  ;;  %v6175_v15 = vpop.f32.mrb[21].mxu0  ;;  %v4582_v11 = vld [vmem:[%s8364_s5 + $0x178] sm:$0xff] }
 0xd1d   : > { %v7257_v12 = vpack.c.bf16 %v4582_v11, %v4581_v10 }
 0xd3b   : > { %v4002_v17 = vpop.f32.mrb[22].mxu0 }
 0xd3c   : > { %v4006_v20 = vadd.f32 %v4002_v17, %v3932_v14  ;;  %v6245_v22 = vpop.f32.mrb[23].mxu0 }
 0xd3e   : > { %v4013_v24 = vadd.f32 %v4549_v16, %v4006_v20 }
 0xd40   : > { %6247 = vmatpush3.msra.mxu1 %v4013_v24 }
 0xd41   : > { %6249 = vmatmul.mubr.msk.f32.vlgmr.msra.gmra.mrb[20].mxu1 %vm4014_vm5, %v7998_v28  ;;  %7187 = vmatprep.subr.bf16.mxu1 %v7643_v43  ;;  %v4094_v28 = vld [vmem:[%s8364_s5 + $0x30] sm:$0xff] }
 0xd42   : > { %7189 = vmatpush3.bf16.msra.mxu1 %v7188_v25  ;;  %6283 = vmatprep.mubr.msk.f32.mxu1 %vm7644_vm4, %v7642_v6  ;;  %v7197_v35 = vpack.c.bf16 %v4095_v32, %v4094_v28 }
 0xd43   : > { %7190 = vmatprep.subr.bf16.mxu1 %v7643_v43 }
 0xd46   : > { %7192 = vmatpush3.bf16.msra.mxu1 %v7191_v29 }
 0xd47   : > { %7193 = vmatprep.subr.bf16.mxu1 %v7643_v43 }
 0xd4a   : > { %7195 = vmatpush3.bf16.msra.mxu1 %v7194_v33 }
 0xd4b   : > { %7196 = vmatprep.subr.bf16.mxu1 %v7643_v43 }
 0xd4e   : > { %7198 = vmatpush3.bf16.msra.mxu1 %v7197_v35 }
 0xd4f   : > { %7199 = vmatprep.subr.bf16.mxu1 %v7643_v43 }
 0xd52   : > { %7201 = vmatpush3.bf16.msra.mxu1 %v7200_v36 }
 0xd53   : > { %7202 = vmatprep.subr.bf16.mxu1 %v7643_v43 }
 0xd56   : > { %7204 = vmatpush3.bf16.msra.mxu1 %v7203_v41 }
 0xd57   : > { %7205 = vmatprep.subr.bf16.mxu1 %v7643_v43 }
 0xd5a   : > { %7207 = vmatpush3.bf16.msra.mxu1 %v7206_v47 }
 0xd5b   : > { %7208 = vmatprep.subr.bf16.mxu1 %v7643_v43 }
 0xd5e   : > { %7210 = vmatpush3.bf16.msra.mxu1 %v7209_v50 }
 0xd5f   : > { %7235 = vmatprep.subr.bf16.mxu1 %v7643_v43 }
 0xe14   : > { %v4083_v51 = vpop.f32.mrb[20].mxu1 }
 0xe15   : > { %v4087_v52 = vmax.f32 %v4083_v51, 0.0  ;;  %v6250_v53 = vpop.f32.mrb[21].mxu1 }
 0xe17   : > { %4140 = vst [vmem:[#allocation2 + $0x1] sm:$0xf] %v4087_v52  ;;  %6319 = vmatmul.mubr.f32.vlgmr.msra.gmra.mrb[24].mxu0 %v4087_v52 }
 0xe1e   : > { %v4142_v59 = vld [vmem:[#allocation2] sm:$0xf] }
 0xe1f   : > { %6284 = vmatmul.mubr.f32.vlgmr.msra.gmra.mrb[22].mxu1 %v4142_v59  ;;  %v4283_v13 = vld [vmem:[#allocation2 + $0x2] sm:$0xf] }
 0xe20   : > { %7237 = vmatpush3.bf16.msra.mxu1 %v7236_v56  ;;  %6353 = vmatprep.mubr.msk.f32.mxu1 %vm7644_vm4, %v7642_v6  ;;  %v4574_v6 = vld [vmem:[%s8364_s5 + $0x138] sm:$0xff] }
 0xe21   : > { %7238 = vmatprep.subr.bf16.mxu1 %v7643_v43  ;;  %v7245_v23 = vpack.c.bf16 %v4574_v6, %v4573_v21 }
 0xe24   : > { %7240 = vmatpush3.bf16.msra.mxu1 %v7239_v60 }
 0xe25   : > { %7241 = vmatprep.subr.bf16.mxu1 %v7643_v43 }
 0xe28   : > { %7243 = vmatpush3.bf16.msra.mxu1 %v7242_v63 }
 0xe29   : > { %7244 = vmatprep.subr.bf16.mxu1 %v7643_v43 }
 0xe2c   : > { %7246 = vmatpush3.bf16.msra.mxu1 %v7245_v23 }
 0xe2d   : > { %7247 = vmatprep.subr.bf16.mxu1 %v7643_v43 }
 0xe30   : > { %7249 = vmatpush3.bf16.msra.mxu1 %v7248_v2 }
 0xe31   : > { %7250 = vmatprep.subr.bf16.mxu1 %v7643_v43 }
 0xe34   : > { %7252 = vmatpush3.bf16.msra.mxu1 %v7251_v5 }
 0xe35   : > { %7253 = vmatprep.subr.bf16.mxu1 %v7643_v43 }
 0xe38   : > { %7255 = vmatpush3.bf16.msra.mxu1 %v7254_v9 }
 0xe39   : > { %7256 = vmatprep.subr.bf16.mxu1 %v7643_v43 }
 0xe3c   : > { %7258 = vmatpush3.bf16.msra.mxu1 %v7257_v12 }
 0xe3f   : > { %6354 = vmatmul.mubr.f32.vlgmr.msra.gmra.mrb[24].mxu1 %v4283_v13 }
 0xeea   : > { %v4279_v14 = vpop.f32.mrb[24].mxu0 }
 0xeeb   : > { %v6320_v15 = vpop.f32.mrb[25].mxu0 }
 0xef2   : > { %v4209_v16 = vpop.f32.mrb[22].mxu1 }
 0xef3   : > { %v4280_v17 = vadd.f32 %v4279_v14, %v4209_v16  ;;  %v6285_v18 = vpop.f32.mrb[23].mxu1 }
 0xf12   : > { %v4350_v20 = vpop.f32.mrb[24].mxu1 }
 0xf13   : > { %v4354_v22 = vadd.f32 %v4350_v20, %v4280_v17  ;;  %v6355_v24 = vpop.f32.mrb[25].mxu1 }
 0xf15   : > { %v4361_v25 = vadd.f32 %v4583_v19, %v4354_v22 }
 0xf17   : > { %v4362_v26 = vmax.f32 %v4361_v25, 0.0 }
 0xf19   : > { %v4364_v27 = vsel %vm4363_vm6, %v4362_v26, 0.0 }
 0xf1a   : > { %v4365_v29 = vrot.slane %v4364_v27, 4 }
 0xf1c   : > { %v4366_v43 = vadd.f32 %v4365_v29, %v4364_v27 }
 0xf1e   : > { %v4367_v30 = vrot.slane %v4366_v43, 2 }
 0xf20   : > { %v4368_v31 = vadd.f32 %v4367_v30, %v4366_v43 }
 0xf22   : > { %v4369_v33 = vrot.slane %v4368_v31, 1 }
 0xf24   : > { %v4370_v28 = vadd.f32 %v4369_v33, %v4368_v31 }
 0xf26   : > { %v4371_v32 = vmul.f32 0.25, %v4370_v28 }
 0xf28   : > { %4373 = vst.msk [vmem:[%s339_s26] sm:$0x1] %vm4372_vm7, %v4371_v32 }
 0xf29   : > { %7570 = shalt.err (!%p7567_p1)
}
 0xf2a   : > { %s7571_s22 = scalar_lea.hbm %s8317_s16, 16  ;;  %s7575_s18 = scalar_lea.hbm %s8366_s7, 32 }
 0xf2b   : > { %p7572_p0 = scmp.ne.s32.totalorder %s8317_s16, %s7571_s22  ;;  %p7576_p9 = scmp.lt.u32.totalorder %s8317_s16, %s8366_s7 }
 0xf2c   : > { %p7577_p12 = scmp.lt.u32.totalorder %s7575_s18, %s7571_s22  ;;  %p7579_p2 = scmp.lt.u32.totalorder %s7571_s22, %s8317_s16 }
 0xf2d   : > { %p7573_p6 = pnand %p7572_p0, %p8394_p3 }
 0xf2e   : > { %p7578_p10 = por %p7577_p12, %p7576_p9 }
 0xf2f   : > { %p7574_p5 = pneg %p7573_p6 }
 0xf30   : > { %p7580_p4 = por %p7579_p2, %p7578_p10 }
 0xf32   : > { %p7581_p7 = pnand %p7580_p4, %p7574_p5 }
 0xf34   : > { %7584 = shalt.err (!%p7581_p7)
}
 0xf35   : > { %7340 = dma.vmem_to_hbm [thread:$0]  (%p8394_p3), %s8319_s30, 16, %s8317_s16, %s4375_s21  }
 0xf36 PF: > { %p7372_p8 = scmp.ge.s32.totalorder %s7631_s27, 2  ;;  %s4399_s23 = sand.u32 1, %s7619_s24  }
 0xf37   : > { %p8395_p11 = scmp.ne.s32.totalorder %s8379_s12, 0  ;;  %s4400_s20 = scalar_lea.sflag [#allocation5], %s4399_s23 }
 0xf39   : > { %p7359_p13 = pnand %p7372_p8, %p8395_p11 }
 0xf3b   : > { %7614 = dma.done.wait (!%p7359_p13), %s4400_s20, 16  }
 0xf3c   : > { %7616 = vsyncadd (!%p7359_p13), %s4400_s20, 4294967280  ;;  %s8396_s27 = sld [smem:[#allocation18_spill]]  ;;  %s8397_s4 = sld [smem:[#allocation17_spill]] }
 0xf3d   : > { %s8398_s26 = sld [smem:[#allocation19_spill]]  ;;  %s8399_s24 = smov %s7623_s25 }
 0xf42   : > { %p20_p1 = scmp.ge.s32.totalorder %s8396_s27, 4   ;;  %s8400_s25 = smov %s8397_s4 }
 0xf44   :  { %22 = sbr.rel (!%p20_p1) target bundleno = 9 (0x9), region = 146 }
 0xf4b   :  { %4404 = vsyncpa [#allocation4], 1 }
 0xf4c   :  { %4406 = vsyncpa [#allocation4 + $0x1], 1 }
 0xf4d   :  { %4407 = vsyncpa [#allocation7], 1 }
 0xf4e   :  { %4408 = vsyncpa [#allocation10], 1 }
 0xf4f   :  { %4409 = vsyncpa [#allocation5], 1 }
 0xf50   :  { %4411 = vsyncpa [#allocation5 + $0x1], 1 }

</bundles_post_ra>
